<compile_context>
chip_gen: v7x
topology: tpu7x:2x2x1
jax: 0.10.0
libtpu: 0.0.40
codegen_flags: <defaults>
</compile_context>

<pallas_src>
import functools

import numpy as np
import jax
import jax.numpy as jnp
from jax.experimental import pallas as pl
from jax.experimental.pallas import tpu as pltpu

ROT = 8  # matches `rot = 8` in the PyTorch file


# ---------------------------------------------------------------------------
# Static offset / shift tables (plain numpy, mirrors cal_rot_pad)
# ---------------------------------------------------------------------------
def compute_offsets(K, r):
    """Per-rotation, per-tap rounded integer shifts (lx, ly) and crop margin m."""
    half = (K - 1) / 2
    locx = np.array([[j - half for j in range(K)] for _ in range(K)])
    locy = np.array([[i - half for _ in range(K)] for i in range(K)])
    loc = np.concatenate((locx.reshape(-1, 1), locy.reshape(-1, 1)), axis=1)
    rots = []
    for i in range(r):
        th = 2 * np.pi / r * i
        R = np.array([[np.cos(th), -np.sin(th)], [np.sin(th), np.cos(th)]])
        rots.append(np.around(loc @ R))          # np.around == PyTorch code's rounding
    m = 0
    for l in rots:
        a = int(np.max(l))
        if a > m:
            m = a
    offs = [[(int(l[k, 0]), int(l[k, 1])) for k in range(K * K)] for l in rots]
    return offs, int(m)


def build_shift_tables(K, r):
    """Unique shifts, the (r, K*K, n_shifts) tap->shift scatter matrix, and m."""
    offs, m = compute_offsets(K, r)
    uniq = sorted({s for row in offs for s in row})
    sidx = {s: i for i, s in enumerate(uniq)}
    S = np.zeros((r, K * K, len(uniq)), np.float32)
    for i in range(r):
        for k in range(K * K):
            S[i, k, sidx[offs[i][k]]] += 1.0  # sums taps that round to the same shift
    return tuple(uniq), S, m


# ---------------------------------------------------------------------------
# Fused Pallas kernel: merged-weight conv (one bf16 MXU matmul) + BatchNorm
# ---------------------------------------------------------------------------
def _rotate_conv_bn_kernel(xp_ref, w_ref, g_ref, b_ref, o_ref, *,
                           shifts, m, H, W, ifbn, eps):
    # xp_ref: (B, H+2m, W+2m, C) f32 padded input
    # w_ref : (n_shifts*C, CP)   bf16 merged weight (zero-padded to CP lanes)
    # g_ref, b_ref: (1, CP) f32  tiled+padded BN affine params
    # o_ref : (B*H*W, CP) f32    lane-dense output slab
    B = xp_ref.shape[0]
    C = xp_ref.shape[3]
    M = B * H * W

    # Single im2col over the unique spatial shifts (built once, not once/rotation).
    patches = []
    for (lx, ly) in shifts:
        sh, sw = m - ly, m - lx                        # static python ints
        patches.append(xp_ref[:, sh:sh + H, sw:sw + W, :])     # (B, H, W, C)
    a = jnp.concatenate(patches, axis=-1)              # (B, H, W, n_shifts*C)
    a = a.reshape(M, len(shifts) * C).astype(jnp.bfloat16)     # one reshape, lanes last

    # One MXU matmul: bf16 operands, f32 accumulation. N = CP = 128 (lane-dense).
    y = jnp.dot(a, w_ref[...], preferred_element_type=jnp.float32)  # (M, CP) f32

    if ifbn:
        # Training-mode BatchNorm: biased batch stats per output channel
        # (padded channels are all-zero with gamma=beta=0 -> stay exactly 0).
        mean = jnp.mean(y, axis=0, keepdims=True)
        var = jnp.mean(jnp.square(y - mean), axis=0, keepdims=True)
        y = (y - mean) * jax.lax.rsqrt(var + eps) * g_ref[...] + b_ref[...]

    o_ref[...] = y.astype(o_ref.dtype)                 # unmasked 128-lane stores


# ---------------------------------------------------------------------------
# Forward wrapper
# ---------------------------------------------------------------------------
@functools.partial(jax.jit, static_argnames=("ifbn", "s", "eps"))
def rotate_conv_forward(x_nchw, W0, gamma, beta, ifbn=True, s=1, eps=1e-5):
    assert s == 1  # TODO(synk): stride s > 1 branch of rotateConv_eff not implemented
    B, C, H, W = x_nchw.shape
    oc_r, _, K, _ = W0.shape
    r = ROT
    assert C % r == 0, "in_channel must be divisible by rot"

    shifts, S, m = build_shift_tables(K, r)
    n_shifts = len(shifts)
    Cout = r * oc_r
    CP = ((Cout + 127) // 128) * 128          # lane-dense padded channel count
    Mrows = B * H * W

    # ---- merged weight (built outside the kernel, once per forward, like
    #      self.get_weight() in the PyTorch forward) -------------------------
    grp = C // r
    perms = np.stack([
        np.array([((c // grp - i) % r) * grp + (c % grp) for c in range(C)])
        for i in range(r)])                                        # (r, C)
    # (oc_r, r, C, K, K) -> (r, kh, kw, C, oc_r) -> (r, K*K, C, oc_r)
    wrot = jnp.transpose(W0[:, perms, :, :], (1, 3, 4, 2, 0)).reshape(r, K * K, C, oc_r)
    # scatter taps onto unique shifts (exact in f32; a permutation for K=3,r=8)
    wm = jnp.einsum("rks,rkco->scro", jnp.asarray(S), wrot,
                    precision=jax.lax.Precision.HIGHEST)           # (ns, C, r, oc_r)
    wm = wm.reshape(n_shifts * C, Cout)
    wm = jnp.pad(wm, ((0, 0), (0, CP - Cout))).astype(jnp.bfloat16)

    # Shared BN affine params tiled over the r rotation groups, zero-padded to CP.
    g_full = jnp.pad(jnp.tile(gamma.astype(jnp.float32), r), (0, CP - Cout)).reshape(1, CP)
    b_full = jnp.pad(jnp.tile(beta.astype(jnp.float32), r), (0, CP - Cout)).reshape(1, CP)

    # NCHW -> NHWC (+ halo pad of m on each side).
    x = jnp.transpose(x_nchw, (0, 2, 3, 1)).astype(jnp.float32)
    xp = jnp.pad(x, ((0, 0), (m, m), (m, m), (0, 0)))

    kernel = functools.partial(
        _rotate_conv_bn_kernel, shifts=shifts, m=m, H=H, W=W, ifbn=ifbn, eps=eps)
    vmem = pl.BlockSpec(memory_space=pltpu.MemorySpace.VMEM)  # whole array in VMEM
    out2d = pl.pallas_call(
        kernel,
        out_shape=jax.ShapeDtypeStruct((Mrows, CP), jnp.float32),
        in_specs=[vmem, vmem, vmem, vmem],
        out_specs=vmem,
    )(xp, wm, g_full, b_full)

    out = out2d[:, :Cout].reshape(B, H, W, Cout)       # drop lane padding
    return jnp.transpose(out, (0, 3, 1, 2))            # NHWC -> NCHW


# ---------------------------------------------------------------------------
# Pure-JAX reference (no Pallas) for verification.
# Operands are rounded to bf16 exactly as the kernel does, so the comparison
# isolates structural correctness (offsets, channel rotation, weight merging,
# BN) with a tight tolerance; only the f32 summation order differs.
# ---------------------------------------------------------------------------
def reference_forward(x_nchw, W0, gamma, beta, ifbn=True, eps=1e-5):
    B, C, H, W = x_nchw.shape
    oc_r, _, K, _ = W0.shape
    r = ROT
    grp = C // r
    offs, m = compute_offsets(K, r)
    xp = jnp.pad(x_nchw, ((0, 0), (0, 0), (m, m), (m, m))).astype(jnp.bfloat16)
    outs = []
    for i in range(r):
        perm = np.array([((c // grp - i) % r) * grp + (c % grp) for c in range(C)])
        Wi = W0[:, perm, :, :].astype(jnp.bfloat16)
        acc = jnp.zeros((B, oc_r, H, W), jnp.float32)
        for k in range(K * K):
            kh, kw = k // K, k % K
            lx, ly = offs[i][k]
            patch = xp[:, :, m - ly:m - ly + H, m - lx:m - lx + W]
            acc = acc + jnp.einsum("bchw,oc->bohw", patch, Wi[:, :, kh, kw],
                                   preferred_element_type=jnp.float32)
        outs.append(acc)
    y = jnp.concatenate(outs, axis=1)
    if ifbn:
        mean = jnp.mean(y, axis=(0, 2, 3), keepdims=True)
        var = jnp.mean(jnp.square(y - mean), axis=(0, 2, 3), keepdims=True)
        gt = jnp.tile(gamma, r).reshape(1, -1, 1, 1)
        bt = jnp.tile(beta, r).reshape(1, -1, 1, 1)
        y = (y - mean) * jax.lax.rsqrt(var + eps) * gt + bt
    return y


if __name__ == "__main__":
    key = jax.random.PRNGKey(0)
    B, Cin, H, W = 2, 8, 16, 16        # in_channel must be divisible by rot=8
    Cout_total, K = 32, 3              # Rotate_Conv(8, 32, 3)
    oc_r = Cout_total // ROT           # conv out channels = out_channel / rot

    kx, kw = jax.random.split(key)
    x = jax.random.normal(kx, (B, Cin, H, W), dtype=jnp.float32)
    W0 = 0.1 * jax.random.normal(kw, (oc_r, Cin, K, K), dtype=jnp.float32)
    gamma = jnp.ones((oc_r,), jnp.float32)   # BatchNorm2d default affine init
    beta = jnp.zeros((oc_r,), jnp.float32)

    out = jax.block_until_ready(rotate_conv_forward(x, W0, gamma, beta))
    ref = jax.block_until_ready(reference_forward(x, W0, gamma, beta))

    assert out.shape == (B, Cout_total, H, W), out.shape
    np.testing.assert_allclose(np.asarray(out), np.asarray(ref), rtol=2e-3, atol=2e-3)
    print("KERNEL_OK")
</pallas_src>

<mosaic_0001>
module attributes {stable_mosaic.version = 11 : i64} {
  func.func @_rotate_conv_bn_kernel(%arg0: memref<2x18x18x8xf32, #tpu.memory_space<vmem>>, %arg1: memref<72x128xbf16, #tpu.memory_space<vmem>>, %arg2: memref<1x128xf32, #tpu.memory_space<vmem>>, %arg3: memref<1x128xf32, #tpu.memory_space<vmem>>, %arg4: memref<512x128xf32, #tpu.memory_space<vmem>>) attributes {dimension_semantics = [], scalar_prefetch = 0 : i64, scratch_operands = 0 : i64, tpu.core_type = #tpu.core_type<tc>} {
    %c0 = arith.constant 0 : index
    %c2 = arith.constant 2 : index
    %c2_0 = arith.constant 2 : index
    %c0_1 = arith.constant 0 : index
    %0 = vector.load %arg0[%c0, %c2, %c2_0, %c0_1] : memref<2x18x18x8xf32, #tpu.memory_space<vmem>>, vector<2x16x16x8xf32>
    %c0_2 = arith.constant 0 : index
    %c1 = arith.constant 1 : index
    %c2_3 = arith.constant 2 : index
    %c0_4 = arith.constant 0 : index
    %1 = vector.load %arg0[%c0_2, %c1, %c2_3, %c0_4] : memref<2x18x18x8xf32, #tpu.memory_space<vmem>>, vector<2x16x16x8xf32>
    %c0_5 = arith.constant 0 : index
    %c0_6 = arith.constant 0 : index
    %c2_7 = arith.constant 2 : index
    %c0_8 = arith.constant 0 : index
    %2 = vector.load %arg0[%c0_5, %c0_6, %c2_7, %c0_8] : memref<2x18x18x8xf32, #tpu.memory_space<vmem>>, vector<2x16x16x8xf32>
    %c0_9 = arith.constant 0 : index
    %c2_10 = arith.constant 2 : index
    %c1_11 = arith.constant 1 : index
    %c0_12 = arith.constant 0 : index
    %3 = vector.load %arg0[%c0_9, %c2_10, %c1_11, %c0_12] : memref<2x18x18x8xf32, #tpu.memory_space<vmem>>, vector<2x16x16x8xf32>
    %c0_13 = arith.constant 0 : index
    %c1_14 = arith.constant 1 : index
    %c1_15 = arith.constant 1 : index
    %c0_16 = arith.constant 0 : index
    %4 = vector.load %arg0[%c0_13, %c1_14, %c1_15, %c0_16] : memref<2x18x18x8xf32, #tpu.memory_space<vmem>>, vector<2x16x16x8xf32>
    %c0_17 = arith.constant 0 : index
    %c0_18 = arith.constant 0 : index
    %c1_19 = arith.constant 1 : index
    %c0_20 = arith.constant 0 : index
    %5 = vector.load %arg0[%c0_17, %c0_18, %c1_19, %c0_20] : memref<2x18x18x8xf32, #tpu.memory_space<vmem>>, vector<2x16x16x8xf32>
    %c0_21 = arith.constant 0 : index
    %c2_22 = arith.constant 2 : index
    %c0_23 = arith.constant 0 : index
    %c0_24 = arith.constant 0 : index
    %6 = vector.load %arg0[%c0_21, %c2_22, %c0_23, %c0_24] : memref<2x18x18x8xf32, #tpu.memory_space<vmem>>, vector<2x16x16x8xf32>
    %c0_25 = arith.constant 0 : index
    %c1_26 = arith.constant 1 : index
    %c0_27 = arith.constant 0 : index
    %c0_28 = arith.constant 0 : index
    %7 = vector.load %arg0[%c0_25, %c1_26, %c0_27, %c0_28] : memref<2x18x18x8xf32, #tpu.memory_space<vmem>>, vector<2x16x16x8xf32>
    %c0_29 = arith.constant 0 : index
    %c0_30 = arith.constant 0 : index
    %c0_31 = arith.constant 0 : index
    %c0_32 = arith.constant 0 : index
    %8 = vector.load %arg0[%c0_29, %c0_30, %c0_31, %c0_32] : memref<2x18x18x8xf32, #tpu.memory_space<vmem>>, vector<2x16x16x8xf32>
    %9 = tpu.concatenate %0, %1, %2, %3, %4, %5, %6, %7, %8 in 3 : vector<2x16x16x8xf32>, vector<2x16x16x8xf32>, vector<2x16x16x8xf32>, vector<2x16x16x8xf32>, vector<2x16x16x8xf32>, vector<2x16x16x8xf32>, vector<2x16x16x8xf32>, vector<2x16x16x8xf32>, vector<2x16x16x8xf32> -> vector<2x16x16x72xf32>
    %10 = vector.shape_cast %9 : vector<2x16x16x72xf32> to vector<512x72xf32>
    %11 = arith.truncf %10 : vector<512x72xf32> to vector<512x72xbf16>
    %c0_33 = arith.constant 0 : index
    %c0_34 = arith.constant 0 : index
    %12 = vector.load %arg1[%c0_33, %c0_34] : memref<72x128xbf16, #tpu.memory_space<vmem>>, vector<72x128xbf16>
    %cst = arith.constant dense<0.000000e+00> : vector<512x128xf32>
    %13 = tpu.matmul %11, %12, %cst {dimension_numbers = #tpu.dot_dimension_numbers<[1], [0], [0], [1], [0, 0, 1, 1], [], []>} : vector<512x72xbf16>, vector<72x128xbf16>, vector<512x128xf32> -> vector<512x128xf32>
    %cst_35 = arith.constant dense<0.000000e+00> : vector<128xf32>
    %14 = vector.multi_reduction <add>, %13, %cst_35 [0] : vector<512x128xf32> to vector<128xf32>
    %15 = vector.shape_cast %14 : vector<128xf32> to vector<1x128xf32>
    %cst_36 = arith.constant 5.120000e+02 : f32
    %16 = vector.broadcast %cst_36 : f32 to vector<1x128xf32>
    %17 = arith.divf %15, %16 : vector<1x128xf32>
    %18 = vector.broadcast %17 : vector<1x128xf32> to vector<512x128xf32>
    %19 = arith.subf %13, %18 : vector<512x128xf32>
    %20 = arith.mulf %19, %19 : vector<512x128xf32>
    %cst_37 = arith.constant dense<0.000000e+00> : vector<128xf32>
    %21 = vector.multi_reduction <add>, %20, %cst_37 [0] : vector<512x128xf32> to vector<128xf32>
    %22 = vector.shape_cast %21 : vector<128xf32> to vector<1x128xf32>
    %cst_38 = arith.constant 5.120000e+02 : f32
    %23 = vector.broadcast %cst_38 : f32 to vector<1x128xf32>
    %24 = arith.divf %22, %23 : vector<1x128xf32>
    %25 = vector.broadcast %17 : vector<1x128xf32> to vector<512x128xf32>
    %26 = arith.subf %13, %25 : vector<512x128xf32>
    %cst_39 = arith.constant 9.99999974E-6 : f32
    %27 = vector.broadcast %cst_39 : f32 to vector<1x128xf32>
    %28 = arith.addf %24, %27 : vector<1x128xf32>
    %29 = math.rsqrt %28 : vector<1x128xf32>
    %30 = vector.broadcast %29 : vector<1x128xf32> to vector<512x128xf32>
    %31 = arith.mulf %26, %30 : vector<512x128xf32>
    %c0_40 = arith.constant 0 : index
    %c0_41 = arith.constant 0 : index
    %32 = vector.load %arg2[%c0_40, %c0_41] : memref<1x128xf32, #tpu.memory_space<vmem>>, vector<1x128xf32>
    %33 = vector.broadcast %32 : vector<1x128xf32> to vector<512x128xf32>
    %34 = arith.mulf %31, %33 : vector<512x128xf32>
    %c0_42 = arith.constant 0 : index
    %c0_43 = arith.constant 0 : index
    %35 = vector.load %arg3[%c0_42, %c0_43] : memref<1x128xf32, #tpu.memory_space<vmem>>, vector<1x128xf32>
    %36 = vector.broadcast %35 : vector<1x128xf32> to vector<512x128xf32>
    %37 = arith.addf %34, %36 : vector<512x128xf32>
    %c0_44 = arith.constant 0 : index
    %c0_45 = arith.constant 0 : index
    %38 = vector.load %arg4[%c0_44, %c0_45] : memref<512x128xf32, #tpu.memory_space<vmem>>, vector<512x128xf32>
    tpu.vector_store %arg4[%c0_44, %c0_45], %37 {strides = array<i32>} : memref<512x128xf32, #tpu.memory_space<vmem>>, vector<512x128xf32>,
    return
  }
}

</mosaic_0001>

<bundles_post_ra>
// kernel: tile.14
= control target key start
LH: loop header
LB: loop body
LE: loop exit
PB: predicated region body
PF: predicated region fallthrough
CT: control target
= control target key end

     0   :  { %s67_s10 = smov 28   ;;  %s68_s11 = smov 20   ;;  %vm3_vm0 = vcmask 31744   ;;  %vm9_vm1 = vcmask 261344   ;;  %vm15_vm2 = vcmask 228544   ;;  %vm21_vm3 = vcmask 195744   ;;  %s111_s0 = inlined_call_operand.vmem [shape: f32[8,4], index: 0, kind: input, shape index: {}]   ;;  %s112_s1 = inlined_call_operand.vmem [shape: f32[32], index: 1, kind: output, shape index: {}]  }
   0x1   :  { %v53_v0 = vld [vmem:[%s111_s0 + $0x7] sm:$0x1]   ;;  %v55_v1 = vld [vmem:[%s111_s0 + $0x5] sm:$0x1]   ;;  %v54_v2 = vld [vmem:[%s111_s0 + $0x6] sm:$0x1]  }
   0x2   :  { %7 = vrot.lane.b32.xlu0 %v53_v0, %s67_s10  ;;  %19 = vrot.lane.b32.xlu1 %v55_v1, %s68_s11  ;;  %v56_v3 = vld [vmem:[%s111_s0 + $0x4] sm:$0x1]   ;;  %v2_v4 = vld [vmem:[%s111_s0] sm:$0x1]   ;;  %s69_s18 = smov 24   ;;  %s70_s19 = smov 16  }
   0x3   :  { %4 = vst.msk [vmem:[#allocation0] sm:$0x1] %vm3_vm0, %v2_v4   ;;  %v57_v5 = vld [vmem:[%s111_s0 + $0x3] sm:$0x1]   ;;  %v58_v6 = vld [vmem:[%s111_s0 + $0x2] sm:$0x1]  }
   0x4   :  { %s71_s24 = smov 12   ;;  %s72_s25 = smov 8   ;;  %v59_v7 = vld [vmem:[%s111_s0 + $0x1] sm:$0x1]   ;;  %vm27_vm4 = vcmask 162944   ;;  %vm33_vm5 = vcmask 130144  }
   0x5   :  { %s73_s0 = smov 4   ;;  %vm39_vm6 = vcmask 97344   ;;  %vm45_vm7 = vcmask 64544  }
   0x6   :  { %13 = vrot.lane.b32.xlu0 %v54_v2, %s69_s18  ;;  %25 = vrot.lane.b32.xlu1 %v56_v3, %s70_s19 }
   0xa   :  { %31 = vrot.lane.b32.xlu0 %v57_v5, %s71_s24  ;;  %37 = vrot.lane.b32.xlu1 %v58_v6, %s72_s25 }
   0xe   :  { %43 = vrot.lane.b32.xlu0 %v59_v7, %s73_s0 }
  0x74   :  { %v8_v8 = vpop.permute.xlu0 %7   ;;  %v20_v9 = vpop.permute.xlu1 %19  }
  0x75   :  { %10 = vst.msk [vmem:[#allocation0] sm:$0x1] %vm9_vm1, %v8_v8  }
  0x78   :  { %v14_v10 = vpop.permute.xlu0 %13   ;;  %v26_v11 = vpop.permute.xlu1 %25  }
  0x79   :  { %16 = vst.msk [vmem:[#allocation0] sm:$0x1] %vm15_vm2, %v14_v10  }
  0x7a   :  { %22 = vst.msk [vmem:[#allocation0] sm:$0x1] %vm21_vm3, %v20_v9  }
  0x7b   :  { %28 = vst.msk [vmem:[#allocation0] sm:$0x1] %vm27_vm4, %v26_v11  }
  0x7c   :  { %v32_v12 = vpop.permute.xlu0 %31   ;;  %v38_v13 = vpop.permute.xlu1 %37  }
  0x7d   :  { %34 = vst.msk [vmem:[#allocation0] sm:$0x1] %vm33_vm5, %v32_v12  }
  0x7e   :  { %40 = vst.msk [vmem:[#allocation0] sm:$0x1] %vm39_vm6, %v38_v13  }
  0x80   :  { %v44_v14 = vpop.permute.xlu0 %43  }
  0x81   :  { %46 = vst.msk [vmem:[#allocation0] sm:$0x1] %vm45_vm7, %v44_v14  }
  0x88   :  { %v50_v15 = vld [vmem:[#allocation0] sm:$0x1] }
  0x89   :  { %52 = vst [vmem:[%s112_s1] sm:$0x1] %v50_v15 }

// kernel: tile.13
= control target key start
LH: loop header
LB: loop body
LE: loop exit
PB: predicated region body
PF: predicated region fallthrough
CT: control target
= control target key end

     0   :  { %s22_s0 = inlined_call_operand.vmem [shape: f32[4], index: 0, kind: input, shape index: {}]   ;;  %s23_s1 = inlined_call_operand.vmem [shape: f32[8,4], index: 1, kind: output, shape index: {}]  }
   0x1   :  { %v4_v0 = vld [vmem:[%s22_s0] ss:$0 sm:$0xff] }
   0x2   :  { %5 = vst [vmem:[%s23_s1] sm:$0xff] %v4_v0 }

// kernel: rotate_conv_forward.1
= control target key start
LH: loop header
LB: loop body
LE: loop exit
PB: predicated region body
PF: predicated region fallthrough
CT: control target
= control target key end

     0   :  { %s6065_s5 = smov 8   ;;  %s10193_s0 = inlined_call_operand.vmem [shape: f32[2,18,18,8], index: 0, kind: input, shape index: {}]   ;;  %s10194_s1 = inlined_call_operand.vmem [shape: bf16[72,128], index: 1, kind: input, shape index: {}]   ;;  %s10195_s2 = inlined_call_operand.vmem [shape: f32[1,128], index: 2, kind: input, shape index: {}]   ;;  %s10196_s3 = inlined_call_operand.vmem [shape: f32[1,128], index: 3, kind: input, shape index: {}]   ;;  %s10197_s4 = inlined_call_operand.hbm [shape: f32[512,128], index: 4, kind: output, shape index: {}]  }
   0x1   :  { %v4248_v0 = vld [vmem:[%s10193_s0 + $0x4a] sm:$0xff]  ;;  %v4249_v1 = vld [vmem:[%s10193_s0 + $0x52] sm:$0xff]  ;;  %v4244_v2 = vld [vmem:[%s10193_s0 + $0x1a] sm:$0xff] }
   0x2   :  { %v6109_v3 = vpack.i.bf16 %v4249_v1, %v4248_v0  ;;  %v4245_v4 = vld [vmem:[%s10193_s0 + $0x22] sm:$0xff]  ;;  %v4251_v6 = vld [vmem:[%s10193_s0 + $0x6a] sm:$0xff]  ;;  %v4246_v8 = vld [vmem:[%s10193_s0 + $0x32] sm:$0xff] }
   0x3   :  { %v4250_v5 = vld [vmem:[%s10193_s0 + $0x62] sm:$0xff]  ;;  %v6120_v7 = vpack.i.bf16 %v4245_v4, %v4244_v2  ;;  %v4247_v9 = vld [vmem:[%s10193_s0 + $0x3a] sm:$0xff]  ;;  %v4254_v12 = vld [vmem:[%s10193_s0 + $0x92] sm:$0xff] }
   0x4   :  { %4747 = vrot.lane.b32.xlu1 %v6109_v3, %s6065_s5  ;;  %v6130_v10 = vpack.i.bf16 %v4251_v6, %v4250_v5  ;;  %v6134_v11 = vpack.i.bf16 %v4247_v9, %v4246_v8  ;;  %v4255_v13 = vld [vmem:[%s10193_s0 + $0x9a] sm:$0xff]  ;;  %v4253_v15 = vld [vmem:[%s10193_s0 + $0x82] sm:$0xff]  ;;  %v4259_v19 = vld [vmem:[%s10193_s0 + $0xca] sm:$0xff] }
   0x5   :  { %4737 = vrot.lane.b32.xlu0 %v6120_v7, %s6065_s5  ;;  %v4252_v14 = vld [vmem:[%s10193_s0 + $0x7a] sm:$0xff]  ;;  %v6150_v16 = vpack.i.bf16 %v4255_v13, %v4254_v12  ;;  %v4258_v18 = vld [vmem:[%s10193_s0 + $0xc2] sm:$0xff]  ;;  %v4256_v20 = vld [vmem:[%s10193_s0 + $0xaa] sm:$0xff] }
   0x6   :  { %v6154_v17 = vpack.i.bf16 %v4253_v15, %v4252_v14  ;;  %v4257_v21 = vld [vmem:[%s10193_s0 + $0xb2] sm:$0xff]  ;;  %v6170_v22 = vpack.i.bf16 %v4259_v19, %v4258_v18  ;;  %v6184_v25 = vld [vmem:[%s10193_s0 + $0xfa] sm:$0xff]  ;;  %v4261_v27 = vld [vmem:[%s10193_s0 + $0xe2] sm:$0xff] }
   0x7   :  { %v6174_v23 = vpack.i.bf16 %v4257_v21, %v4256_v20  ;;  %v6179_v24 = vld [vmem:[%s10193_s0 + $0xf2] sm:$0xff]  ;;  %v4260_v26 = vld [vmem:[%s10193_s0 + $0xda] sm:$0xff]  ;;  %v6205_v30 = vld [vmem:[%s10193_s0 + $0x122] sm:$0xff] }
   0x8   :  { %4752 = vrot.lane.b32.xlu1 %v6130_v10, %s6065_s5  ;;  %v6196_v28 = vpack.i.bf16 %v6184_v25, %v6179_v24  ;;  %v6200_v29 = vpack.i.bf16 %v4261_v27, %v4260_v26  ;;  %v6210_v31 = vld [vmem:[%s10193_s0 + $0x12a] sm:$0xff]  ;;  %v6220_v33 = vld [vmem:[%s10193_s0 + $0x112] sm:$0xff]  ;;  %v6242_v37 = vld [vmem:[%s10193_s0 + $0x15a] sm:$0xff] }
   0x9   :  { %4742 = vrot.lane.b32.xlu0 %v6134_v11, %s6065_s5  ;;  %v6215_v32 = vld [vmem:[%s10193_s0 + $0x10a] sm:$0xff]  ;;  %v6226_v34 = vpack.i.bf16 %v6210_v31, %v6205_v30  ;;  %v6237_v36 = vld [vmem:[%s10193_s0 + $0x152] sm:$0xff]  ;;  %v6247_v38 = vld [vmem:[%s10193_s0 + $0x13a] sm:$0xff] }
   0xa   :  { %v6232_v35 = vpack.i.bf16 %v6220_v33, %v6215_v32  ;;  %v6252_v39 = vld [vmem:[%s10193_s0 + $0x142] sm:$0xff]  ;;  %v6258_v40 = vpack.i.bf16 %v6242_v37, %v6237_v36  ;;  %v6274_v43 = vld [vmem:[%s10193_s0 + $0x18a] sm:$0xff]  ;;  %v6284_v45 = vld [vmem:[%s10193_s0 + $0x172] sm:$0xff] }
   0xb   :  { %v6264_v41 = vpack.i.bf16 %v6252_v39, %v6247_v38  ;;  %v6269_v42 = vld [vmem:[%s10193_s0 + $0x182] sm:$0xff]  ;;  %v6279_v44 = vld [vmem:[%s10193_s0 + $0x16a] sm:$0xff]  ;;  %v4277_v51 = vld [vmem:[%s10193_s0 + $0x1d2] sm:$0xff] }
   0xc   :  { %4762 = vrot.lane.b32.xlu1 %v6150_v16, %s6065_s5  ;;  %v4811_v46 = vpack.i.bf16 %v6274_v43, %v6269_v42  ;;  %v6294_v47 = vpack.i.bf16 %v6284_v45, %v6279_v44  ;;  %v6299_v48 = vld [vmem:[%s10193_s0 + $0x1e2] sm:$0xff]  ;;  %v6304_v49 = vld [vmem:[%s10193_s0 + $0x1ea] sm:$0xff]  ;;  %v6324_v54 = vld [vmem:[%s10193_s0 + $0x212] sm:$0xff] }
   0xd   :  { %4757 = vrot.lane.b32.xlu0 %v6154_v17, %s6065_s5  ;;  %10299 = vst [vmem:[#allocation5_spill] sm:$0xff] %v6304_v49  ;;  %v4276_v50 = vld [vmem:[%s10193_s0 + $0x1ca] sm:$0xff]  ;;  %v6315_v52 = vpack.i.bf16 %v6304_v49, %v6299_v48  ;;  %10300 = vst [vmem:[#allocation6_spill] sm:$0xff] %v6324_v54  ;;  %v6329_v55 = vld [vmem:[%s10193_s0 + $0x21a] sm:$0xff] }
   0xe   :  { %v6319_v53 = vpack.i.bf16 %v4277_v51, %v4276_v50  ;;  %10301 = vst [vmem:[#allocation7_spill] sm:$0xff] %v6329_v55  ;;  %v6334_v56 = vld [vmem:[%s10193_s0 + $0x1fa] sm:$0xff]  ;;  %v6339_v57 = vld [vmem:[%s10193_s0 + $0x202] sm:$0xff]  ;;  %v6350_v59 = vpack.i.bf16 %v6329_v55, %v6324_v54  ;;  %v6355_v60 = vld [vmem:[%s10193_s0 + $0x24a] sm:$0xff] }
   0xf   :  { %v6344_v58 = vld [vmem:[%s10193_s0 + $0x242] sm:$0xff]  ;;  %10303 = vst [vmem:[#allocation9_spill] sm:$0xff] %v6355_v60  ;;  %v6361_v61 = vpack.i.bf16 %v6339_v57, %v6334_v56  ;;  %v6366_v62 = vld [vmem:[%s10193_s0 + $0x22a] sm:$0xff]  ;;  %v6371_v63 = vld [vmem:[%s10193_s0 + $0x232] sm:$0xff] }
  0x10   :  { %4772 = vrot.lane.b32.xlu1 %v6170_v22, %s6065_s5  ;;  %10302 = vst [vmem:[#allocation8_spill] sm:$0xff] %v6344_v58  ;;  %10304 = vst [vmem:[#allocation10_spill] sm:$0xff] %v6366_v62  ;;  %v6377_v0 = vpack.i.bf16 %v6355_v60, %v6344_v58 }
  0x11   :  { %4767 = vrot.lane.b32.xlu0 %v6174_v23, %s6065_s5  ;;  %10305 = vst [vmem:[#allocation11_spill] sm:$0xff] %v6371_v63 }
  0x14   :  { %4782 = vrot.lane.b32.xlu1 %v6196_v28, %s6065_s5 }
  0x15   :  { %4777 = vrot.lane.b32.xlu0 %v6200_v29, %s6065_s5 }
  0x18   :  { %4792 = vrot.lane.b32.xlu1 %v6226_v34, %s6065_s5 }
  0x19   :  { %4787 = vrot.lane.b32.xlu0 %v6232_v35, %s6065_s5 }
  0x1c   :  { %4802 = vrot.lane.b32.xlu1 %v6258_v40, %s6065_s5 }
  0x1d   :  { %4797 = vrot.lane.b32.xlu0 %v6264_v41, %s6065_s5 }
  0x20   :  { %4812 = vrot.lane.b32.xlu1 %v4811_v46, %s6065_s5 }
  0x21   :  { %4807 = vrot.lane.b32.xlu0 %v6294_v47, %s6065_s5 }
  0x24   :  { %4822 = vrot.lane.b32.xlu1 %v6315_v52, %s6065_s5 }
  0x25   :  { %4817 = vrot.lane.b32.xlu0 %v6319_v53, %s6065_s5 }
  0x28   :  { %4832 = vrot.lane.b32.xlu1 %v6350_v59, %s6065_s5 }
  0x29   :  { %9 = vsyncpa [#allocation3], 0  ;;  %4827 = vrot.lane.b32.xlu0 %v6361_v61, %s6065_s5  ;;  %v6383_v1 = vpack.i.bf16 %v6371_v63, %v6366_v62  ;;  %v6388_v2 = vld [vmem:[%s10193_s0 + $0x272] sm:$0xff]  ;;  %v6393_v4 = vld [vmem:[%s10193_s0 + $0x27a] sm:$0xff]  ;;  %s6066_s22 = smov 16   ;;  %s6067_s18 = smov 24  }
  0x2a   :  { %10306 = vst [vmem:[#allocation12_spill] sm:$0xff] %v6388_v2  ;;  %10307 = vst [vmem:[#allocation13_spill] sm:$0xff] %v6393_v4  ;;  %v6398_v5 = vld [vmem:[%s10193_s0 + $0x25a] sm:$0xff]  ;;  %v6403_v6 = vld [vmem:[%s10193_s0 + $0x262] sm:$0xff]  ;;  %v6409_v8 = vpack.i.bf16 %v6393_v4, %v6388_v2  ;;  %vm2645_vm0 = vcmask 64512   ;;  %vm2710_vm1 = vcmask 130048  }
  0x2b   :  { %10308 = vst [vmem:[#allocation14_spill] sm:$0xff] %v6398_v5  ;;  %10309 = vst [vmem:[#allocation15_spill] sm:$0xff] %v6403_v6  ;;  %v6415_v9 = vpack.i.bf16 %v6403_v6, %v6398_v5  ;;  %v6420_v12 = vld [vmem:[%s10193_s0 + $0x2a2] sm:$0xff]  ;;  %v6425_v13 = vld [vmem:[%s10193_s0 + $0x2aa] sm:$0xff]  ;;  %s6068_s26 = smov 32   ;;  %s6069_s14 = smov 40  }
  0x2c   :  { %4842 = vrot.lane.b32.xlu1 %v6377_v0, %s6065_s5  ;;  %10310 = vst [vmem:[#allocation16_spill] sm:$0xff] %v6420_v12  ;;  %10311 = vst [vmem:[#allocation17_spill] sm:$0xff] %v6425_v13  ;;  %v6430_v14 = vld [vmem:[%s10193_s0 + $0x28a] sm:$0xff]  ;;  %v6435_v15 = vld [vmem:[%s10193_s0 + $0x292] sm:$0xff]  ;;  %v6441_v18 = vpack.i.bf16 %v6425_v13, %v6420_v12  ;;  %vm3330_vm2 = vcmask 1043456   ;;  %s6071_s17 = smov 56  }
  0x2d   :  { %4837 = vrot.lane.b32.xlu0 %v6383_v1, %s6065_s5  ;;  %10312 = vst [vmem:[#allocation18_spill] sm:$0xff] %v6430_v14  ;;  %10313 = vst [vmem:[#allocation19_spill] sm:$0xff] %v6435_v15  ;;  %v4856_v19 = vpack.i.bf16 %v6435_v15, %v6430_v14  ;;  %v6450_v20 = vld [vmem:[%s10193_s0 + $0x2d2] sm:$0xff]  ;;  %v6455_v21 = vld [vmem:[%s10193_s0 + $0x2da] sm:$0xff]  ;;  %s6072_s19 = smov 64   ;;  %vm2775_vm3 = vcmask 195584  }
  0x2e   :  { %10314 = vst [vmem:[#allocation20_spill] sm:$0xff] %v6450_v20  ;;  %10315 = vst [vmem:[#allocation21_spill] sm:$0xff] %v6455_v21  ;;  %v6460_v26 = vld [vmem:[%s10193_s0 + $0x2ba] sm:$0xff]  ;;  %v6465_v27 = vld [vmem:[%s10193_s0 + $0x2c2] sm:$0xff]  ;;  %v4871_v46 = vpack.i.bf16 %v6455_v21, %v6450_v20  ;;  %vm2840_vm4 = vcmask 261120   ;;  %vm2905_vm5 = vcmask 326656  }
  0x2f   :  { %10316 = vst [vmem:[#allocation22_spill] sm:$0xff] %v6460_v26  ;;  %10317 = vst [vmem:[#allocation23_spill] sm:$0xff] %v6465_v27  ;;  %v4866_v50 = vpack.i.bf16 %v6465_v27, %v6460_v26  ;;  %v6477_v51 = vld [vmem:[%s10193_s0 + $0x302] sm:$0xff]  ;;  %v6482_v13 = vld [vmem:[%s10193_s0 + $0x30a] sm:$0xff]  ;;  %vm2970_vm6 = vcmask 392192   ;;  %vm3035_vm7 = vcmask 457728  }
  0x30   :  { %4852 = vrot.lane.b32.xlu1 %v6409_v8, %s6065_s5  ;;  %10318 = vst [vmem:[#allocation24_spill] sm:$0xff] %v6477_v51  ;;  %10319 = vst [vmem:[#allocation25_spill] sm:$0xff] %v6482_v13  ;;  %v6487_v12 = vld [vmem:[%s10193_s0 + $0x2ea] sm:$0xff]  ;;  %v6492_v21 = vld [vmem:[%s10193_s0 + $0x2f2] sm:$0xff]  ;;  %v4881_v20 = vpack.i.bf16 %v6482_v13, %v6477_v51  ;;  %vm3100_vm8 = vcmask 523264   ;;  %vm3233_vm9 = vcmask 588800  }
  0x31   :  { %4847 = vrot.lane.b32.xlu0 %v6415_v9, %s6065_s5  ;;  %10320 = vst [vmem:[#allocation26_spill] sm:$0xff] %v6487_v12  ;;  %10321 = vst [vmem:[#allocation27_spill] sm:$0xff] %v6492_v21  ;;  %v4876_v27 = vpack.i.bf16 %v6492_v21, %v6487_v12  ;;  %v4306_v26 = vld [vmem:[%s10193_s0 + $0x332] sm:$0xff]  ;;  %v4307_v4 = vld [vmem:[%s10193_s0 + $0x33a] sm:$0xff] }
  0x32   :  { %v6509_v2 = vld [vmem:[%s10193_s0 + $0x31a] sm:$0xff]  ;;  %v6514_v13 = vld [vmem:[%s10193_s0 + $0x322] sm:$0xff]  ;;  %v4891_v51 = vpack.i.bf16 %v4307_v4, %v4306_v26  ;;  %v150_v15 = vld [vmem:[%s10193_s0 + $0xa] sm:$0xff] }
  0x33   :  { %10322 = vst [vmem:[#allocation28_spill] sm:$0xff] %v6509_v2  ;;  %10323 = vst [vmem:[#allocation29_spill] sm:$0xff] %v6514_v13  ;;  %v4886_v21 = vpack.i.bf16 %v6514_v13, %v6509_v2  ;;  %v149_v12 = vld [vmem:[%s10193_s0 + $0x2] sm:$0xff]  ;;  %v4322_v26 = vld [vmem:[%s10193_s0 + $0xd9] sm:$0xff] }
  0x34   :  { %4862 = vrot.lane.b32.xlu1 %v6441_v18, %s6065_s5  ;;  %v4896_v14 = vpack.i.bf16 %v150_v15, %v149_v12  ;;  %v4319_v12 = vld [vmem:[%s10193_s0 + $0xb1] sm:$0xff]  ;;  %v6970_v58 = vld [vmem:[%s10193_s0 + $0x8] sm:$0xff]  ;;  %v6994_v54 = vld [vmem:[%s10193_s0 + $0x39] sm:$0xff] }
  0x35   :  { %4857 = vrot.lane.b32.xlu0 %v4856_v19, %s6065_s5  ;;  %v4316_v15 = vld [vmem:[%s10193_s0 + $0x91] sm:$0xff]  ;;  %v6975_v6 = vld [vmem:[%s10193_s0 + $0x49] sm:$0xff] }
  0x36   :  { %v4347_v13 = vld [vmem:[%s10193_s0 + $0x231] sm:$0xff] }
  0x37   :  { %v4344_v60 = vld [vmem:[%s10193_s0 + $0x211] sm:$0xff] }
  0x38   :  { %4872 = vrot.lane.b32.xlu1 %v4871_v46, %s6065_s5  ;;  %v6989_v55 = vld [vmem:[%s10193_s0 + $0x31] sm:$0xff] }
  0x39   :  { %4867 = vrot.lane.b32.xlu0 %v4866_v50, %s6065_s5  ;;  %v4442_v63 = vld [vmem:[%s10193_s0 + $0x78] sm:$0xff] }
  0x3c   :  { %4882 = vrot.lane.b32.xlu1 %v4881_v20, %s6065_s5 }
  0x3d   :  { %4877 = vrot.lane.b32.xlu0 %v4876_v27, %s6065_s5 }
  0x40   :  { %4892 = vrot.lane.b32.xlu1 %v4891_v51, %s6065_s5  ;;  %v4321_v51 = vld [vmem:[%s10193_s0 + $0xc9] sm:$0xff] }
  0x41   :  { %4887 = vrot.lane.b32.xlu0 %v4886_v21, %s6065_s5 }
  0x44   :  { %4902 = vrot.lane.b32.xlu1 %v6120_v7, %s6066_s22  ;;  %v182_v7 = vld [vmem:[%s10193_s0 + $0x1ba] sm:$0xff] }
  0x45   :  { %4897 = vrot.lane.b32.xlu0 %v4896_v14, %s6066_s22 }
  0x48   :  { %4912 = vrot.lane.b32.xlu1 %v6109_v3, %s6066_s22  ;;  %v181_v3 = vld [vmem:[%s10193_s0 + $0x1b2] sm:$0xff] }
  0x49   :  { %4907 = vrot.lane.b32.xlu0 %v6134_v11, %s6066_s22 }
  0x4c   :  { %4922 = vrot.lane.b32.xlu1 %v6154_v17, %s6066_s22 }
  0x4d   :  { %4917 = vrot.lane.b32.xlu0 %v6130_v10, %s6066_s22  ;;  %v4976_v10 = vpack.i.bf16 %v182_v7, %v181_v3 }
  0x50   :  { %4932 = vrot.lane.b32.xlu1 %v6174_v23, %s6066_s22  ;;  %v4310_v23 = vld [vmem:[%s10193_s0 + $0x49] sm:$0xff] }
  0x51   :  { %4927 = vrot.lane.b32.xlu0 %v6150_v16, %s6066_s22 }
  0x54   :  { %4942 = vrot.lane.b32.xlu1 %v6200_v29, %s6066_s22 }
  0x55   :  { %4937 = vrot.lane.b32.xlu0 %v6170_v22, %s6066_s22 }
  0x58   :  { %4952 = vrot.lane.b32.xlu1 %v6232_v35, %s6066_s22  ;;  %v4309_v35 = vld [vmem:[%s10193_s0 + $0x39] sm:$0xff] }
  0x59   :  { %4947 = vrot.lane.b32.xlu0 %v6196_v28, %s6066_s22  ;;  %v4311_v28 = vld [vmem:[%s10193_s0 + $0x51] sm:$0xff] }
  0x5c   :  { %4962 = vrot.lane.b32.xlu1 %v6264_v41, %s6066_s22  ;;  %v6613_v41 = vpack.i.bf16 %v4311_v28, %v4310_v23  ;;  %v4326_v23 = vld [vmem:[%s10193_s0 + $0x109] sm:$0xff]  ;;  %v4327_v28 = vld [vmem:[%s10193_s0 + $0x111] sm:$0xff] }
  0x5d   :  { %4957 = vrot.lane.b32.xlu0 %v6226_v34, %s6066_s22  ;;  %v4308_v34 = vld [vmem:[%s10193_s0 + $0x31] sm:$0xff] }
  0x60   :  { %4972 = vrot.lane.b32.xlu1 %v6294_v47, %s6066_s22  ;;  %v6616_v47 = vpack.i.bf16 %v4309_v35, %v4308_v34  ;;  %v4324_v35 = vld [vmem:[%s10193_s0 + $0xf1] sm:$0xff] }
  0x61   :  { %4967 = vrot.lane.b32.xlu0 %v6258_v40, %s6066_s22 }
  0x64   :  { %4982 = vrot.lane.b32.xlu1 %v6319_v53, %s6066_s22  ;;  %v4315_v53 = vld [vmem:[%s10193_s0 + $0x81] sm:$0xff] }
  0x65   :  { %4977 = vrot.lane.b32.xlu0 %v4976_v10, %s6066_s22 }
  0x68   :  { %4992 = vrot.lane.b32.xlu1 %v6361_v61, %s6066_s22  ;;  %v4312_v61 = vld [vmem:[%s10193_s0 + $0x61] sm:$0xff] }
  0x69   :  { %4987 = vrot.lane.b32.xlu0 %v6315_v52, %s6066_s22  ;;  %v4314_v52 = vld [vmem:[%s10193_s0 + $0x79] sm:$0xff] }
  0x6a   :  { %v6636_v4 = vpack.i.bf16 %v4315_v53, %v4314_v52  ;;  %v4325_v52 = vld [vmem:[%s10193_s0 + $0xf9] sm:$0xff] }
  0x6c   :  { %5002 = vrot.lane.b32.xlu1 %v6383_v1, %s6066_s22 }
  0x6d   :  { %4997 = vrot.lane.b32.xlu0 %v6350_v59, %s6066_s22 }
  0x70   :  { %5012 = vrot.lane.b32.xlu1 %v6415_v9, %s6066_s22  ;;  %v4318_v9 = vld [vmem:[%s10193_s0 + $0xa9] sm:$0xff] }
  0x71   :  { %5007 = vrot.lane.b32.xlu0 %v6377_v0, %s6066_s22  ;;  %v4313_v0 = vld [vmem:[%s10193_s0 + $0x69] sm:$0xff] }
  0x74   :  { %5022 = vrot.lane.b32.xlu1 %v4856_v19, %s6066_s22 }
  0x75   :  { %5017 = vrot.lane.b32.xlu0 %v6409_v8, %s6066_s22  ;;  %v6640_v8 = vpack.i.bf16 %v4313_v0, %v4312_v61  ;;  %v6708_v61 = vpack.i.bf16 %v4327_v28, %v4326_v23  ;;  %v6712_v0 = vpack.i.bf16 %v4325_v52, %v4324_v35  ;;  %v4334_v23 = vld [vmem:[%s10193_s0 + $0x169] sm:$0xff]  ;;  %v4335_v28 = vld [vmem:[%s10193_s0 + $0x171] sm:$0xff] }
  0x76   :  { %v6583_v11 = vpop.permute.xlu1 %4747  ;;  %v4332_v52 = vld [vmem:[%s10193_s0 + $0x151] sm:$0xff] }
  0x77   :  { %10324 = vst [vmem:[#allocation30_spill] sm:$0xff] %v6583_v11  ;;  %v6585_v16 = vpop.permute.xlu0 %4737  ;;  %10332 = vst [vmem:[#allocation38_spill] sm:$0xff] %v6708_v61  ;;  %v4340_v11 = vld [vmem:[%s10193_s0 + $0x1e1] sm:$0xff] }
  0x78   :  { %10325 = vst [vmem:[#allocation31_spill] sm:$0xff] %v6585_v16  ;;  %5032 = vrot.lane.b32.xlu1 %v4866_v50, %s6066_s22  ;;  %v4320_v50 = vld [vmem:[%s10193_s0 + $0xc1] sm:$0xff] }
  0x79   :  { %5027 = vrot.lane.b32.xlu0 %v6441_v18, %s6066_s22  ;;  %v4317_v18 = vld [vmem:[%s10193_s0 + $0x99] sm:$0xff]  ;;  %v6688_v10 = vpack.i.bf16 %v4321_v51, %v4320_v50 }
  0x7a   :  { %v6590_v17 = vpop.permute.xlu1 %4752 }
  0x7b   :  { %10326 = vst [vmem:[#allocation32_spill] sm:$0xff] %v6590_v17  ;;  %v6592_v22 = vpop.permute.xlu0 %4742  ;;  %v4343_v17 = vld [vmem:[%s10193_s0 + $0x201] sm:$0xff] }
  0x7c   :  { %10327 = vst [vmem:[#allocation33_spill] sm:$0xff] %v6592_v22  ;;  %5042 = vrot.lane.b32.xlu1 %v4876_v27, %s6066_s22  ;;  %v4323_v27 = vld [vmem:[%s10193_s0 + $0xe1] sm:$0xff]  ;;  %v4342_v22 = vld [vmem:[%s10193_s0 + $0x1f9] sm:$0xff] }
  0x7d   :  { %5037 = vrot.lane.b32.xlu0 %v4871_v46, %s6066_s22  ;;  %v6684_v7 = vpack.i.bf16 %v4323_v27, %v4322_v26  ;;  %v4329_v26 = vld [vmem:[%s10193_s0 + $0x129] sm:$0xff] }
  0x7e   :  { %v6602_v29 = vpop.permute.xlu1 %4762 }
  0x7f   :  { %10328 = vst [vmem:[#allocation34_spill] sm:$0xff] %v6602_v29  ;;  %v6610_v40 = vpop.permute.xlu0 %4757  ;;  %v4336_v29 = vld [vmem:[%s10193_s0 + $0x181] sm:$0xff] }
  0x80   :  { %10329 = vst [vmem:[#allocation35_spill] sm:$0xff] %v6610_v40  ;;  %5052 = vrot.lane.b32.xlu1 %v4886_v21, %s6066_s22  ;;  %v6664_v21 = vpack.i.bf16 %v4317_v18, %v4316_v15  ;;  %v4328_v18 = vld [vmem:[%s10193_s0 + $0x121] sm:$0xff] }
  0x81   :  { %5047 = vrot.lane.b32.xlu0 %v4881_v20, %s6066_s22  ;;  %v6660_v20 = vpack.i.bf16 %v4319_v12, %v4318_v9  ;;  %v4330_v9 = vld [vmem:[%s10193_s0 + $0x139] sm:$0xff]  ;;  %v4331_v12 = vld [vmem:[%s10193_s0 + $0x141] sm:$0xff]  ;;  %v6736_v51 = vpack.i.bf16 %v4329_v26, %v4328_v18  ;;  %v5121_v18 = vpack.i.bf16 %v4335_v28, %v4334_v23  ;;  %v4337_v23 = vld [vmem:[%s10193_s0 + $0x189] sm:$0xff] }
  0x82   :  { %v6624_v59 = vpop.permute.xlu1 %4772  ;;  %v6732_v50 = vpack.i.bf16 %v4331_v12, %v4330_v9  ;;  %v4333_v9 = vld [vmem:[%s10193_s0 + $0x159] sm:$0xff] }
  0x83   :  { %10330 = vst [vmem:[#allocation36_spill] sm:$0xff] %v6624_v59  ;;  %v6632_v1 = vpop.permute.xlu0 %4767  ;;  %10334 = vst [vmem:[#allocation40_spill] sm:$0xff] %v6736_v51  ;;  %v6758_v26 = vpack.i.bf16 %v4333_v9, %v4332_v52  ;;  %v4339_v59 = vld [vmem:[%s10193_s0 + $0x1a1] sm:$0xff]  ;;  %v5126_v9 = vpack.i.bf16 %v4337_v23, %v4336_v29  ;;  %v5141_v29 = vpack.i.bf16 %v4343_v17, %v4342_v22  ;;  %v4346_v23 = vld [vmem:[%s10193_s0 + $0x229] sm:$0xff] }
  0x84   :  { %10331 = vst [vmem:[#allocation37_spill] sm:$0xff] %v6632_v1  ;;  %5062 = vrot.lane.b32.xlu1 %v6613_v41, %s6067_s18  ;;  %10333 = vst [vmem:[#allocation39_spill] sm:$0xff] %v6732_v50  ;;  %v4338_v1 = vld [vmem:[%s10193_s0 + $0x199] sm:$0xff] }
  0x85   :  { %5057 = vrot.lane.b32.xlu0 %v6616_v47, %s6067_s18  ;;  %10335 = vst [vmem:[#allocation41_spill] sm:$0xff] %v6758_v26  ;;  %v5131_v52 = vpack.i.bf16 %v4339_v59, %v4338_v1  ;;  %v4341_v59 = vld [vmem:[%s10193_s0 + $0x1e9] sm:$0xff]  ;;  %v4345_v17 = vld [vmem:[%s10193_s0 + $0x219] sm:$0xff] }
  0x86   :  { %v6648_v14 = vpop.permute.xlu1 %4782 }
  0x87   :  { %v6656_v19 = vpop.permute.xlu0 %4777  ;;  %v4784_v5 = vunpack.i.l.bf16 %v6648_v14  ;;  %v4785_v62 = vunpack.i.h.bf16 %v6648_v14 }
  0x88   :  { %5072 = vrot.lane.b32.xlu1 %v6636_v4, %s6067_s18 }
  0x89   :  { %5067 = vrot.lane.b32.xlu0 %v6640_v8, %s6067_s18 }
  0x8a   :  { %v6672_v46 = vpop.permute.xlu1 %4792 }
  0x8b   :  { %v6680_v3 = vpop.permute.xlu0 %4787 }
  0x8c   :  { %5082 = vrot.lane.b32.xlu1 %v6660_v20, %s6067_s18 }
  0x8d   :  { %5077 = vrot.lane.b32.xlu0 %v6664_v21, %s6067_s18 }
  0x8e   :  { %v6696_v34 = vpop.permute.xlu1 %4802 }
  0x8f   :  { %v6704_v53 = vpop.permute.xlu0 %4797 }
  0x90   :  { %5092 = vrot.lane.b32.xlu1 %v6684_v7, %s6067_s18 }
  0x91   :  { %5087 = vrot.lane.b32.xlu0 %v6688_v10, %s6067_s18 }
  0x92   :  { %v6720_v15 = vpop.permute.xlu1 %4812 }
  0x93   :  { %v6728_v27 = vpop.permute.xlu0 %4807 }
  0x94   :  { %5102 = vrot.lane.b32.xlu1 %v6708_v61, %s6067_s18  ;;  %v4443_v61 = vld [vmem:[%s10193_s0 + $0x80] sm:$0xff] }
  0x95   :  { %5097 = vrot.lane.b32.xlu0 %v6712_v0, %s6067_s18 }
  0x96   :  { %v6744_v35 = vpop.permute.xlu1 %4822 }
  0x97   :  { %v6752_v12 = vpop.permute.xlu0 %4817 }
  0x98   :  { %5112 = vrot.lane.b32.xlu1 %v6732_v50, %s6067_s18  ;;  %v4501_v50 = vld [vmem:[%s10193_s0 + $0x20] sm:$0xff] }
  0x99   :  { %5107 = vrot.lane.b32.xlu0 %v6736_v51, %s6067_s18  ;;  %v4441_v51 = vld [vmem:[%s10193_s0 + $0x68] sm:$0xff] }
  0x9a   :  { %v6766_v40 = vpop.permute.xlu1 %4832 }
  0x9b   :  { %10336 = vst [vmem:[#allocation42_spill] sm:$0xff] %v6766_v40  ;;  %v6774_v28 = vpop.permute.xlu0 %4827 }
  0x9c   :  { %10337 = vst [vmem:[#allocation43_spill] sm:$0xff] %v6774_v28  ;;  %5122 = vrot.lane.b32.xlu1 %v5121_v18, %s6067_s18  ;;  %v5136_v18 = vpack.i.bf16 %v4341_v59, %v4340_v11  ;;  %v5151_v11 = vpack.i.bf16 %v4347_v13, %v4346_v23  ;;  %v4351_v59 = vld [vmem:[%s10193_s0 + $0x261] sm:$0xff]  ;;  %v4349_v13 = vld [vmem:[%s10193_s0 + $0x249] sm:$0xff] }
  0x9d   :  { %5117 = vrot.lane.b32.xlu0 %v6758_v26, %s6067_s18  ;;  %v4354_v23 = vld [vmem:[%s10193_s0 + $0x289] sm:$0xff]  ;;  %v6980_v26 = vld [vmem:[%s10193_s0 + $0x51] sm:$0xff] }
  0x9e   :  { %v6785_v16 = vpop.permute.xlu1 %4842 }
  0x9f   :  { %10338 = vst [vmem:[#allocation44_spill] sm:$0xff] %v6785_v16  ;;  %v6793_v1 = vpop.permute.xlu0 %4837 }
  0xa0   :  { %10339 = vst [vmem:[#allocation45_spill] sm:$0xff] %v6793_v1  ;;  %5132 = vrot.lane.b32.xlu1 %v5131_v52, %s6067_s18  ;;  %v5146_v52 = vpack.i.bf16 %v4345_v17, %v4344_v60  ;;  %v4355_v17 = vld [vmem:[%s10193_s0 + $0x291] sm:$0xff]  ;;  %v4440_v1 = vld [vmem:[%s10193_s0 + $0x60] sm:$0xff] }
  0xa1   :  { %5127 = vrot.lane.b32.xlu0 %v5126_v9, %s6067_s18  ;;  %v4350_v9 = vld [vmem:[%s10193_s0 + $0x259] sm:$0xff] }
  0xa2   :  { %v6803_v2 = vpop.permute.xlu1 %4852  ;;  %v5161_v60 = vpack.i.bf16 %v4351_v59, %v4350_v9  ;;  %v4358_v59 = vld [vmem:[%s10193_s0 + $0x2b9] sm:$0xff] }
  0xa3   :  { %10340 = vst [vmem:[#allocation46_spill] sm:$0xff] %v6803_v2  ;;  %v6811_v22 = vpop.permute.xlu0 %4847 }
  0xa4   :  { %10341 = vst [vmem:[#allocation47_spill] sm:$0xff] %v6811_v22  ;;  %5142 = vrot.lane.b32.xlu1 %v5141_v29, %s6067_s18  ;;  %v4348_v22 = vld [vmem:[%s10193_s0 + $0x241] sm:$0xff] }
  0xa5   :  { %5137 = vrot.lane.b32.xlu0 %v5136_v18, %s6067_s18  ;;  %v5156_v18 = vpack.i.bf16 %v4349_v13, %v4348_v22  ;;  %v5171_v22 = vpack.i.bf16 %v4355_v17, %v4354_v23  ;;  %v4359_v13 = vld [vmem:[%s10193_s0 + $0x2c1] sm:$0xff]  ;;  %v4362_v17 = vld [vmem:[%s10193_s0 + $0x2e9] sm:$0xff] }
  0xa6   :  { %v6821_v2 = vpop.permute.xlu1 %4862 }
  0xa7   :  { %10342 = vst [vmem:[#allocation48_spill] sm:$0xff] %v6821_v2  ;;  %v6829_v29 = vpop.permute.xlu0 %4857 }
  0xa8   :  { %10343 = vst [vmem:[#allocation49_spill] sm:$0xff] %v6829_v29  ;;  %5152 = vrot.lane.b32.xlu1 %v5151_v11, %s6067_s18  ;;  %v4352_v29 = vld [vmem:[%s10193_s0 + $0x271] sm:$0xff]  ;;  %v4353_v11 = vld [vmem:[%s10193_s0 + $0x279] sm:$0xff] }
  0xa9   :  { %5147 = vrot.lane.b32.xlu0 %v5146_v52, %s6067_s18  ;;  %v5166_v9 = vpack.i.bf16 %v4353_v11, %v4352_v29  ;;  %v5181_v29 = vpack.i.bf16 %v4359_v13, %v4358_v59  ;;  %v4363_v11 = vld [vmem:[%s10193_s0 + $0x2f1] sm:$0xff]  ;;  %v4366_v13 = vld [vmem:[%s10193_s0 + $0x319] sm:$0xff] }
  0xaa   :  { %v6839_v2 = vpop.permute.xlu1 %4872 }
  0xab   :  { %10344 = vst [vmem:[#allocation50_spill] sm:$0xff] %v6839_v2  ;;  %v6847_v52 = vpop.permute.xlu0 %4867 }
  0xac   :  { %10345 = vst [vmem:[#allocation51_spill] sm:$0xff] %v6847_v52  ;;  %5162 = vrot.lane.b32.xlu1 %v5161_v60, %s6067_s18  ;;  %v4356_v52 = vld [vmem:[%s10193_s0 + $0x2a1] sm:$0xff]  ;;  %v4357_v60 = vld [vmem:[%s10193_s0 + $0x2a9] sm:$0xff] }
  0xad   :  { %5157 = vrot.lane.b32.xlu0 %v5156_v18, %s6067_s18  ;;  %v5176_v23 = vpack.i.bf16 %v4357_v60, %v4356_v52  ;;  %v5191_v52 = vpack.i.bf16 %v4363_v11, %v4362_v17  ;;  %v4367_v60 = vld [vmem:[%s10193_s0 + $0x321] sm:$0xff]  ;;  %v4370_v11 = vld [vmem:[%s10193_s0 + $0x349] sm:$0xff] }
  0xae   :  { %v6857_v2 = vpop.permute.xlu1 %4882 }
  0xaf   :  { %10346 = vst [vmem:[#allocation52_spill] sm:$0xff] %v6857_v2  ;;  %v6865_v18 = vpop.permute.xlu0 %4877 }
  0xb0   :  { %10347 = vst [vmem:[#allocation53_spill] sm:$0xff] %v6865_v18  ;;  %5172 = vrot.lane.b32.xlu1 %v5171_v22, %s6067_s18  ;;  %v4360_v18 = vld [vmem:[%s10193_s0 + $0x2d1] sm:$0xff]  ;;  %v4361_v22 = vld [vmem:[%s10193_s0 + $0x2d9] sm:$0xff] }
  0xb1   :  { %5167 = vrot.lane.b32.xlu0 %v5166_v9, %s6067_s18  ;;  %v5186_v59 = vpack.i.bf16 %v4361_v22, %v4360_v18  ;;  %v5201_v18 = vpack.i.bf16 %v4367_v60, %v4366_v13  ;;  %v4371_v22 = vld [vmem:[%s10193_s0 + $0x351] sm:$0xff]  ;;  %v4372_v60 = vld [vmem:[%s10193_s0 + $0x19] sm:$0xff] }
  0xb2   :  { %v6875_v2 = vpop.permute.xlu1 %4892 }
  0xb3   :  { %10348 = vst [vmem:[#allocation54_spill] sm:$0xff] %v6875_v2  ;;  %v6883_v9 = vpop.permute.xlu0 %4887 }
  0xb4   :  { %10349 = vst [vmem:[#allocation55_spill] sm:$0xff] %v6883_v9  ;;  %5182 = vrot.lane.b32.xlu1 %v5181_v29, %s6067_s18  ;;  %v4364_v9 = vld [vmem:[%s10193_s0 + $0x301] sm:$0xff]  ;;  %v4365_v29 = vld [vmem:[%s10193_s0 + $0x309] sm:$0xff] }
  0xb5   :  { %5177 = vrot.lane.b32.xlu0 %v5176_v23, %s6067_s18  ;;  %v5196_v17 = vpack.i.bf16 %v4365_v29, %v4364_v9  ;;  %v5211_v9 = vpack.i.bf16 %v4371_v22, %v4370_v11  ;;  %v4373_v29 = vld [vmem:[%s10193_s0 + $0x21] sm:$0xff]  ;;  %v4436_v22 = vld [vmem:[%s10193_s0 + $0x30] sm:$0xff] }
  0xb6   :  { %v6893_v2 = vpop.permute.xlu1 %4902 }
  0xb7   :  { %10350 = vst [vmem:[#allocation56_spill] sm:$0xff] %v6893_v2  ;;  %v6901_v23 = vpop.permute.xlu0 %4897 }
  0xb8   :  { %10351 = vst [vmem:[#allocation57_spill] sm:$0xff] %v6901_v23  ;;  %5192 = vrot.lane.b32.xlu1 %v5191_v52, %s6067_s18  ;;  %v4368_v23 = vld [vmem:[%s10193_s0 + $0x331] sm:$0xff]  ;;  %v4369_v52 = vld [vmem:[%s10193_s0 + $0x339] sm:$0xff] }
  0xb9   :  { %5187 = vrot.lane.b32.xlu0 %v5186_v59, %s6067_s18  ;;  %v5206_v13 = vpack.i.bf16 %v4369_v52, %v4368_v23  ;;  %v4438_v23 = vld [vmem:[%s10193_s0 + $0x48] sm:$0xff]  ;;  %v4437_v52 = vld [vmem:[%s10193_s0 + $0x38] sm:$0xff] }
  0xba   :  { %v6911_v2 = vpop.permute.xlu1 %4912  ;;  %v7021_v16 = vpack.i.bf16 %v4437_v52, %v4436_v22  ;;  %v4795_v52 = vunpack.i.h.bf16 %v6672_v46 }
  0xbb   :  { %10352 = vst [vmem:[#allocation58_spill] sm:$0xff] %v6911_v2  ;;  %v6919_v59 = vpop.permute.xlu0 %4907 }
  0xbc   :  { %10353 = vst [vmem:[#allocation59_spill] sm:$0xff] %v6919_v59  ;;  %5202 = vrot.lane.b32.xlu1 %v5201_v18, %s6067_s18  ;;  %v6934_v59 = vld [vmem:[%s10193_s0 + $0x1] sm:$0xff]  ;;  %v6939_v18 = vld [vmem:[%s10193_s0 + $0x9] sm:$0xff] }
  0xbd   :  { %5197 = vrot.lane.b32.xlu0 %v5196_v17, %s6067_s18  ;;  %v4439_v17 = vld [vmem:[%s10193_s0 + $0x50] sm:$0xff] }
  0xbe   :  { %v6929_v2 = vpop.permute.xlu1 %4922 }
  0xbf   :  { %10354 = vst [vmem:[#allocation60_spill] sm:$0xff] %v6929_v2  ;;  %v6947_v11 = vpop.permute.xlu0 %4917  ;;  %v4500_v2 = vld [vmem:[%s10193_s0 + $0x18] sm:$0xff] }
  0xc0   :  { %10355 = vst [vmem:[#allocation61_spill] sm:$0xff] %v6947_v11  ;;  %v6964_v11 = vld [vmem:[%s10193_s0] sm:$0xff]  ;;  %5212 = vrot.lane.b32.xlu1 %v5211_v9, %s6067_s18  ;;  %v6984_v9 = vpack.i.bf16 %v4373_v29, %v4372_v60  ;;  %v4779_v60 = vunpack.i.l.bf16 %v6656_v19  ;;  %v7023_v28 = vpack.i.bf16 %v4501_v50, %v4500_v2  ;;  %v2665_v2 = vsel %vm2645_vm0, %v6220_v33, %v4785_v62 }
  0xc1   :  { %5207 = vrot.lane.b32.xlu0 %v5206_v13, %s6067_s18  ;;  %v4780_v13 = vunpack.i.h.bf16 %v6656_v19  ;;  %v5286_v19 = vpack.i.bf16 %v6939_v18, %v6934_v59  ;;  %v4804_v33 = vunpack.i.l.bf16 %v6696_v34 }
  0xc2   :  { %v7002_v29 = vpop.permute.xlu1 %4932  ;;  %v2662_v50 = vsel %vm2645_vm0, %v6179_v24, %v4779_v60  ;;  %v4805_v24 = vunpack.i.h.bf16 %v6696_v34  ;;  %v4800_v60 = vunpack.i.h.bf16 %v6704_v53 }
  0xc3   :  { %10356 = vst [vmem:[#allocation62_spill] sm:$0xff] %v7002_v29  ;;  %v7013_v14 = vpop.permute.xlu0 %4927  ;;  %v7017_v29 = vpack.i.bf16 %v4439_v17, %v4438_v23  ;;  %v7037_v17 = vpack.i.bf16 %v4441_v51, %v4440_v1  ;;  %v2663_v22 = vsel %vm2645_vm0, %v6184_v25, %v4780_v13  ;;  %v4789_v23 = vunpack.i.l.bf16 %v6680_v3 }
  0xc4   :  { %10357 = vst [vmem:[#allocation63_spill] sm:$0xff] %v7013_v14  ;;  %5222 = vrot.lane.b32.xlu1 %v6616_v47, %s6068_s26  ;;  %v2664_v14 = vsel %vm2645_vm0, %v6215_v32, %v4784_v5  ;;  %v7035_v47 = vpack.i.bf16 %v4443_v61, %v4442_v63  ;;  %v4794_v32 = vunpack.i.l.bf16 %v6672_v46  ;;  %v4790_v1 = vunpack.i.h.bf16 %v6680_v3 }
  0xc5   :  { %5217 = vrot.lane.b32.xlu0 %v6984_v9, %s6068_s26  ;;  %v4799_v25 = vunpack.i.l.bf16 %v6704_v53 }
  0xc6   :  { %v4943_v5 = vpop.permute.xlu1 %4942  ;;  %v2668_v3 = vsel %vm2645_vm0, %v6247_v38, %v4794_v32  ;;  %v2667_v38 = vsel %vm2645_vm0, %v6210_v31, %v4790_v1  ;;  %v2671_v31 = vsel %vm2645_vm0, %v6242_v37, %v4800_v60  ;;  %v4815_v32 = vunpack.i.h.bf16 %v6720_v15 }
  0xc7   :  { %v4945_v63 = vunpack.i.h.bf16 %v4943_v5  ;;  %v4944_v61 = vunpack.i.l.bf16 %v4943_v5  ;;  %v4938_v51 = vpop.permute.xlu0 %4937  ;;  %v4825_v60 = vunpack.i.h.bf16 %v6744_v35 }
  0xc8   :  { %v4940_v62 = vunpack.i.h.bf16 %v4938_v51  ;;  %v4939_v49 = vunpack.i.l.bf16 %v4938_v51  ;;  %5232 = vrot.lane.b32.xlu1 %v6640_v8, %s6068_s26 }
  0xc9   :  { %v7055_v46 = vsel %vm2710_vm1, %v2664_v14, %v4944_v61  ;;  %v7058_v13 = vsel %vm2710_vm1, %v2665_v2, %v4945_v63  ;;  %5227 = vrot.lane.b32.xlu0 %v6613_v41, %s6068_s26  ;;  %v2669_v14 = vsel %vm2645_vm0, %v6252_v39, %v4795_v52  ;;  %v2666_v2 = vsel %vm2645_vm0, %v6205_v30, %v4789_v23  ;;  %v4210_v52 = vld [vmem:[%s10193_s0 + $0x19a] sm:$0xff] }
  0xca   :  { %v7066_v8 = vsel %vm2710_vm1, %v2662_v50, %v4939_v49  ;;  %v7069_v34 = vsel %vm2710_vm1, %v2663_v22, %v4940_v62  ;;  %v4953_v5 = vpop.permute.xlu1 %4952  ;;  %v2672_v49 = vsel %vm2645_vm0, %v6279_v44, %v4804_v33  ;;  %v2673_v39 = vsel %vm2645_vm0, %v6284_v45, %v4805_v24  ;;  %v4211_v33 = vld [vmem:[%s10193_s0 + $0x1a2] sm:$0xff] }
  0xcb   :  { %v4955_v63 = vunpack.i.h.bf16 %v4953_v5  ;;  %v4954_v41 = vunpack.i.l.bf16 %v4953_v5  ;;  %v4948_v61 = vpop.permute.xlu0 %4947  ;;  %v2670_v30 = vsel %vm2645_vm0, %v6237_v36, %v4799_v25  ;;  %v4814_v44 = vunpack.i.l.bf16 %v6720_v15  ;;  %v6016_v15 = vld [vmem:[%s10194_s1] sm:$0xff]  }
  0xcc   :  { %v4950_v53 = vunpack.i.h.bf16 %v4948_v61  ;;  %v4949_v50 = vunpack.i.l.bf16 %v4948_v61  ;;  %5242 = vrot.lane.b32.xlu1 %v6664_v21, %s6068_s26  ;;  %v4810_v62 = vunpack.i.h.bf16 %v6728_v27  ;;  %v4824_v24 = vunpack.i.l.bf16 %v6744_v35  ;;  %4640 = vmatprep.subr.bf16.mxu0 %v6016_v15 }
  0xcd   :  { %v7086_v23 = vsel %vm2710_vm1, %v2668_v3, %v4954_v41  ;;  %v7089_v22 = vsel %vm2710_vm1, %v2669_v14, %v4955_v63  ;;  %5237 = vrot.lane.b32.xlu0 %v6636_v4, %s6068_s26  ;;  %v4809_v4 = vunpack.i.l.bf16 %v6728_v27  ;;  %v4819_v5 = vunpack.i.l.bf16 %v6752_v12  ;;  %4714 = vmatprep.subr.bf16.mxu1 %v6016_v15 }
  0xce   :  { %v7097_v21 = vsel %vm2710_vm1, %v2666_v2, %v4949_v50  ;;  %v7100_v45 = vsel %vm2710_vm1, %v2667_v38, %v4950_v53  ;;  %v4963_v36 = vpop.permute.xlu1 %4962  ;;  %v2676_v2 = vsel %vm2645_vm0, %v4210_v52, %v4814_v44  ;;  %v2677_v61 = vsel %vm2645_vm0, %v4211_v33, %v4815_v32  ;;  %4641 = vmatpush3.bf16.msra.mxu0 %v6016_v15 }
  0xcf   :  { %v4965_v51 = vunpack.i.h.bf16 %v4963_v36  ;;  %v4964_v1 = vunpack.i.l.bf16 %v4963_v36  ;;  %v4958_v37 = vpop.permute.xlu0 %4957  ;;  %v2674_v38 = vsel %vm2645_vm0, %v6269_v42, %v4809_v4  ;;  %4719 = vmatpush3.bf16.msra.mxu1 %v6016_v15  ;;  %v2680_v50 = vsel %vm2645_vm0, %v6334_v56, %v4824_v24  ;;  %v6017_v42 = vld [vmem:[%s10194_s1 + $0x8] sm:$0xff]  }
  0xd0   :  { %v4960_v25 = vunpack.i.h.bf16 %v4958_v37  ;;  %v4959_v3 = vunpack.i.l.bf16 %v4958_v37  ;;  %5252 = vrot.lane.b32.xlu1 %v6688_v10, %s6068_s26  ;;  %v4820_v10 = vunpack.i.h.bf16 %v6752_v12  ;;  %v2675_v12 = vsel %vm2645_vm0, %v6274_v43, %v4810_v62  ;;  %4642 = vmatprep.subr.bf16.mxu0 %v6017_v42 }
  0xd1   :  { %v7120_v14 = vsel %vm2710_vm1, %v2672_v49, %v4964_v1  ;;  %v7123_v27 = vsel %vm2710_vm1, %v2673_v39, %v4965_v51  ;;  %5247 = vrot.lane.b32.xlu0 %v6660_v20, %s6068_s26  ;;  %v2678_v44 = vsel %vm2645_vm0, %v6299_v48, %v4819_v5  ;;  %v10359_v32 = vmov %v6766_v40  ;;  %v10360_v1 = vld [vmem:[#allocation43_spill] sm:$0xff]  ;;  %v10362_v5 = vld [vmem:[#allocation40_spill] sm:$0xff]  ;;  %v10395_v40 = vld [vmem:[#allocation53_spill] sm:$0xff] }
  0xd2   :  { %v7130_v63 = vsel %vm2710_vm1, %v2670_v30, %v4959_v3  ;;  %v7133_v35 = vsel %vm2710_vm1, %v2671_v31, %v4960_v25  ;;  %v4973_v41 = vpop.permute.xlu1 %4972  ;;  %v2681_v31 = vsel %vm2645_vm0, %v6339_v57, %v4825_v60  ;;  %v4834_v52 = vunpack.i.l.bf16 %v10359_v32  ;;  %4715 = vmatprep.subr.bf16.mxu1 %v6017_v42  ;;  %4643 = vmatpush3.bf16.msra.mxu0 %v6017_v42  ;;  %v10361_v25 = vld [vmem:[#allocation44_spill] sm:$0xff] }
  0xd3   :  { %v4975_v49 = vunpack.i.h.bf16 %v4973_v41  ;;  %v4974_v20 = vunpack.i.l.bf16 %v4973_v41  ;;  %v4968_v53 = vpop.permute.xlu0 %4967  ;;  %v4835_v51 = vunpack.i.h.bf16 %v10359_v32  ;;  %v4829_v37 = vunpack.i.l.bf16 %v10360_v1  ;;  %4720 = vmatpush3.bf16.msra.mxu1 %v6017_v42  ;;  %v10363_v41 = vld [vmem:[#allocation45_spill] sm:$0xff]  ;;  %v10367_v32 = vld [vmem:[#allocation6_spill] sm:$0xff] }
  0xd4   :  { %v4970_v39 = vunpack.i.h.bf16 %v4968_v53  ;;  %v4969_v30 = vunpack.i.l.bf16 %v4968_v53  ;;  %5262 = vrot.lane.b32.xlu1 %v6712_v0, %s6068_s26  ;;  %v10358_v0 = vld [vmem:[#allocation5_spill] sm:$0xff]  ;;  %v4830_v24 = vunpack.i.h.bf16 %v10360_v1  ;;  %v4844_v3 = vunpack.i.l.bf16 %v10361_v25  ;;  %v10365_v53 = vld [vmem:[#allocation10_spill] sm:$0xff] }
  0xd5   :  { %v7152_v43 = vsel %vm2710_vm1, %v2676_v2, %v4974_v20  ;;  %v7155_v56 = vsel %vm2710_vm1, %v2677_v61, %v4975_v49  ;;  %5257 = vrot.lane.b32.xlu0 %v6684_v7, %s6068_s26  ;;  %v2679_v36 = vsel %vm2645_vm0, %v10358_v0, %v4820_v10  ;;  %v6018_v2 = vld [vmem:[%s10194_s1 + $0x10] sm:$0xff]   ;;  %v4845_v10 = vunpack.i.h.bf16 %v10361_v25  ;;  %v10364_v20 = vld [vmem:[#allocation38_spill] sm:$0xff] }
  0xd6   :  { %v7163_v4 = vsel %vm2710_vm1, %v2674_v38, %v4969_v30  ;;  %v7166_v57 = vsel %vm2710_vm1, %v2675_v12, %v4970_v39  ;;  %v4983_v48 = vpop.permute.xlu1 %4982  ;;  %v4839_v61 = vunpack.i.l.bf16 %v10363_v41  ;;  %v2684_v12 = vsel %vm2645_vm0, %v10365_v53, %v4834_v52  ;;  %4644 = vmatprep.subr.bf16.mxu0 %v6018_v2  ;;  %4716 = vmatprep.subr.bf16.mxu1 %v6018_v2  ;;  %v10374_v53 = vld [vmem:[#allocation9_spill] sm:$0xff] }
  0xd7   :  { %v4985_v33 = vunpack.i.h.bf16 %v4983_v48  ;;  %v4984_v7 = vunpack.i.l.bf16 %v4983_v48  ;;  %v4978_v62 = vpop.permute.xlu0 %4977  ;;  %v4840_v39 = vunpack.i.h.bf16 %v10363_v41  ;;  %v2682_v48 = vsel %vm2645_vm0, %v10367_v32, %v4829_v37  ;;  %4645 = vmatpush3.bf16.msra.mxu0 %v6018_v2  ;;  %4721 = vmatpush3.bf16.msra.mxu1 %v6018_v2  ;;  %v10371_v37 = vld [vmem:[#allocation15_spill] sm:$0xff]  ;;  %v10372_v41 = vld [vmem:[#allocation8_spill] sm:$0xff] }
  0xd8   :  { %v4980_v15 = vunpack.i.h.bf16 %v4978_v62  ;;  %v4979_v60 = vunpack.i.l.bf16 %v4978_v62  ;;  %5272 = vrot.lane.b32.xlu1 %v10362_v5, %s6068_s26  ;;  %v10369_v62 = vld [vmem:[#allocation14_spill] sm:$0xff]  ;;  %v2689_v5 = vsel %vm2645_vm0, %v10371_v37, %v4845_v10  ;;  %v2686_v2 = vsel %vm2645_vm0, %v10372_v41, %v4839_v61 }
  0xd9   :  { %v7180_v38 = vsel %vm2710_vm1, %v2680_v50, %v4984_v7  ;;  %v7183_v49 = vsel %vm2710_vm1, %v2681_v31, %v4985_v33  ;;  %5267 = vrot.lane.b32.xlu0 %v10364_v20, %s6068_s26  ;;  %v10366_v50 = vld [vmem:[#allocation11_spill] sm:$0xff]  ;;  %v10375_v61 = vld [vmem:[#allocation46_spill] sm:$0xff] }
  0xda   :  { %v7191_v30 = vsel %vm2710_vm1, %v2678_v44, %v4979_v60  ;;  %v7194_v42 = vsel %vm2710_vm1, %v2679_v36, %v4980_v15  ;;  %v4993_v0 = vpop.permute.xlu1 %4992  ;;  %v2685_v31 = vsel %vm2645_vm0, %v10366_v50, %v4835_v51  ;;  %v10368_v7 = vld [vmem:[#allocation7_spill] sm:$0xff]  ;;  %v2688_v36 = vsel %vm2645_vm0, %v10369_v62, %v4844_v3  ;;  %v10370_v60 = vld [vmem:[#allocation41_spill] sm:$0xff]  ;;  %v6019_v51 = vld [vmem:[%s10194_s1 + $0x18] sm:$0xff]  }
  0xdb   :  { %v4995_v1 = vunpack.i.h.bf16 %v4993_v0  ;;  %v4994_v33 = vunpack.i.l.bf16 %v4993_v0  ;;  %v4988_v52 = vpop.permute.xlu0 %4987  ;;  %v2683_v44 = vsel %vm2645_vm0, %v10368_v7, %v4830_v24  ;;  %v10373_v20 = vld [vmem:[#allocation39_spill] sm:$0xff]  ;;  %v2687_v0 = vsel %vm2645_vm0, %v10374_v53, %v4840_v39  ;;  %4646 = vmatprep.subr.bf16.mxu0 %v6019_v51  ;;  %4717 = vmatprep.subr.bf16.mxu1 %v6019_v51 }
  0xdc   :  { %v4990_v25 = vunpack.i.h.bf16 %v4988_v52  ;;  %v4989_v15 = vunpack.i.l.bf16 %v4988_v52  ;;  %5282 = vrot.lane.b32.xlu1 %v10370_v60, %s6068_s26  ;;  %4647 = vmatpush3.bf16.msra.mxu0 %v6019_v51  ;;  %v10376_v7 = vld [vmem:[#allocation47_spill] sm:$0xff] }
  0xdd   :  { %v7214_v24 = vsel %vm2710_vm1, %v2684_v12, %v4994_v33  ;;  %v7217_v3 = vsel %vm2710_vm1, %v2685_v31, %v4995_v1  ;;  %5277 = vrot.lane.b32.xlu0 %v10373_v20, %s6068_s26  ;;  %v4855_v12 = vunpack.i.h.bf16 %v10375_v61  ;;  %v4854_v31 = vunpack.i.l.bf16 %v10375_v61  ;;  %4722 = vmatpush3.bf16.msra.mxu1 %v6019_v51 }
  0xde   :  { %v7224_v50 = vsel %vm2710_vm1, %v2682_v48, %v4989_v15  ;;  %v7227_v10 = vsel %vm2710_vm1, %v2683_v44, %v4990_v25  ;;  %v5003_v32 = vpop.permute.xlu1 %5002  ;;  %v4850_v39 = vunpack.i.h.bf16 %v10376_v7  ;;  %v4849_v48 = vunpack.i.l.bf16 %v10376_v7  ;;  %v6020_v44 = vld [vmem:[%s10194_s1 + $0x20] ss:$0 sps:$4 sm:$0xff]   ;;  %v10377_v25 = vld [vmem:[#allocation48_spill] sm:$0xff]  ;;  %s6070_s1 = smov 48  }
  0xdf   :  { %v5005_v1 = vunpack.i.h.bf16 %v5003_v32  ;;  %v5004_v33 = vunpack.i.l.bf16 %v5003_v32  ;;  %v4998_v52 = vpop.permute.xlu0 %4997  ;;  %v4865_v60 = vunpack.i.h.bf16 %v10377_v25  ;;  %4724 = vmatprep.subr.msk.bf16.mxu0 %vm3330_vm2, %v6020_v44  ;;  %4725 = vmatprep.subr.msk.bf16.mxu1 %vm3330_vm2, %v6020_v44 }
  0xe0   :  { %v5000_v62 = vunpack.i.h.bf16 %v4998_v52  ;;  %v4999_v15 = vunpack.i.l.bf16 %v4998_v52  ;;  %5292 = vrot.lane.b32.xlu1 %v6984_v9, %s6069_s14  ;;  %v4864_v9 = vunpack.i.l.bf16 %v10377_v25 }
  0xe1   :  { %v7240_v37 = vsel %vm2710_vm1, %v2688_v36, %v5004_v33  ;;  %v7243_v51 = vsel %vm2710_vm1, %v2689_v5, %v5005_v1  ;;  %5287 = vrot.lane.b32.xlu0 %v5286_v19, %s6069_s14  ;;  %v3332_v36 = vsel %vm3330_vm2, %v6020_v44, 0  ;;  %v10378_v5 = vld [vmem:[#allocation49_spill] sm:$0xff]  ;;  %v10379_v19 = vld [vmem:[#allocation18_spill] sm:$0xff]  ;;  %v10380_v33 = vld [vmem:[#allocation19_spill] sm:$0xff] }
  0xe2   :  { %v7251_v41 = vsel %vm2710_vm1, %v2686_v2, %v4999_v15  ;;  %v7254_v20 = vsel %vm2710_vm1, %v2687_v0, %v5000_v62  ;;  %v5013_v53 = vpop.permute.xlu1 %5012  ;;  %v4860_v32 = vunpack.i.h.bf16 %v10378_v5  ;;  %v4859_v61 = vunpack.i.l.bf16 %v10378_v5  ;;  %4649 = vmatpush3.bf16.msra.mxu0 %v3332_v36  ;;  %4723 = vmatpush3.bf16.msra.mxu1 %v3332_v36  ;;  %v10381_v62 = vld [vmem:[#allocation12_spill] sm:$0xff]  ;;  %v10382_v44 = vld [vmem:[#allocation13_spill] sm:$0xff]  ;;  %v10385_v5 = vld [vmem:[#allocation23_spill] sm:$0xff] }
  0xe3   :  { %v5015_v1 = vunpack.i.h.bf16 %v5013_v53  ;;  %v5014_v59 = vunpack.i.l.bf16 %v5013_v53  ;;  %v5008_v18 = vpop.permute.xlu0 %5007  ;;  %v2692_v2 = vsel %vm2645_vm0, %v10379_v19, %v4854_v31  ;;  %v2693_v0 = vsel %vm2645_vm0, %v10380_v33, %v4855_v12  ;;  %v10384_v12 = vld [vmem:[#allocation22_spill] sm:$0xff]  ;;  %v10388_v19 = vld [vmem:[#allocation16_spill] sm:$0xff] }
  0xe4   :  { %v5010_v52 = vunpack.i.h.bf16 %v5008_v18  ;;  %v5009_v7 = vunpack.i.l.bf16 %v5008_v18  ;;  %5302 = vrot.lane.b32.xlu1 %v7017_v29, %s6070_s1  ;;  %v2690_v15 = vsel %vm2645_vm0, %v10381_v62, %v4849_v48  ;;  %v2691_v25 = vsel %vm2645_vm0, %v10382_v44, %v4850_v39 }
  0xe5   :  { %v7269_v53 = vsel %vm2710_vm1, %v2692_v2, %v5014_v59  ;;  %v7272_v31 = vsel %vm2710_vm1, %v2693_v0, %v5015_v1  ;;  %5297 = vrot.lane.b32.xlu0 %v7021_v16, %s6070_s1  ;;  %v2696_v36 = vsel %vm2645_vm0, %v10384_v12, %v4864_v9  ;;  %v2697_v18 = vsel %vm2645_vm0, %v10385_v5, %v4865_v60  ;;  %v10389_v2 = vld [vmem:[#allocation17_spill] sm:$0xff]  ;;  %v10390_v9 = vld [vmem:[#allocation50_spill] sm:$0xff] }
  0xe6   :  { %10383 = vst [vmem:[#allocation5_spill] sm:$0xff] %v7272_v31  ;;  %v7281_v48 = vsel %vm2710_vm1, %v2690_v15, %v5009_v7  ;;  %v7284_v39 = vsel %vm2710_vm1, %v2691_v25, %v5010_v52  ;;  %v5023_v59 = vpop.permute.xlu1 %5022  ;;  %v2694_v1 = vsel %vm2645_vm0, %v10388_v19, %v4859_v61  ;;  %v2695_v33 = vsel %vm2645_vm0, %v10389_v2, %v4860_v32  ;;  %v10391_v52 = vld [vmem:[#allocation51_spill] sm:$0xff] }
  0xe7   :  { %10386 = vst [vmem:[#allocation42_spill] sm:$0xff] %v7281_v48  ;;  %10387 = vst [vmem:[#allocation43_spill] sm:$0xff] %v7284_v39  ;;  %v5025_v0 = vunpack.i.h.bf16 %v5023_v59  ;;  %v5024_v62 = vunpack.i.l.bf16 %v5023_v59  ;;  %v5018_v44 = vpop.permute.xlu0 %5017  ;;  %v4875_v12 = vunpack.i.h.bf16 %v10390_v9  ;;  %v4874_v60 = vunpack.i.l.bf16 %v10390_v9  ;;  %v10394_v59 = vld [vmem:[#allocation52_spill] sm:$0xff]  ;;  %v10397_v48 = vld [vmem:[#allocation27_spill] sm:$0xff] }
  0xe8   :  { %v5020_v5 = vunpack.i.h.bf16 %v5018_v44  ;;  %v5019_v7 = vunpack.i.l.bf16 %v5018_v44  ;;  %5312 = vrot.lane.b32.xlu1 %v7021_v16, %s6071_s17  ;;  %v4870_v15 = vunpack.i.h.bf16 %v10391_v52  ;;  %v4869_v61 = vunpack.i.l.bf16 %v10391_v52 }
  0xe9   :  { %v7297_v25 = vsel %vm2710_vm1, %v2696_v36, %v5024_v62  ;;  %v7300_v32 = vsel %vm2710_vm1, %v2697_v18, %v5025_v0  ;;  %5307 = vrot.lane.b32.xlu0 %v7023_v28, %s6071_s17  ;;  %v4885_v19 = vunpack.i.h.bf16 %v10394_v59  ;;  %v4884_v2 = vunpack.i.l.bf16 %v10394_v59 }
  0xea   :  { %10392 = vst [vmem:[#allocation44_spill] sm:$0xff] %v7297_v25  ;;  %10393 = vst [vmem:[#allocation40_spill] sm:$0xff] %v7300_v32  ;;  %v7307_v44 = vsel %vm2710_vm1, %v2694_v1, %v5019_v7  ;;  %v7310_v9 = vsel %vm2710_vm1, %v2695_v33, %v5020_v5  ;;  %v5033_v52 = vpop.permute.xlu1 %5032  ;;  %v4880_v36 = vunpack.i.h.bf16 %v10395_v40  ;;  %v4879_v62 = vunpack.i.l.bf16 %v10395_v40  ;;  %v10396_v25 = vld [vmem:[#allocation26_spill] sm:$0xff]  ;;  %v10398_v33 = vld [vmem:[#allocation20_spill] sm:$0xff] }
  0xeb   :  { %v5035_v18 = vunpack.i.h.bf16 %v5033_v52  ;;  %v5034_v0 = vunpack.i.l.bf16 %v5033_v52  ;;  %v5028_v32 = vpop.permute.xlu0 %5027  ;;  %v2700_v39 = vsel %vm2645_vm0, %v10396_v25, %v4874_v60  ;;  %v2701_v59 = vsel %vm2645_vm0, %v10397_v48, %v4875_v12  ;;  %v10399_v7 = vld [vmem:[#allocation21_spill] sm:$0xff]  ;;  %v10401_v12 = vld [vmem:[#allocation28_spill] sm:$0xff] }
  0xec   :  { %v5030_v31 = vunpack.i.h.bf16 %v5028_v32  ;;  %v5029_v1 = vunpack.i.l.bf16 %v5028_v32  ;;  %5322 = vrot.lane.b32.xlu1 %v7023_v28, %s6072_s19  ;;  %v2698_v5 = vsel %vm2645_vm0, %v10398_v33, %v4869_v61  ;;  %v2699_v40 = vsel %vm2645_vm0, %v10399_v7, %v4870_v15  ;;  %v10402_v25 = vld [vmem:[#allocation29_spill] sm:$0xff] }
  0xed   :  { %v7325_v52 = vsel %vm2710_vm1, %v2700_v39, %v5034_v0  ;;  %v7328_v60 = vsel %vm2710_vm1, %v2701_v59, %v5035_v18  ;;  %v10400_v48 = vpack.i.bf16 %v6970_v58, %v6964_v11  ;;  %v2704_v28 = vsel %vm2645_vm0, %v10401_v12, %v4884_v2  ;;  %v10403_v18 = vld [vmem:[#allocation24_spill] sm:$0xff]  ;;  %v10404_v59 = vld [vmem:[#allocation25_spill] sm:$0xff]  ;;  %v10405_v2 = vld [vmem:[#allocation54_spill] sm:$0xff] }
  0xee   :  { %v2705_v61 = vsel %vm2645_vm0, %v10402_v25, %v4885_v19  ;;  %v7339_v32 = vsel %vm2710_vm1, %v2698_v5, %v5029_v1  ;;  %v7342_v39 = vsel %vm2710_vm1, %v2699_v40, %v5030_v31  ;;  %v5043_v15 = vpop.permute.xlu1 %5042  ;;  %v2702_v0 = vsel %vm2645_vm0, %v10403_v18, %v4879_v62  ;;  %v4242_v62 = vld [vmem:[%s10193_s0 + $0x34a] sm:$0xff] }
  0xef   :  { %5317 = vrot.lane.b32.xlu0 %v10400_v48, %s6072_s19  ;;  %v2703_v58 = vsel %vm2645_vm0, %v10404_v59, %v4880_v36  ;;  %v5045_v11 = vunpack.i.h.bf16 %v5043_v15  ;;  %v5044_v33 = vunpack.i.l.bf16 %v5043_v15  ;;  %v5038_v7 = vpop.permute.xlu0 %5037  ;;  %v4895_v48 = vunpack.i.h.bf16 %v10405_v2  ;;  %v4243_v36 = vld [vmem:[%s10193_s0 + $0x352] sm:$0xff] }
  0xf0   :  { %v4894_v19 = vunpack.i.l.bf16 %v10405_v2  ;;  %v5040_v12 = vunpack.i.h.bf16 %v5038_v7  ;;  %v5039_v1 = vunpack.i.l.bf16 %v5038_v7  ;;  %v10406_v31 = vpack.i.bf16 %v6980_v26, %v6975_v6  ;;  %v10407_v5 = vld [vmem:[#allocation55_spill] sm:$0xff] }
  0xf1   :  { %v4890_v40 = vunpack.i.h.bf16 %v10407_v5  ;;  %v4889_v25 = vunpack.i.l.bf16 %v10407_v5  ;;  %v7363_v15 = vsel %vm2710_vm1, %v2704_v28, %v5044_v33  ;;  %v7366_v18 = vsel %vm2710_vm1, %v2705_v61, %v5045_v11 }
  0xf2   :  { %5332 = vrot.lane.b32.xlu1 %v10406_v31, %s6069_s14  ;;  %v10408_v6 = vpack.i.bf16 %v6994_v54, %v6989_v55  ;;  %v7373_v26 = vsel %vm2710_vm1, %v2702_v0, %v5039_v1  ;;  %v7376_v59 = vsel %vm2710_vm1, %v2703_v58, %v5040_v12  ;;  %v5053_v7 = vpop.permute.xlu1 %5052  ;;  %v2708_v28 = vsel %vm2645_vm0, %v4242_v62, %v4894_v19  ;;  %v6023_v54 = vld [vmem:[%s10193_s0 + $0x332] sm:$0xff]  ;;  %v6024_v0 = vld [vmem:[%s10193_s0 + $0x33a] sm:$0xff] }
  0xf3   :  { %v5055_v2 = vunpack.i.h.bf16 %v5053_v7  ;;  %v5054_v31 = vunpack.i.l.bf16 %v5053_v7  ;;  %v5048_v5 = vpop.permute.xlu0 %5047  ;;  %v2709_v61 = vsel %vm2645_vm0, %v4243_v36, %v4895_v48  ;;  %v2706_v55 = vsel %vm2645_vm0, %v6023_v54, %v4889_v25  ;;  %v352_v25 = vld [vmem:[%s10193_s0 + $0x81] sm:$0xff]  ;;  %v4444_v54 = vld [vmem:[%s10193_s0 + $0x90] sm:$0xff] }
  0xf4   :  { %5327 = vrot.lane.b32.xlu0 %v10408_v6, %s6069_s14  ;;  %v5050_v11 = vunpack.i.h.bf16 %v5048_v5  ;;  %v5049_v33 = vunpack.i.l.bf16 %v5048_v5  ;;  %v2707_v58 = vsel %vm2645_vm0, %v6024_v0, %v4890_v40  ;;  %v351_v40 = vld [vmem:[%s10193_s0 + $0x79] sm:$0xff]  ;;  %v349_v7 = vld [vmem:[%s10193_s0 + $0x61] sm:$0xff] }
  0xf5   :  { %v7391_v19 = vsel %vm2710_vm1, %v2708_v28, %v5054_v31  ;;  %v7394_v48 = vsel %vm2710_vm1, %v2709_v61, %v5055_v2  ;;  %v350_v2 = vld [vmem:[%s10193_s0 + $0x69] sm:$0xff]  ;;  %v5371_v5 = vpack.i.bf16 %v352_v25, %v351_v40 }
  0xf6   :  { %5342 = vrot.lane.b32.xlu1 %v7035_v47, %s6070_s1  ;;  %v7399_v12 = vsel %vm2710_vm1, %v2706_v55, %v5049_v33  ;;  %v7402_v1 = vsel %vm2710_vm1, %v2707_v58, %v5050_v11  ;;  %v7404_v62 = vpop.permute.xlu1 %5062  ;;  %v5366_v28 = vpack.i.bf16 %v350_v2, %v349_v7  ;;  %v4446_v61 = vld [vmem:[%s10193_s0 + $0xa8] sm:$0xff]  ;;  %v4447_v11 = vld [vmem:[%s10193_s0 + $0xb0] sm:$0xff] }
  0xf7   :  { %v7406_v36 = vpop.permute.xlu0 %5057  ;;  %v7449_v55 = vpack.i.bf16 %v4447_v11, %v4446_v61 }
  0xf8   :  { %5337 = vrot.lane.b32.xlu0 %v7037_v17, %s6070_s1 }
  0xfa   :  { %5352 = vrot.lane.b32.xlu1 %v7037_v17, %s6071_s17  ;;  %v7418_v6 = vpop.permute.xlu1 %5072 }
  0xfb   :  { %v7426_v31 = vpop.permute.xlu0 %5067 }
  0xfc   :  { %5347 = vrot.lane.b32.xlu0 %v7017_v29, %s6071_s17 }
  0xfe   :  { %5362 = vrot.lane.b32.xlu1 %v7017_v29, %s6072_s19  ;;  %v7438_v33 = vpop.permute.xlu1 %5082  ;;  %v4445_v29 = vld [vmem:[%s10193_s0 + $0x98] sm:$0xff] }
  0xff   :  { %v7452_v0 = vpack.i.bf16 %v4445_v29, %v4444_v54  ;;  %v355_v29 = vld [vmem:[%s10193_s0 + $0xa9] sm:$0xff] }
 0x100   :  { %5357 = vrot.lane.b32.xlu0 %v7021_v16, %s6072_s19  ;;  %v7446_v16 = vpop.permute.xlu0 %5077 }
 0x101   :  { %10409 = vst [vmem:[#allocation45_spill] sm:$0xff] %v7446_v16 }
 0x102   :  { %5372 = vrot.lane.b32.xlu1 %v5371_v5, %s6069_s14  ;;  %v7454_v58 = vpop.permute.xlu1 %5092 }
 0x103   :  { %10410 = vst [vmem:[#allocation38_spill] sm:$0xff] %v7454_v58 }
 0x104   :  { %5367 = vrot.lane.b32.xlu0 %v5366_v28, %s6069_s14  ;;  %v7456_v40 = vpop.permute.xlu0 %5087 }
 0x105   :  { %10411 = vst [vmem:[#allocation10_spill] sm:$0xff] %v7456_v40 }
 0x106   :  { %5382 = vrot.lane.b32.xlu1 %v7449_v55, %s6070_s1  ;;  %v5103_v25 = vpop.permute.xlu1 %5102 }
 0x107   :  { %v5105_v7 = vunpack.i.h.bf16 %v5103_v25  ;;  %v5104_v2 = vunpack.i.l.bf16 %v5103_v25  ;;  %v356_v25 = vld [vmem:[%s10193_s0 + $0xb1] sm:$0xff] }
 0x108   :  { %5377 = vrot.lane.b32.xlu0 %v7452_v0, %s6070_s1  ;;  %v5098_v5 = vpop.permute.xlu0 %5097 }
 0x109   :  { %v5100_v61 = vunpack.i.h.bf16 %v5098_v5  ;;  %v5099_v11 = vunpack.i.l.bf16 %v5098_v5  ;;  %v7466_v28 = vsel %vm2775_vm3, %v7055_v46, %v5104_v2  ;;  %v7470_v54 = vsel %vm2775_vm3, %v7058_v13, %v5105_v7  ;;  %v353_v7 = vld [vmem:[%s10193_s0 + $0x91] sm:$0xff]  ;;  %v354_v2 = vld [vmem:[%s10193_s0 + $0x99] sm:$0xff] }
 0x10a   :  { %5392 = vrot.lane.b32.xlu1 %v7452_v0, %s6071_s17  ;;  %10412 = vst [vmem:[#allocation11_spill] sm:$0xff] %v7466_v28  ;;  %10413 = vst [vmem:[#allocation6_spill] sm:$0xff] %v7470_v54  ;;  %v5113_v13 = vpop.permute.xlu1 %5112 }
 0x10b   :  { %v7482_v5 = vsel %vm2775_vm3, %v7066_v8, %v5099_v11  ;;  %v7486_v46 = vsel %vm2775_vm3, %v7069_v34, %v5100_v61  ;;  %v5115_v54 = vunpack.i.h.bf16 %v5113_v13  ;;  %v5114_v28 = vunpack.i.l.bf16 %v5113_v13 }
 0x10c   :  { %5387 = vrot.lane.b32.xlu0 %v7035_v47, %s6071_s17  ;;  %v5108_v40 = vpop.permute.xlu0 %5107  ;;  %v5411_v8 = vpack.i.bf16 %v356_v25, %v355_v29  ;;  %v5406_v11 = vpack.i.bf16 %v354_v2, %v353_v7 }
 0x10d   :  { %v5110_v58 = vunpack.i.h.bf16 %v5108_v40  ;;  %v5109_v16 = vunpack.i.l.bf16 %v5108_v40  ;;  %v7498_v34 = vsel %vm2775_vm3, %v7086_v23, %v5114_v28  ;;  %v7502_v61 = vsel %vm2775_vm3, %v7089_v22, %v5115_v54  ;;  %v4450_v40 = vld [vmem:[%s10193_s0 + $0xd8] sm:$0xff]  ;;  %v4449_v54 = vld [vmem:[%s10193_s0 + $0xc8] sm:$0xff] }
 0x10e   :  { %5402 = vrot.lane.b32.xlu1 %v7035_v47, %s6072_s19  ;;  %v4451_v47 = vld [vmem:[%s10193_s0 + $0xe0] sm:$0xff]  ;;  %v5123_v28 = vpop.permute.xlu1 %5122 }
 0x10f   :  { %v7514_v23 = vsel %vm2775_vm3, %v7097_v21, %v5109_v16  ;;  %v7518_v22 = vsel %vm2775_vm3, %v7100_v45, %v5110_v58  ;;  %v5125_v29 = vunpack.i.h.bf16 %v5123_v28  ;;  %v5124_v25 = vunpack.i.l.bf16 %v5123_v28 }
 0x110   :  { %5397 = vrot.lane.b32.xlu0 %v7037_v17, %s6072_s19  ;;  %10414 = vst [vmem:[#allocation7_spill] sm:$0xff] %v7518_v22  ;;  %v4448_v17 = vld [vmem:[%s10193_s0 + $0xc0] sm:$0xff]  ;;  %v5118_v13 = vpop.permute.xlu0 %5117  ;;  %v7527_v21 = vpack.i.bf16 %v4451_v47, %v4450_v40 }
 0x111   :  { %v5120_v7 = vunpack.i.h.bf16 %v5118_v13  ;;  %v5119_v2 = vunpack.i.l.bf16 %v5118_v13  ;;  %v7531_v45 = vsel %vm2775_vm3, %v7120_v14, %v5124_v25  ;;  %v7535_v16 = vsel %vm2775_vm3, %v7123_v27, %v5125_v29 }
 0x112   :  { %5412 = vrot.lane.b32.xlu1 %v5411_v8, %s6069_s14  ;;  %10415 = vst [vmem:[#allocation14_spill] sm:$0xff] %v7531_v45  ;;  %10416 = vst [vmem:[#allocation41_spill] sm:$0xff] %v7535_v16  ;;  %v7538_v58 = vpack.i.bf16 %v4449_v54, %v4448_v17  ;;  %v5133_v40 = vpop.permute.xlu1 %5132 }
 0x113   :  { %v7542_v28 = vsel %vm2775_vm3, %v7130_v63, %v5119_v2  ;;  %v7546_v8 = vsel %vm2775_vm3, %v7133_v35, %v5120_v7  ;;  %v5135_v47 = vunpack.i.h.bf16 %v5133_v40  ;;  %v5134_v14 = vunpack.i.l.bf16 %v5133_v40 }
 0x114   :  { %5407 = vrot.lane.b32.xlu0 %v5406_v11, %s6069_s14  ;;  %10417 = vst [vmem:[#allocation15_spill] sm:$0xff] %v7542_v28  ;;  %10418 = vst [vmem:[#allocation8_spill] sm:$0xff] %v7546_v8  ;;  %v5128_v25 = vpop.permute.xlu0 %5127 }
 0x115   :  { %v5130_v13 = vunpack.i.h.bf16 %v5128_v25  ;;  %v5129_v45 = vunpack.i.l.bf16 %v5128_v25  ;;  %v7552_v27 = vsel %vm2775_vm3, %v7152_v43, %v5134_v14  ;;  %v7556_v63 = vsel %vm2775_vm3, %v7155_v56, %v5135_v47  ;;  %v357_v47 = vld [vmem:[%s10193_s0 + $0xc1] sm:$0xff]  ;;  %v358_v14 = vld [vmem:[%s10193_s0 + $0xc9] sm:$0xff] }
 0x116   :  { %5422 = vrot.lane.b32.xlu1 %v7527_v21, %s6070_s1  ;;  %10419 = vst [vmem:[#allocation39_spill] sm:$0xff] %v7552_v27  ;;  %10420 = vst [vmem:[#allocation9_spill] sm:$0xff] %v7556_v63  ;;  %v5143_v17 = vpop.permute.xlu1 %5142  ;;  %v5065_v63 = vunpack.i.h.bf16 %v7404_v62  ;;  %v5064_v27 = vunpack.i.l.bf16 %v7404_v62  ;;  %v5059_v62 = vunpack.i.l.bf16 %v7406_v36 }
 0x117   :  { %v7562_v35 = vsel %vm2775_vm3, %v7163_v4, %v5129_v45  ;;  %v7566_v11 = vsel %vm2775_vm3, %v7166_v57, %v5130_v13  ;;  %v5145_v54 = vunpack.i.h.bf16 %v5143_v17  ;;  %v5144_v29 = vunpack.i.l.bf16 %v5143_v17  ;;  %v359_v57 = vld [vmem:[%s10193_s0 + $0xd9] sm:$0xff]  ;;  %v360_v45 = vld [vmem:[%s10193_s0 + $0xe1] sm:$0xff] }
 0x118   :  { %5417 = vrot.lane.b32.xlu0 %v7538_v58, %s6070_s1  ;;  %10421 = vst [vmem:[#allocation46_spill] sm:$0xff] %v7562_v35  ;;  %10422 = vst [vmem:[#allocation47_spill] sm:$0xff] %v7566_v11  ;;  %v5138_v43 = vpop.permute.xlu0 %5137  ;;  %v10472_v11 = vld [vmem:[#allocation58_spill] sm:$0xff] }
 0x119   :  { %v5140_v7 = vunpack.i.h.bf16 %v5138_v43  ;;  %v5139_v2 = vunpack.i.l.bf16 %v5138_v43  ;;  %v7572_v56 = vsel %vm2775_vm3, %v7180_v38, %v5144_v29  ;;  %v7576_v4 = vsel %vm2775_vm3, %v7183_v49, %v5145_v54 }
 0x11a   :  { %5432 = vrot.lane.b32.xlu1 %v7538_v58, %s6071_s17  ;;  %10423 = vst [vmem:[#allocation48_spill] sm:$0xff] %v7572_v56  ;;  %10424 = vst [vmem:[#allocation49_spill] sm:$0xff] %v7576_v4  ;;  %v5153_v49 = vpop.permute.xlu1 %5152  ;;  %v5060_v4 = vunpack.i.h.bf16 %v7406_v36 }
 0x11b   :  { %v7588_v40 = vsel %vm2775_vm3, %v7191_v30, %v5139_v2  ;;  %v7592_v38 = vsel %vm2775_vm3, %v7194_v42, %v5140_v7  ;;  %v5155_v25 = vunpack.i.h.bf16 %v5153_v49  ;;  %v5154_v13 = vunpack.i.l.bf16 %v5153_v49  ;;  %v4454_v2 = vld [vmem:[%s10193_s0 + $0x108] sm:$0xff] }
 0x11c   :  { %5427 = vrot.lane.b32.xlu0 %v7449_v55, %s6071_s17  ;;  %10425 = vst [vmem:[#allocation18_spill] sm:$0xff] %v7588_v40  ;;  %10426 = vst [vmem:[#allocation19_spill] sm:$0xff] %v7592_v38  ;;  %v5148_v17 = vpop.permute.xlu0 %5147  ;;  %v5451_v30 = vpack.i.bf16 %v360_v45, %v359_v57  ;;  %v5446_v7 = vpack.i.bf16 %v358_v14, %v357_v47  ;;  %v4453_v45 = vld [vmem:[%s10193_s0 + $0xf8] sm:$0xff] }
 0x11d   :  { %v5150_v54 = vunpack.i.h.bf16 %v5148_v17  ;;  %v5149_v29 = vunpack.i.l.bf16 %v5148_v17  ;;  %v7604_v42 = vsel %vm2775_vm3, %v7214_v24, %v5154_v13  ;;  %v7608_v43 = vsel %vm2775_vm3, %v7217_v3, %v5155_v25 }
 0x11e   :  { %5442 = vrot.lane.b32.xlu1 %v7449_v55, %s6072_s19  ;;  %10427 = vst [vmem:[#allocation12_spill] sm:$0xff] %v7604_v42  ;;  %10428 = vst [vmem:[#allocation13_spill] sm:$0xff] %v7608_v43  ;;  %v4455_v55 = vld [vmem:[%s10193_s0 + $0x110] sm:$0xff]  ;;  %v5163_v57 = vpop.permute.xlu1 %5162 }
 0x11f   :  { %v7620_v24 = vsel %vm2775_vm3, %v7224_v50, %v5149_v29  ;;  %v7624_v3 = vsel %vm2775_vm3, %v7227_v10, %v5150_v54  ;;  %v5165_v49 = vunpack.i.h.bf16 %v5163_v57  ;;  %v5164_v47 = vunpack.i.l.bf16 %v5163_v57  ;;  %v6032_v42 = vld [vmem:[%s10193_s0 + $0x52] sm:$0xff] }
 0x120   :  { %5437 = vrot.lane.b32.xlu0 %v7452_v0, %s6072_s19  ;;  %10429 = vst [vmem:[#allocation22_spill] sm:$0xff] %v7620_v24  ;;  %10430 = vst [vmem:[#allocation23_spill] sm:$0xff] %v7624_v3  ;;  %v4452_v0 = vld [vmem:[%s10193_s0 + $0xf0] sm:$0xff]  ;;  %v5158_v14 = vpop.permute.xlu0 %5157  ;;  %v7633_v50 = vpack.i.bf16 %v4455_v55, %v4454_v2 }
 0x121   :  { %v5160_v25 = vunpack.i.h.bf16 %v5158_v14  ;;  %v5159_v13 = vunpack.i.l.bf16 %v5158_v14  ;;  %v7637_v10 = vsel %vm2775_vm3, %v7240_v37, %v5164_v47  ;;  %v7641_v17 = vsel %vm2775_vm3, %v7243_v51, %v5165_v49 }
 0x122   :  { %5452 = vrot.lane.b32.xlu1 %v5451_v30, %s6069_s14  ;;  %10431 = vst [vmem:[#allocation16_spill] sm:$0xff] %v7637_v10  ;;  %10432 = vst [vmem:[#allocation17_spill] sm:$0xff] %v7641_v17  ;;  %v7644_v54 = vpack.i.bf16 %v4453_v45, %v4452_v0  ;;  %v5173_v2 = vpop.permute.xlu1 %5172  ;;  %v10440_v45 = vld [vmem:[#allocation43_spill] sm:$0xff] }
 0x123   :  { %v7648_v29 = vsel %vm2775_vm3, %v7251_v41, %v5159_v13  ;;  %v7652_v30 = vsel %vm2775_vm3, %v7254_v20, %v5160_v25  ;;  %v5175_v55 = vunpack.i.h.bf16 %v5173_v2  ;;  %v5174_v37 = vunpack.i.l.bf16 %v5173_v2  ;;  %v10438_v20 = vld [vmem:[#allocation42_spill] sm:$0xff] }
 0x124   :  { %5447 = vrot.lane.b32.xlu0 %v5446_v7, %s6069_s14  ;;  %10433 = vst [vmem:[#allocation50_spill] sm:$0xff] %v7648_v29  ;;  %10434 = vst [vmem:[#allocation51_spill] sm:$0xff] %v7652_v30  ;;  %v5168_v57 = vpop.permute.xlu0 %5167  ;;  %v10436_v7 = vld [vmem:[#allocation5_spill] sm:$0xff]  ;;  %v10465_v29 = vld [vmem:[#allocation35_spill] sm:$0xff] }
 0x125   :  { %v5170_v47 = vunpack.i.h.bf16 %v5168_v57  ;;  %v5169_v14 = vunpack.i.l.bf16 %v5168_v57  ;;  %v7658_v51 = vsel %vm2775_vm3, %v7269_v53, %v5174_v37  ;;  %v7662_v41 = vsel %vm2775_vm3, %v10436_v7, %v5175_v55  ;;  %v10442_v55 = vld [vmem:[#allocation44_spill] sm:$0xff] }
 0x126   :  { %5462 = vrot.lane.b32.xlu1 %v7633_v50, %s6070_s1  ;;  %10435 = vst [vmem:[#allocation52_spill] sm:$0xff] %v7658_v51  ;;  %10437 = vst [vmem:[#allocation53_spill] sm:$0xff] %v7662_v41  ;;  %v5183_v25 = vpop.permute.xlu1 %5182  ;;  %v10444_v41 = vld [vmem:[#allocation40_spill] sm:$0xff]  ;;  %v4759_v17 = vunpack.i.l.bf16 %v10465_v29 }
 0x127   :  { %v7668_v0 = vsel %vm2775_vm3, %v10438_v20, %v5169_v14  ;;  %v7672_v49 = vsel %vm2775_vm3, %v10440_v45, %v5170_v47  ;;  %v5185_v13 = vunpack.i.h.bf16 %v5183_v25  ;;  %v5184_v2 = vunpack.i.l.bf16 %v5183_v25  ;;  %v363_v47 = vld [vmem:[%s10193_s0 + $0x109] sm:$0xff]  ;;  %v364_v20 = vld [vmem:[%s10193_s0 + $0x111] sm:$0xff] }
 0x128   :  { %5457 = vrot.lane.b32.xlu0 %v7644_v54, %s6070_s1  ;;  %10439 = vst [vmem:[#allocation26_spill] sm:$0xff] %v7668_v0  ;;  %10441 = vst [vmem:[#allocation27_spill] sm:$0xff] %v7672_v49  ;;  %v5178_v53 = vpop.permute.xlu0 %5177  ;;  %v10464_v0 = vld [vmem:[#allocation34_spill] sm:$0xff] }
 0x129   :  { %v5180_v37 = vunpack.i.h.bf16 %v5178_v53  ;;  %v5179_v57 = vunpack.i.l.bf16 %v5178_v53  ;;  %v7678_v7 = vsel %vm2775_vm3, %v10442_v55, %v5184_v2  ;;  %v7682_v14 = vsel %vm2775_vm3, %v10444_v41, %v5185_v13  ;;  %v361_v13 = vld [vmem:[%s10193_s0 + $0xf1] sm:$0xff]  ;;  %v362_v2 = vld [vmem:[%s10193_s0 + $0xf9] sm:$0xff] }
 0x12a   :  { %5472 = vrot.lane.b32.xlu1 %v7644_v54, %s6071_s17  ;;  %10443 = vst [vmem:[#allocation20_spill] sm:$0xff] %v7678_v7  ;;  %10445 = vst [vmem:[#allocation21_spill] sm:$0xff] %v7682_v14  ;;  %v5193_v41 = vpop.permute.xlu1 %5192  ;;  %v4765_v51 = vunpack.i.h.bf16 %v10464_v0  ;;  %v4764_v30 = vunpack.i.l.bf16 %v10464_v0  ;;  %v4760_v0 = vunpack.i.h.bf16 %v10465_v29 }
 0x12b   :  { %v7694_v45 = vsel %vm2775_vm3, %v7307_v44, %v5179_v57  ;;  %v7698_v25 = vsel %vm2775_vm3, %v7310_v9, %v5180_v37  ;;  %v5195_v53 = vunpack.i.h.bf16 %v5193_v41  ;;  %v5194_v55 = vunpack.i.l.bf16 %v5193_v41 }
 0x12c   :  { %5467 = vrot.lane.b32.xlu0 %v7527_v21, %s6071_s17  ;;  %10446 = vst [vmem:[#allocation28_spill] sm:$0xff] %v7694_v45  ;;  %10447 = vst [vmem:[#allocation29_spill] sm:$0xff] %v7698_v25  ;;  %v5188_v14 = vpop.permute.xlu0 %5187  ;;  %v5491_v44 = vpack.i.bf16 %v364_v20, %v363_v47  ;;  %v5486_v57 = vpack.i.bf16 %v362_v2, %v361_v13  ;;  %v4457_v20 = vld [vmem:[%s10193_s0 + $0x128] sm:$0xff] }
 0x12d   :  { %v5190_v7 = vunpack.i.h.bf16 %v5188_v14  ;;  %v5189_v49 = vunpack.i.l.bf16 %v5188_v14  ;;  %v7710_v9 = vsel %vm2775_vm3, %v7325_v52, %v5194_v55  ;;  %v7714_v37 = vsel %vm2775_vm3, %v7328_v60, %v5195_v53  ;;  %v4458_v14 = vld [vmem:[%s10193_s0 + $0x138] sm:$0xff] }
 0x12e   :  { %5482 = vrot.lane.b32.xlu1 %v7527_v21, %s6072_s19  ;;  %10448 = vst [vmem:[#allocation24_spill] sm:$0xff] %v7710_v9  ;;  %10449 = vst [vmem:[#allocation25_spill] sm:$0xff] %v7714_v37  ;;  %v4459_v21 = vld [vmem:[%s10193_s0 + $0x140] sm:$0xff]  ;;  %v5203_v47 = vpop.permute.xlu1 %5202 }
 0x12f   :  { %v7726_v52 = vsel %vm2775_vm3, %v7339_v32, %v5189_v49  ;;  %v7730_v60 = vsel %vm2775_vm3, %v7342_v39, %v5190_v7  ;;  %v5205_v41 = vunpack.i.h.bf16 %v5203_v47  ;;  %v5204_v13 = vunpack.i.l.bf16 %v5203_v47  ;;  %v10463_v37 = vld [vmem:[#allocation33_spill] sm:$0xff] }
 0x130   :  { %5477 = vrot.lane.b32.xlu0 %v7538_v58, %s6072_s19  ;;  %10450 = vst [vmem:[#allocation54_spill] sm:$0xff] %v7726_v52  ;;  %10451 = vst [vmem:[#allocation55_spill] sm:$0xff] %v7730_v60  ;;  %v4456_v58 = vld [vmem:[%s10193_s0 + $0x120] sm:$0xff]  ;;  %v5198_v2 = vpop.permute.xlu0 %5197  ;;  %v7739_v32 = vpack.i.bf16 %v4459_v21, %v4458_v14  ;;  %v4745_v9 = vunpack.i.h.bf16 %v10463_v37  ;;  %v4744_v25 = vunpack.i.l.bf16 %v10463_v37  ;;  %v6027_v37 = vld [vmem:[%s10193_s0 + $0x32] sm:$0xff] }
 0x131   :  { %v5200_v53 = vunpack.i.h.bf16 %v5198_v2  ;;  %v5199_v55 = vunpack.i.l.bf16 %v5198_v2  ;;  %v7743_v39 = vsel %vm2775_vm3, %v7363_v15, %v5204_v13  ;;  %v7747_v49 = vsel %vm2775_vm3, %v7366_v18, %v5205_v41  ;;  %v366_v41 = vld [vmem:[%s10193_s0 + $0x129] sm:$0xff] }
 0x132   :  { %5492 = vrot.lane.b32.xlu1 %v5491_v44, %s6069_s14  ;;  %10452 = vst [vmem:[#allocation5_spill] sm:$0xff] %v7743_v39  ;;  %10453 = vst [vmem:[#allocation42_spill] sm:$0xff] %v7747_v49  ;;  %v7750_v7 = vpack.i.bf16 %v4457_v20, %v4456_v58  ;;  %v5213_v14 = vpop.permute.xlu1 %5212  ;;  %v4401_v49 = vld [vmem:[%s10193_s0 + $0x171] sm:$0xff]  ;;  %v6025_v60 = vld [vmem:[%s10193_s0 + $0x62] sm:$0xff]  ;;  %v2649_v38 = vsel %vm2645_vm0, %v6032_v42, %v4745_v9 }
 0x133   :  { %v7754_v47 = vsel %vm2775_vm3, %v7373_v26, %v5199_v55  ;;  %v7758_v44 = vsel %vm2775_vm3, %v7376_v59, %v5200_v53  ;;  %v5215_v21 = vunpack.i.h.bf16 %v5213_v14  ;;  %v5214_v15 = vunpack.i.l.bf16 %v5213_v14  ;;  %v4462_v14 = vld [vmem:[%s10193_s0 + $0x168] sm:$0xff] }
 0x134   :  { %5487 = vrot.lane.b32.xlu0 %v5486_v57, %s6069_s14  ;;  %10454 = vst [vmem:[#allocation43_spill] sm:$0xff] %v7754_v47  ;;  %10455 = vst [vmem:[#allocation44_spill] sm:$0xff] %v7758_v44  ;;  %v5208_v13 = vpop.permute.xlu0 %5207 }
 0x135   :  { %v5210_v2 = vunpack.i.h.bf16 %v5208_v13  ;;  %v5209_v39 = vunpack.i.l.bf16 %v5208_v13  ;;  %v7764_v18 = vsel %vm2775_vm3, %v7391_v19, %v5214_v15  ;;  %v7768_v26 = vsel %vm2775_vm3, %v7394_v48, %v5215_v21  ;;  %v367_v19 = vld [vmem:[%s10193_s0 + $0x139] sm:$0xff]  ;;  %v368_v48 = vld [vmem:[%s10193_s0 + $0x141] sm:$0xff]  ;;  %v4463_v21 = vld [vmem:[%s10193_s0 + $0x170] sm:$0xff] }
 0x136   :  { %5502 = vrot.lane.b32.xlu1 %v7739_v32, %s6070_s1  ;;  %10456 = vst [vmem:[#allocation40_spill] sm:$0xff] %v7764_v18  ;;  %10457 = vst [vmem:[#allocation64_spill] sm:$0xff] %v7768_v26  ;;  %v7780_v58 = vpop.permute.xlu1 %5222  ;;  %v5531_v55 = vpack.i.bf16 %v368_v48, %v367_v19  ;;  %v4460_v13 = vld [vmem:[%s10193_s0 + $0x150] sm:$0xff]  ;;  %v10462_v18 = vld [vmem:[#allocation32_spill] sm:$0xff] }
 0x137   :  { %v7774_v59 = vsel %vm2775_vm3, %v7399_v12, %v5209_v39  ;;  %v7778_v57 = vsel %vm2775_vm3, %v7402_v1, %v5210_v2  ;;  %v365_v1 = vld [vmem:[%s10193_s0 + $0x121] sm:$0xff]  ;;  %v7825_v2 = vpack.i.bf16 %v4463_v21, %v4462_v14  ;;  %v10461_v21 = vld [vmem:[#allocation31_spill] sm:$0xff]  ;;  %v4754_v44 = vunpack.i.l.bf16 %v10462_v18 }
 0x138   :  { %5497 = vrot.lane.b32.xlu0 %v7750_v7, %s6070_s1  ;;  %10458 = vst [vmem:[#allocation65_spill] sm:$0xff] %v7774_v59  ;;  %10459 = vst [vmem:[#allocation66_spill] sm:$0xff] %v7778_v57  ;;  %v7782_v20 = vpop.permute.xlu0 %5217  ;;  %v5526_v39 = vpack.i.bf16 %v366_v41, %v365_v1  ;;  %v10460_v57 = vld [vmem:[#allocation30_spill] sm:$0xff]  ;;  %v4740_v26 = vunpack.i.h.bf16 %v10461_v21 }
 0x139   :  { %v4403_v59 = vld [vmem:[%s10193_s0 + $0x189] sm:$0xff] }
 0x13a   :  { %5512 = vrot.lane.b32.xlu1 %v7750_v7, %s6071_s17  ;;  %v7794_v12 = vpop.permute.xlu1 %5232 }
 0x13c   :  { %5507 = vrot.lane.b32.xlu0 %v7633_v50, %s6071_s17  ;;  %v7802_v53 = vpop.permute.xlu0 %5227 }
 0x13e   :  { %5522 = vrot.lane.b32.xlu1 %v7633_v50, %s6072_s19  ;;  %v7814_v15 = vpop.permute.xlu1 %5242  ;;  %v4461_v50 = vld [vmem:[%s10193_s0 + $0x158] sm:$0xff] }
 0x13f   :  { %v7828_v19 = vpack.i.bf16 %v4461_v50, %v4460_v13  ;;  %v4739_v13 = vunpack.i.l.bf16 %v10461_v21  ;;  %v4402_v50 = vld [vmem:[%s10193_s0 + $0x181] sm:$0xff]  ;;  %v4755_v21 = vunpack.i.h.bf16 %v10462_v18 }
 0x140   :  { %5517 = vrot.lane.b32.xlu0 %v7644_v54, %s6072_s19  ;;  %v7822_v54 = vpop.permute.xlu0 %5237  ;;  %v5571_v10 = vpack.i.bf16 %v4403_v59, %v4402_v50  ;;  %v6028_v59 = vld [vmem:[%s10193_s0 + $0x3a] sm:$0xff] }
 0x141   :  { %v2647_v50 = vsel %vm2645_vm0, %v6028_v59, %v4740_v26  ;;  %v6030_v26 = vld [vmem:[%s10193_s0 + $0x82] sm:$0xff] }
 0x142   :  { %5532 = vrot.lane.b32.xlu1 %v5531_v55, %s6069_s14  ;;  %v7830_v48 = vpop.permute.xlu1 %5252  ;;  %v4749_v55 = vunpack.i.l.bf16 %v10460_v57 }
 0x144   :  { %5527 = vrot.lane.b32.xlu0 %v5526_v39, %s6069_s14  ;;  %v7832_v1 = vpop.permute.xlu0 %5247  ;;  %v4750_v39 = vunpack.i.h.bf16 %v10460_v57  ;;  %v4400_v57 = vld [vmem:[%s10193_s0 + $0x169] sm:$0xff]  ;;  %v7869_v52 = vsel %vm2645_vm0, %v6025_v60, %v4749_v55  ;;  %v2646_v55 = vsel %vm2645_vm0, %v6027_v37, %v4739_v13  ;;  %v10466_v13 = vld [vmem:[#allocation56_spill] sm:$0xff] }
 0x145   :  { %v6026_v60 = vld [vmem:[%s10193_s0 + $0x6a] sm:$0xff]  ;;  %v4905_v37 = vunpack.i.h.bf16 %v10466_v13  ;;  %v4904_v29 = vunpack.i.l.bf16 %v10466_v13 }
 0x146   :  { %5542 = vrot.lane.b32.xlu1 %v7825_v2, %s6070_s1  ;;  %v7838_v41 = vpop.permute.xlu1 %5262  ;;  %v7885_v18 = vsel %vm2645_vm0, %v6026_v60, %v4750_v39  ;;  %v6029_v39 = vld [vmem:[%s10193_s0 + $0x7a] sm:$0xff] }
 0x147   :  { %v7902_v60 = vsel %vm2645_vm0, %v6029_v39, %v4754_v44  ;;  %v7918_v44 = vsel %vm2645_vm0, %v6030_v26, %v4755_v21  ;;  %v10468_v39 = vld [vmem:[#allocation57_spill] sm:$0xff]  ;;  %v6033_v21 = vld [vmem:[%s10193_s0 + $0xaa] sm:$0xff] }
 0x148   :  { %5537 = vrot.lane.b32.xlu0 %v7828_v19, %s6070_s1  ;;  %v7841_v14 = vpop.permute.xlu0 %5257  ;;  %v4900_v13 = vunpack.i.h.bf16 %v10468_v39  ;;  %v4899_v24 = vunpack.i.l.bf16 %v10468_v39  ;;  %v7936_v26 = vsel %vm2645_vm0, %v6033_v21, %v4764_v30  ;;  %v6035_v39 = vld [vmem:[%s10193_s0 + $0x92] sm:$0xff]  ;;  %v6036_v30 = vld [vmem:[%s10193_s0 + $0x9a] sm:$0xff] }
 0x149   :  { %v7948_v42 = vsel %vm2645_vm0, %v6035_v39, %v4759_v17  ;;  %v7955_v9 = vsel %vm2645_vm0, %v6036_v30, %v4760_v0  ;;  %v10470_v21 = vld [vmem:[#allocation36_spill] sm:$0xff]  ;;  %v10471_v39 = vld [vmem:[#allocation37_spill] sm:$0xff]  ;;  %v2714_v30 = vsel %vm2710_vm1, %v2649_v38, %v4905_v37  ;;  %v10473_v37 = vld [vmem:[#allocation59_spill] sm:$0xff] }
 0x14a   :  { %5552 = vrot.lane.b32.xlu1 %v7828_v19, %s6071_s17  ;;  %v7857_v47 = vpop.permute.xlu1 %5272  ;;  %v4466_v17 = vld [vmem:[%s10193_s0 + $0x198] sm:$0xff]  ;;  %v2712_v56 = vsel %vm2710_vm1, %v2647_v50, %v4900_v13  ;;  %v4406_v38 = vld [vmem:[%s10193_s0 + $0x1e1] sm:$0xff]  ;;  %v4404_v50 = vld [vmem:[%s10193_s0 + $0x1c9] sm:$0xff]  ;;  %v2779_v36 = vsel %vm2775_vm3, %v2714_v30, %v5065_v63 }
 0x14b   :  { %v4405_v13 = vld [vmem:[%s10193_s0 + $0x1d1] sm:$0xff] }
 0x14c   :  { %5547 = vrot.lane.b32.xlu0 %v7739_v32, %s6071_s17  ;;  %v7874_v45 = vpop.permute.xlu0 %5267  ;;  %v8003_v35 = vpack.i.bf16 %v4405_v13, %v4404_v50 }
 0x14e   :  { %5562 = vrot.lane.b32.xlu1 %v7739_v32, %s6072_s19  ;;  %v5566_v32 = vpack.i.bf16 %v4401_v49, %v4400_v57  ;;  %v7906_v3 = vpop.permute.xlu1 %5282  ;;  %v369_v49 = vld [vmem:[%s10193_s0 + $0x151] sm:$0xff] }
 0x14f   :  { %10467 = vst [vmem:[#allocation30_spill] sm:$0xff] %v7906_v3  ;;  %v6031_v57 = vld [vmem:[%s10193_s0 + $0x4a] sm:$0xff] }
 0x150   :  { %5557 = vrot.lane.b32.xlu0 %v7750_v7, %s6072_s19  ;;  %v370_v7 = vld [vmem:[%s10193_s0 + $0x159] sm:$0xff]  ;;  %v2648_v59 = vsel %vm2645_vm0, %v6031_v57, %v4744_v25  ;;  %v7926_v43 = vpop.permute.xlu0 %5277 }
 0x151   :  { %10469 = vst [vmem:[#allocation31_spill] sm:$0xff] %v7926_v43  ;;  %v6034_v25 = vld [vmem:[%s10193_s0 + $0xb2] sm:$0xff]  ;;  %v2713_v0 = vsel %vm2710_vm1, %v2648_v59, %v4904_v29  ;;  %v5224_v29 = vunpack.i.l.bf16 %v7780_v58  ;;  %v2777_v43 = vsel %vm2775_vm3, %v2712_v56, %v5060_v4 }
 0x152   :  { %v7942_v57 = vsel %vm2645_vm0, %v6034_v25, %v4765_v51  ;;  %5572 = vrot.lane.b32.xlu1 %v5571_v10, %s6068_s26  ;;  %v5576_v25 = vpack.i.bf16 %v370_v7, %v369_v49  ;;  %v4467_v10 = vld [vmem:[%s10193_s0 + $0x1a0] sm:$0xff]  ;;  %v5293_v40 = vpop.permute.xlu1 %5292  ;;  %v4465_v7 = vld [vmem:[%s10193_s0 + $0x188] sm:$0xff]  ;;  %v2711_v51 = vsel %vm2710_vm1, %v2646_v55, %v4899_v24  ;;  %v2778_v16 = vsel %vm2775_vm3, %v2713_v0, %v5064_v27 }
 0x153   :  { %v4464_v49 = vld [vmem:[%s10193_s0 + $0x180] sm:$0xff]  ;;  %v5591_v24 = vpack.i.bf16 %v4467_v10, %v4466_v17  ;;  %v4407_v55 = vld [vmem:[%s10193_s0 + $0x1e9] sm:$0xff]  ;;  %v5225_v10 = vunpack.i.h.bf16 %v7780_v58  ;;  %v5295_v58 = vunpack.i.h.bf16 %v5293_v40  ;;  %v5294_v3 = vunpack.i.l.bf16 %v5293_v40 }
 0x154   :  { %5567 = vrot.lane.b32.xlu0 %v5566_v32, %s6068_s26  ;;  %v5288_v59 = vpop.permute.xlu0 %5287  ;;  %v8001_v28 = vpack.i.bf16 %v4407_v55, %v4406_v38  ;;  %v2843_v63 = vsel %vm2840_vm4, %v2778_v16, %v5224_v29 }
 0x155   :  { %v5290_v38 = vunpack.i.h.bf16 %v5288_v59  ;;  %v5289_v55 = vunpack.i.l.bf16 %v5288_v59  ;;  %v2844_v30 = vsel %vm2840_vm4, %v2779_v36, %v5225_v10  ;;  %v2908_v59 = vsel %vm2905_vm5, %v2843_v63, %v5294_v3 }
 0x156   :  { %5582 = vrot.lane.b32.xlu1 %v5566_v32, %s6069_s14  ;;  %v5586_v32 = vpack.i.bf16 %v4465_v7, %v4464_v49  ;;  %v5303_v17 = vpop.permute.xlu1 %5302  ;;  %v5219_v49 = vunpack.i.l.bf16 %v7782_v20  ;;  %v2776_v7 = vsel %vm2775_vm3, %v2711_v51, %v5059_v62  ;;  %v2909_v62 = vsel %vm2905_vm5, %v2844_v30, %v5295_v58  ;;  %v373_v30 = vld [vmem:[%s10193_s0 + $0x1b1] sm:$0xff] }
 0x157   :  { %v5305_v50 = vunpack.i.h.bf16 %v5303_v17  ;;  %v5304_v27 = vunpack.i.l.bf16 %v5303_v17 }
 0x158   :  { %5577 = vrot.lane.b32.xlu0 %v5576_v25, %s6069_s14  ;;  %v5298_v8 = vpop.permute.xlu0 %5297  ;;  %v5220_v25 = vunpack.i.h.bf16 %v7782_v20  ;;  %v2841_v51 = vsel %vm2840_vm4, %v2776_v7, %v5219_v49 }
 0x159   :  { %v5300_v20 = vunpack.i.h.bf16 %v5298_v8  ;;  %v5299_v13 = vunpack.i.l.bf16 %v5298_v8  ;;  %v2906_v16 = vsel %vm2905_vm5, %v2841_v51, %v5289_v55  ;;  %v2973_v29 = vsel %vm2970_vm6, %v2908_v59, %v5304_v27  ;;  %v4471_v51 = vld [vmem:[%s10193_s0 + $0x200] sm:$0xff] }
 0x15a   :  { %5592 = vrot.lane.b32.xlu1 %v5591_v24, %s6070_s1  ;;  %v5313_v0 = vpop.permute.xlu1 %5312  ;;  %v2842_v56 = vsel %vm2840_vm4, %v2777_v43, %v5220_v25  ;;  %v2974_v43 = vsel %vm2970_vm6, %v2909_v62, %v5305_v50  ;;  %v10476_v62 = vunpack.i.l.bf16 %v10473_v37 }
 0x15b   :  { %v5315_v4 = vunpack.i.h.bf16 %v5313_v0  ;;  %v5314_v40 = vunpack.i.l.bf16 %v5313_v0  ;;  %v2907_v8 = vsel %vm2905_vm5, %v2842_v56, %v5290_v38  ;;  %v2971_v3 = vsel %vm2970_vm6, %v2906_v16, %v5299_v13 }
 0x15c   :  { %5587 = vrot.lane.b32.xlu0 %v5586_v32, %s6070_s1  ;;  %v5308_v24 = vpop.permute.xlu0 %5307  ;;  %v2972_v49 = vsel %vm2970_vm6, %v2907_v8, %v5300_v20  ;;  %v10474_v56 = vunpack.i.l.bf16 %v10472_v11 }
 0x15d   :  { %v5310_v17 = vunpack.i.h.bf16 %v5308_v24  ;;  %v5309_v22 = vunpack.i.l.bf16 %v5308_v24  ;;  %v3038_v7 = vsel %vm3035_vm7, %v2973_v29, %v5314_v40  ;;  %v3039_v58 = vsel %vm3035_vm7, %v2974_v43, %v5315_v4  ;;  %v4468_v29 = vld [vmem:[%s10193_s0 + $0x1e0] sm:$0xff]  ;;  %v10478_v43 = vld [vmem:[#allocation60_spill] sm:$0xff] }
 0x15e   :  { %5602 = vrot.lane.b32.xlu1 %v5586_v32, %s6071_s17  ;;  %v5323_v10 = vpop.permute.xlu1 %5322  ;;  %v2717_v4 = vsel %vm2710_vm1, %v7902_v60, %v10474_v56  ;;  %v10475_v40 = vunpack.i.h.bf16 %v10472_v11  ;;  %v4469_v60 = vld [vmem:[%s10193_s0 + $0x1e8] sm:$0xff] }
 0x15f   :  { %v5325_v36 = vunpack.i.h.bf16 %v5323_v10  ;;  %v5324_v32 = vunpack.i.l.bf16 %v5323_v10  ;;  %v3036_v27 = vsel %vm3035_vm7, %v2971_v3, %v5309_v22  ;;  %v3037_v63 = vsel %vm3035_vm7, %v2972_v49, %v5310_v17  ;;  %v4470_v22 = vld [vmem:[%s10193_s0 + $0x1f8] sm:$0xff]  ;;  %v4532_v11 = vld [vmem:[%s10193_s0 + $0x1c8] sm:$0xff] }
 0x160   :  { %5597 = vrot.lane.b32.xlu0 %v7825_v2, %s6071_s17  ;;  %v2718_v59 = vsel %vm2710_vm1, %v7918_v44, %v10475_v40  ;;  %v2715_v17 = vsel %vm2710_vm1, %v7869_v52, %v10476_v62  ;;  %v10477_v44 = vunpack.i.h.bf16 %v10473_v37  ;;  %v4925_v10 = vunpack.i.h.bf16 %v10478_v43  ;;  %v8092_v37 = vld [vmem:[%s10193_s0 + $0x1b0] sm:$0xff] }
 0x161   :  { %v5318_v25 = vpop.permute.xlu0 %5317  ;;  %v3103_v38 = vsel %vm3100_vm8, %v3038_v7, %v5324_v32  ;;  %v3104_v50 = vsel %vm3100_vm8, %v3039_v58, %v5325_v36  ;;  %v5075_v36 = vunpack.i.h.bf16 %v7418_v6  ;;  %v5074_v32 = vunpack.i.l.bf16 %v7418_v6  ;;  %v10479_v58 = vld [vmem:[#allocation61_spill] sm:$0xff] }
 0x162   :  { %v5320_v0 = vunpack.i.h.bf16 %v5318_v25  ;;  %v5319_v55 = vunpack.i.l.bf16 %v5318_v25  ;;  %5612 = vrot.lane.b32.xlu1 %v7825_v2, %s6072_s19  ;;  %v3166_v24 = vpack.c.bf16 %v3104_v50, %v3103_v38  ;;  %v2716_v52 = vsel %vm2710_vm1, %v7885_v18, %v10477_v44  ;;  %v4533_v25 = vld [vmem:[%s10193_s0 + $0x1d0] sm:$0xff]  ;;  %v8097_v18 = vld [vmem:[%s10193_s0 + $0x1b8] sm:$0xff] }
 0x163   :  { %v4924_v3 = vunpack.i.l.bf16 %v10478_v43  ;;  %v5070_v6 = vunpack.i.h.bf16 %v7426_v31  ;;  %v5069_v49 = vunpack.i.l.bf16 %v7426_v31  ;;  %v8108_v50 = vpack.i.bf16 %v4471_v51, %v4470_v22 }
 0x164   :  { %5607 = vrot.lane.b32.xlu0 %v7828_v19, %s6072_s19  ;;  %v8041_v20 = vpop.permute.xlu1 %5332  ;;  %v3101_v13 = vsel %vm3100_vm8, %v3036_v27, %v5319_v55  ;;  %v3102_v2 = vsel %vm3100_vm8, %v3037_v63, %v5320_v0  ;;  %v374_v19 = vld [vmem:[%s10193_s0 + $0x1b9] sm:$0xff]  ;;  %v4920_v0 = vunpack.i.h.bf16 %v10479_v58  ;;  %v4919_v55 = vunpack.i.l.bf16 %v10479_v58 }
 0x165   :  { %v3165_v8 = vpack.c.bf16 %v3102_v2, %v3101_v13  ;;  %v5626_v7 = vpack.i.bf16 %v374_v19, %v373_v30  ;;  %v8110_v27 = vpack.i.bf16 %v4469_v60, %v4468_v29  ;;  %v5235_v63 = vunpack.i.h.bf16 %v7794_v12 }
 0x166   :  { %v8066_v16 = vpop.permute.xlu0 %5327  ;;  %5622 = vrot.lane.b32.xlu1 %v8001_v28, %s6068_s26  ;;  %v5234_v31 = vunpack.i.l.bf16 %v7794_v12  ;;  %v8114_v2 = vpack.i.bf16 %v4533_v25, %v4532_v11  ;;  %v5656_v30 = vpack.i.bf16 %v8097_v18, %v8092_v37  ;;  %v2782_v19 = vsel %vm2775_vm3, %v2717_v4, %v5074_v32 }
 0x167   :  { %4650 = vmatprep.mubr.msk.bf16.mxu0 %vm3233_vm9, %v3165_v8  ;;  %v2783_v56 = vsel %vm2775_vm3, %v2718_v59, %v5075_v36  ;;  %v5229_v22 = vunpack.i.l.bf16 %v7802_v53  ;;  %v2780_v51 = vsel %vm2775_vm3, %v2715_v17, %v5069_v49  ;;  %v2781_v12 = vsel %vm2775_vm3, %v2716_v52, %v5070_v6 }
 0x168   :  { %5617 = vrot.lane.b32.xlu0 %v8003_v35, %s6068_s26  ;;  %4651 = vmatmul.mubr.msk.bf16.vlgmr.msra.gmra.mrb[0].mxu0 %vm3233_vm9, %v3166_v24  ;;  %v5343_v38 = vpop.permute.xlu1 %5342  ;;  %v5230_v24 = vunpack.i.h.bf16 %v7802_v53  ;;  %v5335_v40 = vunpack.i.h.bf16 %v8041_v20  ;;  %v5334_v62 = vunpack.i.l.bf16 %v8041_v20  ;;  %v5330_v4 = vunpack.i.h.bf16 %v8066_v16 }
 0x169   :  { %v5329_v59 = vunpack.i.l.bf16 %v8066_v16  ;;  %v5345_v8 = vunpack.i.h.bf16 %v5343_v38  ;;  %v5344_v29 = vunpack.i.l.bf16 %v5343_v38  ;;  %v2847_v60 = vsel %vm2840_vm4, %v2782_v19, %v5234_v31 }
 0x16a   :  { %v5338_v13 = vpop.permute.xlu0 %5337  ;;  %5632 = vrot.lane.b32.xlu1 %v8003_v35, %s6069_s14  ;;  %v2848_v35 = vsel %vm2840_vm4, %v2783_v56, %v5235_v63  ;;  %v2845_v52 = vsel %vm2840_vm4, %v2780_v51, %v5229_v22  ;;  %v2846_v20 = vsel %vm2840_vm4, %v2781_v12, %v5230_v24  ;;  %v2912_v16 = vsel %vm2905_vm5, %v2847_v60, %v5334_v62  ;;  %v4410_v60 = vld [vmem:[%s10193_s0 + $0x211] sm:$0xff] }
 0x16b   :  { %v5340_v17 = vunpack.i.h.bf16 %v5338_v13  ;;  %v5339_v11 = vunpack.i.l.bf16 %v5338_v13  ;;  %v2913_v25 = vsel %vm2905_vm5, %v2848_v35, %v5335_v40  ;;  %v2911_v38 = vsel %vm2905_vm5, %v2846_v20, %v5330_v4  ;;  %v4411_v35 = vld [vmem:[%s10193_s0 + $0x219] sm:$0xff] }
 0x16c   :  { %5627 = vrot.lane.b32.xlu0 %v5626_v7, %s6069_s14  ;;  %v5353_v53 = vpop.permute.xlu1 %5352  ;;  %v2910_v7 = vsel %vm2905_vm5, %v2845_v52, %v5329_v59  ;;  %v2977_v63 = vsel %vm2970_vm6, %v2912_v16, %v5344_v29  ;;  %v2978_v31 = vsel %vm2970_vm6, %v2913_v25, %v5345_v8  ;;  %v2721_v16 = vsel %vm2710_vm1, %v7936_v26, %v4924_v3 }
 0x16d   :  { %v5355_v36 = vunpack.i.h.bf16 %v5353_v53  ;;  %v5354_v32 = vunpack.i.l.bf16 %v5353_v53  ;;  %v2975_v19 = vsel %vm2970_vm6, %v2910_v7, %v5339_v11  ;;  %v2976_v56 = vsel %vm2970_vm6, %v2911_v38, %v5340_v17  ;;  %v4474_v38 = vld [vmem:[%s10193_s0 + $0x228] sm:$0xff] }
 0x16e   :  { %v5348_v44 = vpop.permute.xlu0 %5347  ;;  %5642 = vrot.lane.b32.xlu1 %v8108_v50, %s6070_s1  ;;  %v4769_v17 = vunpack.i.l.bf16 %v10471_v39  ;;  %v2722_v25 = vsel %vm2710_vm1, %v7942_v57, %v4925_v10  ;;  %v2719_v26 = vsel %vm2710_vm1, %v7948_v42, %v4919_v55  ;;  %v5085_v43 = vunpack.i.h.bf16 %v7438_v33  ;;  %v10480_v57 = vld [vmem:[#allocation45_spill] sm:$0xff]  ;;  %v10481_v42 = vld [vmem:[#allocation62_spill] sm:$0xff] }
 0x16f   :  { %v5350_v6 = vunpack.i.h.bf16 %v5348_v44  ;;  %v5349_v49 = vunpack.i.l.bf16 %v5348_v44  ;;  %v3042_v12 = vsel %vm3035_vm7, %v2977_v63, %v5354_v32  ;;  %v3043_v40 = vsel %vm3035_vm7, %v2978_v31, %v5355_v36  ;;  %v4408_v36 = vld [vmem:[%s10193_s0 + $0x1f9] sm:$0xff]  ;;  %v4409_v32 = vld [vmem:[%s10193_s0 + $0x201] sm:$0xff]  ;;  %v4475_v63 = vld [vmem:[%s10193_s0 + $0x230] sm:$0xff] }
 0x170   :  { %5637 = vrot.lane.b32.xlu0 %v8110_v27, %s6070_s1  ;;  %v5363_v13 = vpop.permute.xlu1 %5362  ;;  %v5079_v10 = vunpack.i.l.bf16 %v10480_v57  ;;  %v8197_v3 = vpack.i.bf16 %v4411_v35, %v4410_v60  ;;  %v4472_v31 = vld [vmem:[%s10193_s0 + $0x210] sm:$0xff]  ;;  %v4935_v55 = vunpack.i.h.bf16 %v10481_v42  ;;  %v5244_v37 = vunpack.i.l.bf16 %v7814_v15 }
 0x171   :  { %v5365_v24 = vunpack.i.h.bf16 %v5363_v13  ;;  %v5364_v22 = vunpack.i.l.bf16 %v5363_v13  ;;  %v3040_v4 = vsel %vm3035_vm7, %v2975_v19, %v5349_v49  ;;  %v3041_v8 = vsel %vm3035_vm7, %v2976_v56, %v5350_v6  ;;  %v4473_v13 = vld [vmem:[%s10193_s0 + $0x218] sm:$0xff] }
 0x172   :  { %v5358_v51 = vpop.permute.xlu0 %5357  ;;  %5652 = vrot.lane.b32.xlu1 %v8110_v27, %s6071_s17  ;;  %v5084_v6 = vunpack.i.l.bf16 %v7438_v33  ;;  %v2720_v33 = vsel %vm2710_vm1, %v7955_v9, %v4920_v0  ;;  %v5080_v19 = vunpack.i.h.bf16 %v10480_v57  ;;  %v4934_v56 = vunpack.i.l.bf16 %v10481_v42 }
 0x173   :  { %v5360_v62 = vunpack.i.h.bf16 %v5358_v51  ;;  %v5359_v59 = vunpack.i.l.bf16 %v5358_v51  ;;  %v3107_v29 = vsel %vm3100_vm8, %v3042_v12, %v5364_v22  ;;  %v3108_v53 = vsel %vm3100_vm8, %v3043_v40, %v5365_v24  ;;  %v10482_v24 = vld [vmem:[#allocation63_spill] sm:$0xff] }
 0x174   :  { %5647 = vrot.lane.b32.xlu0 %v8114_v2, %s6071_s17  ;;  %v8166_v52 = vpop.permute.xlu1 %5372  ;;  %v3168_v20 = vpack.c.bf16 %v3108_v53, %v3107_v29  ;;  %v4930_v22 = vunpack.i.h.bf16 %v10482_v24  ;;  %v4929_v58 = vunpack.i.l.bf16 %v10482_v24  ;;  %v8220_v0 = vpack.i.bf16 %v4475_v63, %v4474_v38  ;;  %v10483_v29 = vld [vmem:[#allocation38_spill] sm:$0xff] }
 0x175   :  { %v3105_v11 = vsel %vm3100_vm8, %v3040_v4, %v5359_v59  ;;  %v3106_v44 = vsel %vm3100_vm8, %v3041_v8, %v5360_v62  ;;  %v2786_v51 = vsel %vm2775_vm3, %v2721_v16, %v5084_v6  ;;  %v5245_v12 = vunpack.i.h.bf16 %v7814_v15  ;;  %v4477_v24 = vld [vmem:[%s10193_s0 + $0x248] sm:$0xff] }
 0x176   :  { %v5368_v49 = vpop.permute.xlu0 %5367  ;;  %v3167_v7 = vpack.c.bf16 %v3106_v44, %v3105_v11  ;;  %5662 = vrot.lane.b32.xlu1 %v8114_v2, %s6072_s19  ;;  %v5666_v2 = vpack.i.bf16 %v4409_v32, %v4408_v36  ;;  %v2787_v40 = vsel %vm2775_vm3, %v2722_v25, %v5085_v43  ;;  %v2784_v62 = vsel %vm2775_vm3, %v2719_v26, %v5079_v10 }
 0x177   :  { %v5240_v59 = vunpack.i.h.bf16 %v7822_v54  ;;  %v5239_v4 = vunpack.i.l.bf16 %v7822_v54  ;;  %v2785_v8 = vsel %vm2775_vm3, %v2720_v33, %v5080_v19  ;;  %v5095_v53 = vunpack.i.h.bf16 %v10483_v29 }
 0x178   :  { %5657 = vrot.lane.b32.xlu0 %v5656_v30, %s6072_s19  ;;  %4654 = vmatprep.mubr.msk.bf16.mxu0 %vm3233_vm9, %v3167_v7  ;;  %v5383_v9 = vpop.permute.xlu1 %5382  ;;  %v8225_v30 = vpack.i.bf16 %v4473_v13, %v4472_v31  ;;  %v5375_v15 = vunpack.i.h.bf16 %v8166_v52  ;;  %v5374_v60 = vunpack.i.l.bf16 %v8166_v52  ;;  %v5370_v35 = vunpack.i.h.bf16 %v5368_v49 }
 0x179   :  { %4655 = vmatmul.mubr.msk.bf16.gmra.mrb[4].mxu0 %vm3233_vm9, %v3168_v20  ;;  %v5369_v11 = vunpack.i.l.bf16 %v5368_v49  ;;  %v5385_v44 = vunpack.i.h.bf16 %v5383_v9  ;;  %v5384_v20 = vunpack.i.l.bf16 %v5383_v9  ;;  %v2851_v54 = vsel %vm2840_vm4, %v2786_v51, %v5244_v37 }
 0x17a   :  { %v5378_v18 = vpop.permute.xlu0 %5377  ;;  %5672 = vrot.lane.b32.xlu1 %v8197_v3, %s6068_s26  ;;  %v2852_v32 = vsel %vm2840_vm4, %v2787_v40, %v5245_v12  ;;  %v2849_v7 = vsel %vm2840_vm4, %v2784_v62, %v5239_v4  ;;  %v2850_v38 = vsel %vm2840_vm4, %v2785_v8, %v5240_v59  ;;  %v2916_v49 = vsel %vm2905_vm5, %v2851_v54, %v5374_v60 }
 0x17b   :  { %v5380_v16 = vunpack.i.h.bf16 %v5378_v18  ;;  %v5379_v25 = vunpack.i.l.bf16 %v5378_v18  ;;  %v2917_v26 = vsel %vm2905_vm5, %v2852_v32, %v5375_v15  ;;  %v2914_v10 = vsel %vm2905_vm5, %v2849_v7, %v5369_v11 }
 0x17c   :  { %5667 = vrot.lane.b32.xlu0 %v5666_v2, %s6068_s26  ;;  %v5393_v36 = vpop.permute.xlu1 %5392  ;;  %v2915_v31 = vsel %vm2905_vm5, %v2850_v38, %v5370_v35  ;;  %v2981_v13 = vsel %vm2970_vm6, %v2916_v49, %v5384_v20  ;;  %v2982_v33 = vsel %vm2970_vm6, %v2917_v26, %v5385_v44  ;;  %v5094_v60 = vunpack.i.l.bf16 %v10483_v29  ;;  %v6039_v26 = vld [vmem:[%s10193_s0 + $0xc2] sm:$0xff] }
 0x17d   :  { %v5395_v63 = vunpack.i.h.bf16 %v5393_v36  ;;  %v5394_v52 = vunpack.i.l.bf16 %v5393_v36  ;;  %v2980_v9 = vsel %vm2970_vm6, %v2915_v31, %v5380_v16  ;;  %v10484_v36 = vld [vmem:[#allocation10_spill] sm:$0xff]  ;;  %v10485_v7 = vunpack.i.l.bf16 %v10470_v21 }
 0x17e   :  { %v5388_v6 = vpop.permute.xlu0 %5387  ;;  %5682 = vrot.lane.b32.xlu1 %v5666_v2, %s6069_s14  ;;  %v2979_v2 = vsel %vm2970_vm6, %v2914_v10, %v5379_v25  ;;  %v5090_v54 = vunpack.i.h.bf16 %v10484_v36  ;;  %v5089_v32 = vunpack.i.l.bf16 %v10484_v36  ;;  %v6040_v10 = vld [vmem:[%s10193_s0 + $0xca] sm:$0xff]  ;;  %v10487_v31 = vunpack.i.h.bf16 %v10471_v39 }
 0x17f   :  { %v5390_v43 = vunpack.i.h.bf16 %v5388_v6  ;;  %v5389_v57 = vunpack.i.l.bf16 %v5388_v6  ;;  %v3046_v18 = vsel %vm3035_vm7, %v2981_v13, %v5394_v52  ;;  %v6037_v6 = vld [vmem:[%s10193_s0 + $0xda] sm:$0xff]  ;;  %v10486_v52 = vunpack.i.h.bf16 %v10470_v21  ;;  %v4415_v21 = vld [vmem:[%s10193_s0 + $0x249] sm:$0xff]  ;;  %v4413_v39 = vld [vmem:[%s10193_s0 + $0x231] sm:$0xff] }
 0x180   :  { %5677 = vrot.lane.b32.xlu0 %v8001_v28, %s6069_s14  ;;  %v5403_v19 = vpop.permute.xlu1 %5402  ;;  %v3047_v28 = vsel %vm3035_vm7, %v2982_v33, %v5395_v63  ;;  %v2660_v38 = vsel %vm2645_vm0, %v6037_v6, %v10485_v7  ;;  %v6038_v63 = vld [vmem:[%s10193_s0 + $0xe2] sm:$0xff]  ;;  %v2659_v13 = vsel %vm2645_vm0, %v6040_v10, %v10487_v31 }
 0x181   :  { %v5405_v51 = vunpack.i.h.bf16 %v5403_v19  ;;  %v5404_v12 = vunpack.i.l.bf16 %v5403_v19  ;;  %v3044_v59 = vsel %vm3035_vm7, %v2979_v2, %v5389_v57  ;;  %v3045_v4 = vsel %vm3035_vm7, %v2980_v9, %v5390_v43  ;;  %v4414_v57 = vld [vmem:[%s10193_s0 + $0x241] sm:$0xff]  ;;  %v4412_v19 = vld [vmem:[%s10193_s0 + $0x229] sm:$0xff] }
 0x182   :  { %v5398_v37 = vpop.permute.xlu0 %5397  ;;  %5692 = vrot.lane.b32.xlu1 %v8220_v0, %s6070_s1  ;;  %v2661_v49 = vsel %vm2645_vm0, %v6038_v63, %v10486_v52  ;;  %v2658_v43 = vsel %vm2645_vm0, %v6039_v26, %v4769_v17  ;;  %v2725_v17 = vsel %vm2710_vm1, %v2660_v38, %v4934_v56  ;;  %v4478_v56 = vld [vmem:[%s10193_s0 + $0x258] sm:$0xff] }
 0x183   :  { %v5400_v40 = vunpack.i.h.bf16 %v5398_v37  ;;  %v5399_v62 = vunpack.i.l.bf16 %v5398_v37  ;;  %v3111_v8 = vsel %vm3100_vm8, %v3046_v18, %v5404_v12  ;;  %v3112_v15 = vsel %vm3100_vm8, %v3047_v28, %v5405_v51  ;;  %v4479_v12 = vld [vmem:[%s10193_s0 + $0x260] sm:$0xff] }
 0x184   :  { %5687 = vrot.lane.b32.xlu0 %v8225_v30, %s6070_s1  ;;  %v8266_v44 = vpop.permute.xlu1 %5412  ;;  %v3170_v20 = vpack.c.bf16 %v3112_v15, %v3111_v8  ;;  %v2726_v33 = vsel %vm2710_vm1, %v2661_v49, %v4935_v55  ;;  %v2723_v42 = vsel %vm2710_vm1, %v2658_v43, %v4929_v58  ;;  %v2724_v55 = vsel %vm2710_vm1, %v2659_v13, %v4930_v22  ;;  %v4476_v58 = vld [vmem:[%s10193_s0 + $0x240] sm:$0xff] }
 0x185   :  { %v3109_v35 = vsel %vm3100_vm8, %v3044_v59, %v5399_v62  ;;  %v3110_v11 = vsel %vm3100_vm8, %v3045_v4, %v5400_v40  ;;  %v2790_v2 = vsel %vm2775_vm3, %v2725_v17, %v5094_v60  ;;  %v2791_v9 = vsel %vm2775_vm3, %v2726_v33, %v5095_v53 }
 0x186   :  { %v8270_v16 = vpop.permute.xlu0 %5407  ;;  %v3169_v25 = vpack.c.bf16 %v3110_v11, %v3109_v35  ;;  %5702 = vrot.lane.b32.xlu1 %v8225_v30, %s6071_s17  ;;  %v2788_v22 = vsel %vm2775_vm3, %v2723_v42, %v5089_v32  ;;  %v2789_v29 = vsel %vm2775_vm3, %v2724_v55, %v5090_v54  ;;  %v5255_v53 = vunpack.i.h.bf16 %v7830_v48 }
 0x187   :  { %v5254_v37 = vunpack.i.l.bf16 %v7830_v48  ;;  %v5250_v28 = vunpack.i.h.bf16 %v7832_v1  ;;  %v5249_v40 = vunpack.i.l.bf16 %v7832_v1  ;;  %v8350_v62 = vpack.i.bf16 %v4415_v21, %v4414_v57 }
 0x188   :  { %5697 = vrot.lane.b32.xlu0 %v8108_v50, %s6071_s17  ;;  %4658 = vmatprep.mubr.msk.bf16.mxu0 %vm3233_vm9, %v3169_v25  ;;  %v5423_v51 = vpop.permute.xlu1 %5422  ;;  %v5716_v59 = vpack.i.bf16 %v4413_v39, %v4412_v19  ;;  %v5415_v4 = vunpack.i.h.bf16 %v8266_v44  ;;  %v5414_v8 = vunpack.i.l.bf16 %v8266_v44  ;;  %v8356_v15 = vpack.i.bf16 %v4479_v12, %v4478_v56 }
 0x189   :  { %4659 = vmatmul.mubr.msk.bf16.gmra.mrb[8].mxu0 %vm3233_vm9, %v3170_v20  ;;  %v8358_v48 = vpack.i.bf16 %v4477_v24, %v4476_v58  ;;  %v5410_v60 = vunpack.i.h.bf16 %v8270_v16  ;;  %v5409_v1 = vunpack.i.l.bf16 %v8270_v16  ;;  %v5425_v35 = vunpack.i.h.bf16 %v5423_v51 }
 0x18a   :  { %v5418_v18 = vpop.permute.xlu0 %5417  ;;  %5712 = vrot.lane.b32.xlu1 %v8108_v50, %s6072_s19  ;;  %v5424_v50 = vunpack.i.l.bf16 %v5423_v51  ;;  %v2855_v20 = vsel %vm2840_vm4, %v2790_v2, %v5254_v37  ;;  %v2856_v36 = vsel %vm2840_vm4, %v2791_v9, %v5255_v53  ;;  %v2854_v25 = vsel %vm2840_vm4, %v2789_v29, %v5250_v28  ;;  %v4416_v28 = vld [vmem:[%s10193_s0 + $0x259] sm:$0xff] }
 0x18b   :  { %v5420_v54 = vunpack.i.h.bf16 %v5418_v18  ;;  %v5419_v44 = vunpack.i.l.bf16 %v5418_v18  ;;  %v2920_v16 = vsel %vm2905_vm5, %v2855_v20, %v5414_v8  ;;  %v2921_v38 = vsel %vm2905_vm5, %v2856_v36, %v5415_v4  ;;  %v4419_v18 = vld [vmem:[%s10193_s0 + $0x279] sm:$0xff] }
 0x18c   :  { %5707 = vrot.lane.b32.xlu0 %v8110_v27, %s6072_s19  ;;  %v5433_v11 = vpop.permute.xlu1 %5432  ;;  %v2853_v27 = vsel %vm2840_vm4, %v2788_v22, %v5249_v40  ;;  %v2919_v26 = vsel %vm2905_vm5, %v2854_v25, %v5410_v60  ;;  %v2985_v43 = vsel %vm2970_vm6, %v2920_v16, %v5424_v50  ;;  %v2986_v57 = vsel %vm2970_vm6, %v2921_v38, %v5425_v35  ;;  %v4417_v40 = vld [vmem:[%s10193_s0 + $0x261] sm:$0xff] }
 0x18d   :  { %v5435_v6 = vunpack.i.h.bf16 %v5433_v11  ;;  %v5434_v7 = vunpack.i.l.bf16 %v5433_v11  ;;  %v2918_v49 = vsel %vm2905_vm5, %v2853_v27, %v5409_v1  ;;  %v2984_v31 = vsel %vm2970_vm6, %v2919_v26, %v5420_v54  ;;  %v10488_v27 = vld [vmem:[#allocation11_spill] sm:$0xff] }
 0x18e   :  { %v5428_v32 = vpop.permute.xlu0 %5427  ;;  %5722 = vrot.lane.b32.xlu1 %v8350_v62, %s6068_s26  ;;  %v2983_v10 = vsel %vm2970_vm6, %v2918_v49, %v5419_v44  ;;  %v5264_v4 = vunpack.i.l.bf16 %v7838_v41  ;;  %v5260_v60 = vunpack.i.h.bf16 %v7841_v14  ;;  %v5259_v1 = vunpack.i.l.bf16 %v7841_v14  ;;  %v10489_v14 = vld [vmem:[#allocation6_spill] sm:$0xff] }
 0x18f   :  { %v5430_v63 = vunpack.i.h.bf16 %v5428_v32  ;;  %v5429_v52 = vunpack.i.l.bf16 %v5428_v32  ;;  %v3050_v19 = vsel %vm3035_vm7, %v2985_v43, %v5434_v7  ;;  %v3051_v39 = vsel %vm3035_vm7, %v2986_v57, %v5435_v6 }
 0x190   :  { %5717 = vrot.lane.b32.xlu0 %v5716_v59, %s6068_s26  ;;  %v5443_v21 = vpop.permute.xlu1 %5442  ;;  %v5766_v20 = vpack.i.bf16 %v4417_v40, %v4416_v28  ;;  %v2859_v25 = vsel %vm2840_vm4, %v10488_v27, %v5264_v4  ;;  %v4481_v28 = vld [vmem:[%s10193_s0 + $0x278] sm:$0xff] }
 0x191   :  { %v5445_v13 = vunpack.i.h.bf16 %v5443_v21  ;;  %v5444_v17 = vunpack.i.l.bf16 %v5443_v21  ;;  %v3048_v55 = vsel %vm3035_vm7, %v2983_v10, %v5429_v52  ;;  %v3049_v2 = vsel %vm3035_vm7, %v2984_v31, %v5430_v63 }
 0x192   :  { %v5438_v33 = vpop.permute.xlu0 %5437  ;;  %5732 = vrot.lane.b32.xlu1 %v5716_v59, %s6069_s14  ;;  %v5265_v59 = vunpack.i.h.bf16 %v7838_v41  ;;  %v2857_v63 = vsel %vm2840_vm4, %v7482_v5, %v5259_v1  ;;  %v2858_v52 = vsel %vm2840_vm4, %v7486_v46, %v5260_v60  ;;  %v4422_v60 = vld [vmem:[%s10193_s0 + $0x2a1] sm:$0xff] }
 0x193   :  { %v5440_v56 = vunpack.i.h.bf16 %v5438_v33  ;;  %v5439_v42 = vunpack.i.l.bf16 %v5438_v33  ;;  %v3115_v9 = vsel %vm3100_vm8, %v3050_v19, %v5444_v17  ;;  %v3116_v51 = vsel %vm3100_vm8, %v3051_v39, %v5445_v13 }
 0x194   :  { %5727 = vrot.lane.b32.xlu0 %v8197_v3, %s6069_s14  ;;  %v5453_v24 = vpop.permute.xlu1 %5452  ;;  %v3172_v22 = vpack.c.bf16 %v3116_v51, %v3115_v9  ;;  %v4418_v3 = vld [vmem:[%s10193_s0 + $0x271] sm:$0xff]  ;;  %v2860_v6 = vsel %vm2840_vm4, %v10489_v14, %v5265_v59 }
 0x195   :  { %v3113_v12 = vsel %vm3100_vm8, %v3048_v55, %v5439_v42  ;;  %v3114_v58 = vsel %vm3100_vm8, %v3049_v2, %v5440_v56  ;;  %v5455_v35 = vunpack.i.h.bf16 %v5453_v24  ;;  %v5454_v50 = vunpack.i.l.bf16 %v5453_v24  ;;  %v4482_v24 = vld [vmem:[%s10193_s0 + $0x288] sm:$0xff] }
 0x196   :  { %v5448_v29 = vpop.permute.xlu0 %5447  ;;  %v3171_v53 = vpack.c.bf16 %v3114_v58, %v3113_v12  ;;  %5742 = vrot.lane.b32.xlu1 %v8356_v15, %s6070_s1  ;;  %v8414_v11 = vpack.i.bf16 %v4419_v18, %v4418_v3  ;;  %v4480_v18 = vld [vmem:[%s10193_s0 + $0x270] sm:$0xff] }
 0x197   :  { %v5450_v36 = vunpack.i.h.bf16 %v5448_v29  ;;  %v5449_v54 = vunpack.i.l.bf16 %v5448_v29  ;;  %v2924_v43 = vsel %vm2905_vm5, %v2859_v25, %v5454_v50  ;;  %v2925_v57 = vsel %vm2905_vm5, %v2860_v6, %v5455_v35  ;;  %v4423_v35 = vld [vmem:[%s10193_s0 + $0x2a9] sm:$0xff] }
 0x198   :  { %5737 = vrot.lane.b32.xlu0 %v8358_v48, %s6070_s1  ;;  %4662 = vmatprep.mubr.msk.bf16.mxu0 %vm3233_vm9, %v3171_v53  ;;  %v5463_v37 = vpop.permute.xlu1 %5462  ;;  %v4420_v50 = vld [vmem:[%s10193_s0 + $0x289] sm:$0xff]  ;;  %v8488_v25 = vpack.i.bf16 %v4423_v35, %v4422_v60 }
 0x199   :  { %4663 = vmatmul.mubr.msk.bf16.gmra.mrb[12].mxu0 %vm3233_vm9, %v3172_v22  ;;  %v5465_v44 = vunpack.i.h.bf16 %v5463_v37  ;;  %v5464_v41 = vunpack.i.l.bf16 %v5463_v37  ;;  %v2922_v31 = vsel %vm2905_vm5, %v2857_v63, %v5449_v54  ;;  %v2923_v5 = vsel %vm2905_vm5, %v2858_v52, %v5450_v36  ;;  %v4483_v22 = vld [vmem:[%s10193_s0 + $0x290] sm:$0xff]  ;;  %v4485_v60 = vld [vmem:[%s10193_s0 + $0x2a8] sm:$0xff] }
 0x19a   :  { %v5458_v8 = vpop.permute.xlu0 %5457  ;;  %5752 = vrot.lane.b32.xlu1 %v8358_v48, %s6071_s17  ;;  %v8460_v4 = vpack.i.bf16 %v4483_v22, %v4482_v24  ;;  %v5274_v36 = vunpack.i.l.bf16 %v7857_v47 }
 0x19b   :  { %v5460_v7 = vunpack.i.h.bf16 %v5458_v8  ;;  %v5459_v16 = vunpack.i.l.bf16 %v5458_v8  ;;  %v2989_v46 = vsel %vm2970_vm6, %v2924_v43, %v5464_v41  ;;  %v2990_v13 = vsel %vm2970_vm6, %v2925_v57, %v5465_v44  ;;  %v10490_v57 = vld [vmem:[#allocation7_spill] sm:$0xff] }
 0x19c   :  { %5747 = vrot.lane.b32.xlu0 %v8220_v0, %s6071_s17  ;;  %v5473_v32 = vpop.permute.xlu1 %5472  ;;  %v8465_v8 = vpack.i.bf16 %v4481_v28, %v4480_v18  ;;  %v5270_v44 = vunpack.i.h.bf16 %v7874_v45  ;;  %v5269_v41 = vunpack.i.l.bf16 %v7874_v45  ;;  %v2863_v63 = vsel %vm2840_vm4, %v7498_v34, %v5274_v36 }
 0x19d   :  { %v5475_v49 = vunpack.i.h.bf16 %v5473_v32  ;;  %v5474_v26 = vunpack.i.l.bf16 %v5473_v32  ;;  %v2988_v33 = vsel %vm2970_vm6, %v2923_v5, %v5460_v7 }
 0x19e   :  { %v5468_v38 = vpop.permute.xlu0 %5467  ;;  %5762 = vrot.lane.b32.xlu1 %v8220_v0, %s6072_s19  ;;  %v2987_v0 = vsel %vm2970_vm6, %v2922_v31, %v5459_v16  ;;  %v2861_v43 = vsel %vm2840_vm4, %v7514_v23, %v5269_v41 }
 0x19f   :  { %v5470_v21 = vunpack.i.h.bf16 %v5468_v38  ;;  %v5469_v10 = vunpack.i.l.bf16 %v5468_v38  ;;  %v3054_v42 = vsel %vm3035_vm7, %v2989_v46, %v5474_v26 }
 0x1a0   :  { %5757 = vrot.lane.b32.xlu0 %v8225_v30, %s6072_s19  ;;  %v5483_v17 = vpop.permute.xlu1 %5482  ;;  %v3055_v30 = vsel %vm3035_vm7, %v2990_v13, %v5475_v49 }
 0x1a1   :  { %v5485_v19 = vunpack.i.h.bf16 %v5483_v17  ;;  %v5484_v39 = vunpack.i.l.bf16 %v5483_v17  ;;  %v3052_v9 = vsel %vm3035_vm7, %v2987_v0, %v5469_v10  ;;  %v3053_v51 = vsel %vm3035_vm7, %v2988_v33, %v5470_v21 }
 0x1a2   :  { %v5478_v56 = vpop.permute.xlu0 %5477  ;;  %5772 = vrot.lane.b32.xlu1 %v8414_v11, %s6068_s26  ;;  %v2862_v21 = vsel %vm2840_vm4, %v10490_v57, %v5270_v44  ;;  %v10495_v57 = vld [vmem:[#allocation15_spill] sm:$0xff] }
 0x1a3   :  { %v5480_v55 = vunpack.i.h.bf16 %v5478_v56  ;;  %v5479_v2 = vunpack.i.l.bf16 %v5478_v56  ;;  %v3119_v12 = vsel %vm3100_vm8, %v3054_v42, %v5484_v39  ;;  %v3120_v58 = vsel %vm3100_vm8, %v3055_v30, %v5485_v19 }
 0x1a4   :  { %5767 = vrot.lane.b32.xlu0 %v5766_v20, %s6068_s26  ;;  %v5493_v3 = vpop.permute.xlu1 %5492  ;;  %v3174_v37 = vpack.c.bf16 %v3120_v58, %v3119_v12 }
 0x1a5   :  { %v3117_v29 = vsel %vm3100_vm8, %v3052_v9, %v5479_v2  ;;  %v3118_v53 = vsel %vm3100_vm8, %v3053_v51, %v5480_v55  ;;  %v5495_v32 = vunpack.i.h.bf16 %v5493_v3  ;;  %v5494_v27 = vunpack.i.l.bf16 %v5493_v3 }
 0x1a6   :  { %v5488_v40 = vpop.permute.xlu0 %5487  ;;  %v3173_v59 = vpack.c.bf16 %v3118_v53, %v3117_v29  ;;  %5782 = vrot.lane.b32.xlu1 %v5766_v20, %s6069_s14  ;;  %v5275_v20 = vunpack.i.h.bf16 %v7857_v47 }
 0x1a7   :  { %v5490_v6 = vunpack.i.h.bf16 %v5488_v40  ;;  %v5489_v7 = vunpack.i.l.bf16 %v5488_v40  ;;  %v2928_v5 = vsel %vm2905_vm5, %v2863_v63, %v5494_v27  ;;  %v10493_v63 = vld [vmem:[#allocation14_spill] sm:$0xff] }
 0x1a8   :  { %5777 = vrot.lane.b32.xlu0 %v8350_v62, %s6069_s14  ;;  %4666 = vmatprep.mubr.msk.bf16.mxu0 %vm3233_vm9, %v3173_v59  ;;  %v5503_v1 = vpop.permute.xlu1 %5502  ;;  %v4421_v62 = vld [vmem:[%s10193_s0 + $0x291] sm:$0xff]  ;;  %v2864_v45 = vsel %vm2840_vm4, %v7502_v61, %v5275_v20  ;;  %v4484_v59 = vld [vmem:[%s10193_s0 + $0x2a0] sm:$0xff] }
 0x1a9   :  { %4667 = vmatmul.mubr.msk.bf16.gmra.mrb[16].mxu0 %vm3233_vm9, %v3174_v37  ;;  %v5816_v14 = vpack.i.bf16 %v4421_v62, %v4420_v50  ;;  %v5505_v16 = vunpack.i.h.bf16 %v5503_v1  ;;  %v5504_v47 = vunpack.i.l.bf16 %v5503_v1  ;;  %v2929_v34 = vsel %vm2905_vm5, %v2864_v45, %v5495_v32  ;;  %v10491_v1 = vld [vmem:[#allocation30_spill] sm:$0xff]  ;;  %v10492_v20 = vld [vmem:[#allocation31_spill] sm:$0xff] }
 0x1aa   :  { %v5498_v54 = vpop.permute.xlu0 %5497  ;;  %5792 = vrot.lane.b32.xlu1 %v8460_v4, %s6070_s1  ;;  %v2926_v13 = vsel %vm2905_vm5, %v2861_v43, %v5489_v7  ;;  %v2927_v23 = vsel %vm2905_vm5, %v2862_v21, %v5490_v6  ;;  %v5285_v35 = vunpack.i.h.bf16 %v10491_v1  ;;  %v5284_v50 = vunpack.i.l.bf16 %v10491_v1 }
 0x1ab   :  { %v5500_v52 = vunpack.i.h.bf16 %v5498_v54  ;;  %v5499_v49 = vunpack.i.l.bf16 %v5498_v54  ;;  %v2993_v17 = vsel %vm2970_vm6, %v2928_v5, %v5504_v47  ;;  %v2994_v0 = vsel %vm2970_vm6, %v2929_v34, %v5505_v16 }
 0x1ac   :  { %5787 = vrot.lane.b32.xlu0 %v8465_v8, %s6070_s1  ;;  %v5513_v38 = vpop.permute.xlu1 %5512  ;;  %v5280_v36 = vunpack.i.h.bf16 %v10492_v20  ;;  %v5279_v54 = vunpack.i.l.bf16 %v10492_v20  ;;  %v8548_v27 = vpack.i.bf16 %v4485_v60, %v4484_v59  ;;  %v2867_v45 = vsel %vm2840_vm4, %v10493_v63, %v5284_v50 }
 0x1ad   :  { %v5515_v10 = vunpack.i.h.bf16 %v5513_v38  ;;  %v5514_v31 = vunpack.i.l.bf16 %v5513_v38  ;;  %v2991_v19 = vsel %vm2970_vm6, %v2926_v13, %v5499_v49  ;;  %v2992_v39 = vsel %vm2970_vm6, %v2927_v23, %v5500_v52  ;;  %v10494_v52 = vld [vmem:[#allocation41_spill] sm:$0xff] }
 0x1ae   :  { %v5508_v26 = vpop.permute.xlu0 %5507  ;;  %5802 = vrot.lane.b32.xlu1 %v8465_v8, %s6071_s17  ;;  %v2865_v21 = vsel %vm2840_vm4, %v10495_v57, %v5279_v54  ;;  %v4489_v54 = vld [vmem:[%s10193_s0 + $0x2d8] sm:$0xff]  ;;  %v10497_v57 = vld [vmem:[#allocation39_spill] sm:$0xff] }
 0x1af   :  { %v5510_v46 = vunpack.i.h.bf16 %v5508_v26  ;;  %v5509_v61 = vunpack.i.l.bf16 %v5508_v26  ;;  %v3058_v55 = vsel %vm3035_vm7, %v2993_v17, %v5514_v31  ;;  %v3059_v2 = vsel %vm3035_vm7, %v2994_v0, %v5515_v10 }
 0x1b0   :  { %5797 = vrot.lane.b32.xlu0 %v8356_v15, %s6071_s17  ;;  %v5523_v33 = vpop.permute.xlu1 %5522 }
 0x1b1   :  { %v5525_v56 = vunpack.i.h.bf16 %v5523_v33  ;;  %v5524_v42 = vunpack.i.l.bf16 %v5523_v33  ;;  %v3056_v12 = vsel %vm3035_vm7, %v2991_v19, %v5509_v61  ;;  %v3057_v58 = vsel %vm3035_vm7, %v2992_v39, %v5510_v46 }
 0x1b2   :  { %v5518_v30 = vpop.permute.xlu0 %5517  ;;  %5812 = vrot.lane.b32.xlu1 %v8356_v15, %s6072_s19  ;;  %v4486_v15 = vld [vmem:[%s10193_s0 + $0x2b8] sm:$0xff] }
 0x1b3   :  { %v5520_v9 = vunpack.i.h.bf16 %v5518_v30  ;;  %v5519_v51 = vunpack.i.l.bf16 %v5518_v30  ;;  %v3123_v24 = vsel %vm3100_vm8, %v3058_v55, %v5524_v42  ;;  %v3124_v22 = vsel %vm3100_vm8, %v3059_v2, %v5525_v56 }
 0x1b4   :  { %5807 = vrot.lane.b32.xlu0 %v8358_v48, %s6072_s19  ;;  %v5533_v3 = vpop.permute.xlu1 %5532  ;;  %v3176_v37 = vpack.c.bf16 %v3124_v22, %v3123_v24  ;;  %v4487_v48 = vld [vmem:[%s10193_s0 + $0x2c0] sm:$0xff] }
 0x1b5   :  { %v3121_v29 = vsel %vm3100_vm8, %v3056_v12, %v5519_v51  ;;  %v3122_v53 = vsel %vm3100_vm8, %v3057_v58, %v5520_v9  ;;  %v8544_v44 = vpack.i.bf16 %v4487_v48, %v4486_v15  ;;  %v5535_v41 = vunpack.i.h.bf16 %v5533_v3  ;;  %v4424_v48 = vld [vmem:[%s10193_s0 + $0x2b9] sm:$0xff] }
 0x1b6   :  { %v5528_v18 = vpop.permute.xlu0 %5527  ;;  %v3175_v28 = vpack.c.bf16 %v3122_v53, %v3121_v29  ;;  %5822 = vrot.lane.b32.xlu1 %v8488_v25, %s6068_s26  ;;  %v5534_v32 = vunpack.i.l.bf16 %v5533_v3  ;;  %v4426_v53 = vld [vmem:[%s10193_s0 + $0x2d1] sm:$0xff]  ;;  %v4427_v3 = vld [vmem:[%s10193_s0 + $0x2d9] sm:$0xff] }
 0x1b7   :  { %v5530_v6 = vunpack.i.h.bf16 %v5528_v18  ;;  %v5529_v7 = vunpack.i.l.bf16 %v5528_v18  ;;  %v8596_v1 = vpack.i.bf16 %v4427_v3, %v4426_v53 }
 0x1b8   :  { %5817 = vrot.lane.b32.xlu0 %v5816_v14, %s6068_s26  ;;  %4670 = vmatprep.mubr.msk.bf16.mxu0 %vm3233_vm9, %v3175_v28  ;;  %v5543_v40 = vpop.permute.xlu1 %5542  ;;  %v2932_v34 = vsel %vm2905_vm5, %v2867_v45, %v5534_v32 }
 0x1b9   :  { %4671 = vmatmul.mubr.msk.bf16.gmra.mrb[20].mxu0 %vm3233_vm9, %v3176_v37  ;;  %v5545_v16 = vunpack.i.h.bf16 %v5543_v40  ;;  %v5544_v47 = vunpack.i.l.bf16 %v5543_v40  ;;  %v2930_v23 = vsel %vm2905_vm5, %v2865_v21, %v5529_v7  ;;  %v4425_v40 = vld [vmem:[%s10193_s0 + $0x2c1] sm:$0xff] }
 0x1ba   :  { %v5538_v62 = vpop.permute.xlu0 %5537  ;;  %5832 = vrot.lane.b32.xlu1 %v5816_v14, %s6069_s14  ;;  %v2868_v14 = vsel %vm2840_vm4, %v10494_v52, %v5285_v35  ;;  %v5866_v35 = vpack.i.bf16 %v4425_v40, %v4424_v48  ;;  %v4430_v48 = vld [vmem:[%s10193_s0 + $0x301] sm:$0xff]  ;;  %v4431_v40 = vld [vmem:[%s10193_s0 + $0x309] sm:$0xff] }
 0x1bb   :  { %v5540_v49 = vunpack.i.h.bf16 %v5538_v62  ;;  %v5539_v26 = vunpack.i.l.bf16 %v5538_v62  ;;  %v2933_v46 = vsel %vm2905_vm5, %v2868_v14, %v5535_v41  ;;  %v2997_v0 = vsel %vm2970_vm6, %v2932_v34, %v5544_v47 }
 0x1bc   :  { %5827 = vrot.lane.b32.xlu0 %v8414_v11, %s6069_s14  ;;  %v5553_v38 = vpop.permute.xlu1 %5552  ;;  %v10496_v11 = vld [vmem:[#allocation8_spill] sm:$0xff]  ;;  %v2998_v33 = vsel %vm2970_vm6, %v2933_v46, %v5545_v16  ;;  %v10499_v46 = vld [vmem:[#allocation46_spill] sm:$0xff] }
 0x1bd   :  { %v2866_v10 = vsel %vm2840_vm4, %v10496_v11, %v5280_v36  ;;  %v5555_v31 = vunpack.i.h.bf16 %v5553_v38  ;;  %v5554_v5 = vunpack.i.l.bf16 %v5553_v38  ;;  %v2995_v39 = vsel %vm2970_vm6, %v2930_v23, %v5539_v26  ;;  %v4488_v36 = vld [vmem:[%s10193_s0 + $0x2d0] sm:$0xff]  ;;  %v10498_v11 = vld [vmem:[#allocation9_spill] sm:$0xff] }
 0x1be   :  { %v5548_v43 = vpop.permute.xlu0 %5547  ;;  %5842 = vrot.lane.b32.xlu1 %v8544_v44, %s6070_s1  ;;  %v2931_v17 = vsel %vm2905_vm5, %v2866_v10, %v5530_v6  ;;  %v8622_v45 = vpack.i.bf16 %v4489_v54, %v4488_v36  ;;  %v8670_v36 = vpack.i.bf16 %v4431_v40, %v4430_v48 }
 0x1bf   :  { %v5550_v61 = vunpack.i.h.bf16 %v5548_v43  ;;  %v5549_v13 = vunpack.i.l.bf16 %v5548_v43  ;;  %v2996_v56 = vsel %vm2970_vm6, %v2931_v17, %v5540_v49  ;;  %v3062_v2 = vsel %vm3035_vm7, %v2997_v0, %v5554_v5 }
 0x1c0   :  { %5837 = vrot.lane.b32.xlu0 %v8548_v27, %s6070_s1  ;;  %v5563_v19 = vpop.permute.xlu1 %5562  ;;  %v3063_v9 = vsel %vm3035_vm7, %v2998_v33, %v5555_v31 }
 0x1c1   :  { %v5565_v42 = vunpack.i.h.bf16 %v5563_v19  ;;  %v5564_v30 = vunpack.i.l.bf16 %v5563_v19  ;;  %v3060_v58 = vsel %vm3035_vm7, %v2995_v39, %v5549_v13  ;;  %v3061_v24 = vsel %vm3035_vm7, %v2996_v56, %v5550_v61 }
 0x1c2   :  { %v5558_v55 = vpop.permute.xlu0 %5557  ;;  %5852 = vrot.lane.b32.xlu1 %v8548_v27, %s6071_s17 }
 0x1c3   :  { %v5560_v51 = vunpack.i.h.bf16 %v5558_v55  ;;  %v5559_v12 = vunpack.i.l.bf16 %v5558_v55  ;;  %v3127_v22 = vsel %vm3100_vm8, %v3062_v2, %v5564_v30  ;;  %v3128_v29 = vsel %vm3100_vm8, %v3063_v9, %v5565_v42 }
 0x1c4   :  { %5847 = vrot.lane.b32.xlu0 %v8460_v4, %s6071_s17  ;;  %v3178_v37 = vpack.c.bf16 %v3128_v29, %v3127_v22  ;;  %v5573_v15 = vpop.permute.xlu1 %5572 }
 0x1c5   :  { %v3125_v18 = vsel %vm3100_vm8, %v3060_v58, %v5559_v12  ;;  %v3126_v28 = vsel %vm3100_vm8, %v3061_v24, %v5560_v51  ;;  %v5575_v41 = vunpack.i.h.bf16 %v5573_v15  ;;  %v5574_v32 = vunpack.i.l.bf16 %v5573_v15 }
 0x1c6   :  { %v3177_v59 = vpack.c.bf16 %v3126_v28, %v3125_v18  ;;  %v5568_v60 = vpop.permute.xlu0 %5567  ;;  %5862 = vrot.lane.b32.xlu1 %v8460_v4, %s6072_s19  ;;  %v4490_v4 = vld [vmem:[%s10193_s0 + $0x2e8] sm:$0xff] }
 0x1c7   :  { %v5570_v7 = vunpack.i.h.bf16 %v5568_v60  ;;  %v5569_v16 = vunpack.i.l.bf16 %v5568_v60  ;;  %v2871_v21 = vsel %vm2840_vm4, %v10497_v57, %v5574_v32  ;;  %v2872_v10 = vsel %vm2840_vm4, %v10498_v11, %v5575_v41 }
 0x1c8   :  { %5857 = vrot.lane.b32.xlu0 %v8465_v8, %s6072_s19  ;;  %4674 = vmatprep.mubr.msk.bf16.mxu0 %vm3233_vm9, %v3177_v59  ;;  %v5583_v50 = vpop.permute.xlu1 %5582  ;;  %v4491_v8 = vld [vmem:[%s10193_s0 + $0x2f0] sm:$0xff] }
 0x1c9   :  { %4675 = vmatmul.mubr.msk.bf16.gmra.mrb[24].mxu0 %vm3233_vm9, %v3178_v37  ;;  %v8618_v47 = vpack.i.bf16 %v4491_v8, %v4490_v4  ;;  %v5585_v38 = vunpack.i.h.bf16 %v5583_v50  ;;  %v5584_v63 = vunpack.i.l.bf16 %v5583_v50  ;;  %v2869_v61 = vsel %vm2840_vm4, %v10499_v46, %v5569_v16  ;;  %v4429_v4 = vld [vmem:[%s10193_s0 + $0x2f1] sm:$0xff]  ;;  %v4493_v16 = vld [vmem:[%s10193_s0 + $0x308] sm:$0xff] }
 0x1ca   :  { %v5578_v62 = vpop.permute.xlu0 %5577  ;;  %5872 = vrot.lane.b32.xlu1 %v8596_v1, %s6068_s26  ;;  %v10501_v46 = vld [vmem:[#allocation48_spill] sm:$0xff] }
 0x1cb   :  { %v5580_v52 = vunpack.i.h.bf16 %v5578_v62  ;;  %v5579_v14 = vunpack.i.l.bf16 %v5578_v62  ;;  %v2936_v0 = vsel %vm2905_vm5, %v2871_v21, %v5584_v63  ;;  %v2937_v33 = vsel %vm2905_vm5, %v2872_v10, %v5585_v38  ;;  %v4428_v62 = vld [vmem:[%s10193_s0 + $0x2e9] sm:$0xff] }
 0x1cc   :  { %5867 = vrot.lane.b32.xlu0 %v5866_v35, %s6068_s26  ;;  %v5593_v20 = vpop.permute.xlu1 %5592  ;;  %v5916_v54 = vpack.i.bf16 %v4429_v4, %v4428_v62  ;;  %v4434_v62 = vld [vmem:[%s10193_s0 + $0x331] sm:$0xff]  ;;  %v4435_v4 = vld [vmem:[%s10193_s0 + $0x339] sm:$0xff] }
 0x1cd   :  { %v5595_v49 = vunpack.i.h.bf16 %v5593_v20  ;;  %v5594_v26 = vunpack.i.l.bf16 %v5593_v20  ;;  %v2934_v56 = vsel %vm2905_vm5, %v2869_v61, %v5579_v14 }
 0x1ce   :  { %v5588_v6 = vpop.permute.xlu0 %5587  ;;  %5882 = vrot.lane.b32.xlu1 %v5866_v35, %s6069_s14 }
 0x1cf   :  { %v5590_v31 = vunpack.i.h.bf16 %v5588_v6  ;;  %v5589_v5 = vunpack.i.l.bf16 %v5588_v6  ;;  %v3001_v30 = vsel %vm2970_vm6, %v2936_v0, %v5594_v26  ;;  %v3002_v55 = vsel %vm2970_vm6, %v2937_v33, %v5595_v49  ;;  %v10503_v33 = vld [vmem:[#allocation18_spill] sm:$0xff] }
 0x1d0   :  { %5877 = vrot.lane.b32.xlu0 %v8488_v25, %s6069_s14  ;;  %v5603_v43 = vpop.permute.xlu1 %5602  ;;  %v10500_v25 = vld [vmem:[#allocation47_spill] sm:$0xff] }
 0x1d1   :  { %v2870_v13 = vsel %vm2840_vm4, %v10500_v25, %v5570_v7  ;;  %v5605_v23 = vunpack.i.h.bf16 %v5603_v43  ;;  %v5604_v17 = vunpack.i.l.bf16 %v5603_v43  ;;  %v2999_v9 = vsel %vm2970_vm6, %v2934_v56, %v5589_v5  ;;  %v4492_v7 = vld [vmem:[%s10193_s0 + $0x300] sm:$0xff] }
 0x1d2   :  { %v5598_v34 = vpop.permute.xlu0 %5597  ;;  %5892 = vrot.lane.b32.xlu1 %v8618_v47, %s6070_s1  ;;  %v2935_v42 = vsel %vm2905_vm5, %v2870_v13, %v5580_v52  ;;  %v8696_v21 = vpack.i.bf16 %v4493_v16, %v4492_v7  ;;  %v10502_v25 = vld [vmem:[#allocation49_spill] sm:$0xff]  ;;  %v5971_v7 = vpack.i.bf16 %v4435_v4, %v4434_v62 }
 0x1d3   :  { %v5600_v19 = vunpack.i.h.bf16 %v5598_v34  ;;  %v5599_v39 = vunpack.i.l.bf16 %v5598_v34  ;;  %v3000_v51 = vsel %vm2970_vm6, %v2935_v42, %v5590_v31  ;;  %v3066_v22 = vsel %vm3035_vm7, %v3001_v30, %v5604_v17 }
 0x1d4   :  { %5887 = vrot.lane.b32.xlu0 %v8622_v45, %s6070_s1  ;;  %v5613_v2 = vpop.permute.xlu1 %5612  ;;  %v3067_v29 = vsel %vm3035_vm7, %v3002_v55, %v5605_v23 }
 0x1d5   :  { %v5615_v12 = vunpack.i.h.bf16 %v5613_v2  ;;  %v5614_v58 = vunpack.i.l.bf16 %v5613_v2  ;;  %v3064_v37 = vsel %vm3035_vm7, %v2999_v9, %v5599_v39  ;;  %v3065_v18 = vsel %vm3035_vm7, %v3000_v51, %v5600_v19 }
 0x1d6   :  { %v5608_v24 = vpop.permute.xlu0 %5607  ;;  %5902 = vrot.lane.b32.xlu1 %v8622_v45, %s6071_s17 }
 0x1d7   :  { %v5610_v53 = vunpack.i.h.bf16 %v5608_v24  ;;  %v5609_v3 = vunpack.i.l.bf16 %v5608_v24  ;;  %v3131_v28 = vsel %vm3100_vm8, %v3066_v22, %v5614_v58  ;;  %v3132_v15 = vsel %vm3100_vm8, %v3067_v29, %v5615_v12 }
 0x1d8   :  { %5897 = vrot.lane.b32.xlu0 %v8544_v44, %s6071_s17  ;;  %v3180_v59 = vpack.c.bf16 %v3132_v15, %v3131_v28  ;;  %v5623_v50 = vpop.permute.xlu1 %5622 }
 0x1d9   :  { %v3129_v60 = vsel %vm3100_vm8, %v3064_v37, %v5609_v3  ;;  %v3130_v35 = vsel %vm3100_vm8, %v3065_v18, %v5610_v53  ;;  %v5625_v38 = vunpack.i.h.bf16 %v5623_v50  ;;  %v5624_v63 = vunpack.i.l.bf16 %v5623_v50 }
 0x1da   :  { %v3179_v8 = vpack.c.bf16 %v3130_v35, %v3129_v60  ;;  %v5618_v20 = vpop.permute.xlu0 %5617  ;;  %5912 = vrot.lane.b32.xlu1 %v8544_v44, %s6072_s19  ;;  %v4494_v44 = vld [vmem:[%s10193_s0 + $0x318] sm:$0xff] }
 0x1db   :  { %v5620_v14 = vunpack.i.h.bf16 %v5618_v20  ;;  %v5619_v49 = vunpack.i.l.bf16 %v5618_v20  ;;  %v2875_v61 = vsel %vm2840_vm4, %v10501_v46, %v5624_v63  ;;  %v2876_v13 = vsel %vm2840_vm4, %v10502_v25, %v5625_v38 }
 0x1dc   :  { %5907 = vrot.lane.b32.xlu0 %v8548_v27, %s6072_s19  ;;  %4678 = vmatprep.mubr.msk.bf16.mxu0 %vm3233_vm9, %v3179_v8  ;;  %v5633_v41 = vpop.permute.xlu1 %5632  ;;  %v4495_v27 = vld [vmem:[%s10193_s0 + $0x320] sm:$0xff] }
 0x1dd   :  { %4679 = vmatmul.mubr.msk.bf16.gmra.mrb[28].mxu0 %vm3233_vm9, %v3180_v59  ;;  %v8692_v26 = vpack.i.bf16 %v4495_v27, %v4494_v44  ;;  %v5635_v43 = vunpack.i.h.bf16 %v5633_v41  ;;  %v5634_v57 = vunpack.i.l.bf16 %v5633_v41  ;;  %v2873_v19 = vsel %vm2840_vm4, %v10503_v33, %v5619_v49  ;;  %v4433_v44 = vld [vmem:[%s10193_s0 + $0x321] sm:$0xff]  ;;  %v4497_v49 = vld [vmem:[%s10193_s0 + $0x338] sm:$0xff] }
 0x1de   :  { %v5628_v32 = vpop.permute.xlu0 %5627  ;;  %5922 = vrot.lane.b32.xlu1 %v8670_v36, %s6068_s26  ;;  %v10505_v33 = vld [vmem:[#allocation12_spill] sm:$0xff] }
 0x1df   :  { %v5630_v11 = vunpack.i.h.bf16 %v5628_v32  ;;  %v5629_v10 = vunpack.i.l.bf16 %v5628_v32  ;;  %v2940_v30 = vsel %vm2905_vm5, %v2875_v61, %v5634_v57  ;;  %v2941_v55 = vsel %vm2905_vm5, %v2876_v13, %v5635_v43  ;;  %v4432_v32 = vld [vmem:[%s10193_s0 + $0x319] sm:$0xff] }
 0x1e0   :  { %5917 = vrot.lane.b32.xlu0 %v5916_v54, %s6068_s26  ;;  %v5643_v6 = vpop.permute.xlu1 %5642  ;;  %v5966_v16 = vpack.i.bf16 %v4433_v44, %v4432_v32 }
 0x1e1   :  { %v5645_v31 = vunpack.i.h.bf16 %v5643_v6  ;;  %v5644_v5 = vunpack.i.l.bf16 %v5643_v6  ;;  %v2938_v51 = vsel %vm2905_vm5, %v2873_v19, %v5629_v10 }
 0x1e2   :  { %v5638_v52 = vpop.permute.xlu0 %5637  ;;  %5932 = vrot.lane.b32.xlu1 %v5916_v54, %s6069_s14 }
 0x1e3   :  { %v5640_v23 = vunpack.i.h.bf16 %v5638_v52  ;;  %v5639_v17 = vunpack.i.l.bf16 %v5638_v52  ;;  %v3005_v58 = vsel %vm2970_vm6, %v2940_v30, %v5644_v5  ;;  %v3006_v24 = vsel %vm2970_vm6, %v2941_v55, %v5645_v31  ;;  %v4498_v52 = vld [vmem:[%s10193_s0 + $0x348] sm:$0xff] }
 0x1e4   :  { %5927 = vrot.lane.b32.xlu0 %v8596_v1, %s6069_s14  ;;  %v5653_v34 = vpop.permute.xlu1 %5652  ;;  %v10504_v1 = vld [vmem:[#allocation19_spill] sm:$0xff]  ;;  %v10507_v55 = vld [vmem:[#allocation22_spill] sm:$0xff] }
 0x1e5   :  { %v2874_v39 = vsel %vm2840_vm4, %v10504_v1, %v5620_v14  ;;  %v5655_v56 = vunpack.i.h.bf16 %v5653_v34  ;;  %v5654_v42 = vunpack.i.l.bf16 %v5653_v34  ;;  %v3003_v29 = vsel %vm2970_vm6, %v2938_v51, %v5639_v17  ;;  %v4496_v14 = vld [vmem:[%s10193_s0 + $0x330] sm:$0xff]  ;;  %v10506_v1 = vld [vmem:[#allocation13_spill] sm:$0xff] }
 0x1e6   :  { %v5648_v0 = vpop.permute.xlu0 %5647  ;;  %5942 = vrot.lane.b32.xlu1 %v8692_v26, %s6070_s1  ;;  %v2939_v12 = vsel %vm2905_vm5, %v2874_v39, %v5630_v11  ;;  %v5986_v61 = vpack.i.bf16 %v4497_v49, %v4496_v14 }
 0x1e7   :  { %v5650_v2 = vunpack.i.h.bf16 %v5648_v0  ;;  %v5649_v9 = vunpack.i.l.bf16 %v5648_v0  ;;  %v3004_v53 = vsel %vm2970_vm6, %v2939_v12, %v5640_v23  ;;  %v3070_v28 = vsel %vm3035_vm7, %v3005_v58, %v5654_v42 }
 0x1e8   :  { %5937 = vrot.lane.b32.xlu0 %v8696_v21, %s6070_s1  ;;  %v5663_v22 = vpop.permute.xlu1 %5662  ;;  %v3071_v15 = vsel %vm3035_vm7, %v3006_v24, %v5655_v56 }
 0x1e9   :  { %v5665_v3 = vunpack.i.h.bf16 %v5663_v22  ;;  %v5664_v37 = vunpack.i.l.bf16 %v5663_v22  ;;  %v3068_v35 = vsel %vm3035_vm7, %v3003_v29, %v5649_v9  ;;  %v3069_v50 = vsel %vm3035_vm7, %v3004_v53, %v5650_v2  ;;  %v10508_v9 = vld [vmem:[#allocation23_spill] sm:$0xff] }
 0x1ea   :  { %v5658_v18 = vpop.permute.xlu0 %5657  ;;  %5952 = vrot.lane.b32.xlu1 %v8696_v21, %s6071_s17 }
 0x1eb   :  { %v5660_v48 = vunpack.i.h.bf16 %v5658_v18  ;;  %v5659_v40 = vunpack.i.l.bf16 %v5658_v18  ;;  %v3135_v59 = vsel %vm3100_vm8, %v3070_v28, %v5664_v37  ;;  %v3136_v60 = vsel %vm3100_vm8, %v3071_v15, %v5665_v3 }
 0x1ec   :  { %5947 = vrot.lane.b32.xlu0 %v8618_v47, %s6071_s17  ;;  %v3182_v8 = vpack.c.bf16 %v3136_v60, %v3135_v59  ;;  %v5673_v20 = vpop.permute.xlu1 %5672 }
 0x1ed   :  { %v3133_v54 = vsel %vm3100_vm8, %v3068_v35, %v5659_v40  ;;  %v3134_v41 = vsel %vm3100_vm8, %v3069_v50, %v5660_v48  ;;  %v5675_v43 = vunpack.i.h.bf16 %v5673_v20  ;;  %v5674_v57 = vunpack.i.l.bf16 %v5673_v20 }
 0x1ee   :  { %v5668_v27 = vpop.permute.xlu0 %5667  ;;  %v3181_v6 = vpack.c.bf16 %v3134_v41, %v3133_v54  ;;  %5962 = vrot.lane.b32.xlu1 %v8618_v47, %s6072_s19  ;;  %v4499_v47 = vld [vmem:[%s10193_s0 + $0x350] sm:$0xff] }
 0x1ef   :  { %v5670_v10 = vunpack.i.h.bf16 %v5668_v27  ;;  %v5669_v31 = vunpack.i.l.bf16 %v5668_v27  ;;  %v5991_v5 = vpack.i.bf16 %v4499_v47, %v4498_v52  ;;  %v2879_v19 = vsel %vm2840_vm4, %v10505_v33, %v5674_v57 }
 0x1f0   :  { %5957 = vrot.lane.b32.xlu0 %v8622_v45, %s6072_s19  ;;  %4682 = vmatprep.mubr.msk.bf16.mxu1 %vm3233_vm9, %v3181_v6  ;;  %v5683_v38 = vpop.permute.xlu1 %5682  ;;  %v2880_v39 = vsel %vm2840_vm4, %v10506_v1, %v5675_v43 }
 0x1f1   :  { %4683 = vmatmul.mubr.msk.bf16.vlgmr.msra.gmra.mrb[0].mxu1 %vm3233_vm9, %v3182_v8  ;;  %v5685_v34 = vunpack.i.h.bf16 %v5683_v38  ;;  %v5684_v46 = vunpack.i.l.bf16 %v5683_v38  ;;  %v2877_v2 = vsel %vm2840_vm4, %v10507_v55, %v5669_v31 }
 0x1f2   :  { %v5678_v63 = vpop.permute.xlu0 %5677  ;;  %5972 = vrot.lane.b32.xlu1 %v5971_v7, %s6068_s26 }
 0x1f3   :  { %v5680_v25 = vunpack.i.h.bf16 %v5678_v63  ;;  %v5679_v13 = vunpack.i.l.bf16 %v5678_v63  ;;  %v2944_v58 = vsel %vm2905_vm5, %v2879_v19, %v5684_v46  ;;  %v2945_v24 = vsel %vm2905_vm5, %v2880_v39, %v5685_v34  ;;  %v10512_v19 = vld [vmem:[#allocation51_spill] sm:$0xff] }
 0x1f4   :  { %5967 = vrot.lane.b32.xlu0 %v5966_v16, %s6068_s26  ;;  %v5693_v45 = vpop.permute.xlu1 %5692 }
 0x1f5   :  { %v5695_v23 = vunpack.i.h.bf16 %v5693_v45  ;;  %v5694_v17 = vunpack.i.l.bf16 %v5693_v45  ;;  %v2942_v53 = vsel %vm2905_vm5, %v2877_v2, %v5679_v13 }
 0x1f6   :  { %v5688_v11 = vpop.permute.xlu0 %5687  ;;  %5982 = vrot.lane.b32.xlu1 %v5966_v16, %s6069_s14 }
 0x1f7   :  { %v5690_v56 = vunpack.i.h.bf16 %v5688_v11  ;;  %v5689_v42 = vunpack.i.l.bf16 %v5688_v11  ;;  %v3009_v37 = vsel %vm2970_vm6, %v2944_v58, %v5694_v17  ;;  %v3010_v18 = vsel %vm2970_vm6, %v2945_v24, %v5695_v23 }
 0x1f8   :  { %5977 = vrot.lane.b32.xlu0 %v8670_v36, %s6069_s14  ;;  %v5703_v0 = vpop.permute.xlu1 %5702  ;;  %v2878_v36 = vsel %vm2840_vm4, %v10508_v9, %v5670_v10 }
 0x1f9   :  { %v5705_v51 = vunpack.i.h.bf16 %v5703_v0  ;;  %v5704_v12 = vunpack.i.l.bf16 %v5703_v0  ;;  %v2943_v3 = vsel %vm2905_vm5, %v2878_v36, %v5680_v25  ;;  %v3007_v15 = vsel %vm2970_vm6, %v2942_v53, %v5689_v42  ;;  %v10511_v0 = vld [vmem:[#allocation50_spill] sm:$0xff] }
 0x1fa   :  { %v5698_v30 = vpop.permute.xlu0 %5697  ;;  %5992 = vrot.lane.b32.xlu1 %v5991_v5, %s6070_s1  ;;  %v3008_v48 = vsel %vm2970_vm6, %v2943_v3, %v5690_v56 }
 0x1fb   :  { %v5700_v22 = vunpack.i.h.bf16 %v5698_v30  ;;  %v5699_v29 = vunpack.i.l.bf16 %v5698_v30  ;;  %v3074_v35 = vsel %vm3035_vm7, %v3009_v37, %v5704_v12  ;;  %v3075_v50 = vsel %vm3035_vm7, %v3010_v18, %v5705_v51 }
 0x1fc   :  { %5987 = vrot.lane.b32.xlu0 %v5986_v61, %s6070_s1  ;;  %v5713_v28 = vpop.permute.xlu1 %5712 }
 0x1fd   :  { %v5715_v40 = vunpack.i.h.bf16 %v5713_v28  ;;  %v5714_v59 = vunpack.i.l.bf16 %v5713_v28  ;;  %v3072_v8 = vsel %vm3035_vm7, %v3007_v15, %v5699_v29  ;;  %v3073_v20 = vsel %vm3035_vm7, %v3008_v48, %v5700_v22 }
 0x1fe   :  { %v5708_v60 = vpop.permute.xlu0 %5707  ;;  %6002 = vrot.lane.b32.xlu1 %v5986_v61, %s6071_s17  ;;  %v10510_v61 = vld [vmem:[#allocation17_spill] sm:$0xff] }
 0x1ff   :  { %v5710_v62 = vunpack.i.h.bf16 %v5708_v60  ;;  %v5709_v4 = vunpack.i.l.bf16 %v5708_v60  ;;  %v3139_v54 = vsel %vm3100_vm8, %v3074_v35, %v5714_v59  ;;  %v3140_v41 = vsel %vm3100_vm8, %v3075_v50, %v5715_v40 }
 0x200   :  { %5997 = vrot.lane.b32.xlu0 %v8692_v26, %s6071_s17  ;;  %v3184_v32 = vpack.c.bf16 %v3140_v41, %v3139_v54  ;;  %v5723_v6 = vpop.permute.xlu1 %5722 }
 0x201   :  { %v3137_v44 = vsel %vm3100_vm8, %v3072_v8, %v5709_v4  ;;  %v3138_v27 = vsel %vm3100_vm8, %v3073_v20, %v5710_v62  ;;  %v5725_v47 = vunpack.i.h.bf16 %v5723_v6  ;;  %v5724_v45 = vunpack.i.l.bf16 %v5723_v6 }
 0x202   :  { %v3183_v7 = vpack.c.bf16 %v3138_v27, %v3137_v44  ;;  %v5718_v16 = vpop.permute.xlu0 %5717  ;;  %6012 = vrot.lane.b32.xlu1 %v8692_v26, %s6072_s19 }
 0x203   :  { %v5720_v49 = vunpack.i.h.bf16 %v5718_v16  ;;  %v5719_v43 = vunpack.i.l.bf16 %v5718_v16  ;;  %v2884_v25 = vsel %vm2840_vm4, %v10510_v61, %v5725_v47 }
 0x204   :  { %6007 = vrot.lane.b32.xlu0 %v8696_v21, %s6072_s19  ;;  %4686 = vmatprep.mubr.msk.bf16.mxu1 %vm3233_vm9, %v3183_v7  ;;  %v5733_v38 = vpop.permute.xlu1 %5732  ;;  %v10509_v21 = vld [vmem:[#allocation16_spill] sm:$0xff] }
 0x205   :  { %4687 = vmatmul.mubr.msk.bf16.gmra.mrb[4].mxu1 %vm3233_vm9, %v3184_v32  ;;  %v5735_v57 = vunpack.i.h.bf16 %v5733_v38  ;;  %v5734_v11 = vunpack.i.l.bf16 %v5733_v38  ;;  %v2883_v46 = vsel %vm2840_vm4, %v10509_v21, %v5724_v45  ;;  %v2881_v33 = vsel %vm2840_vm4, %v10511_v0, %v5719_v43  ;;  %v10513_v43 = vld [vmem:[#allocation52_spill] sm:$0xff] }
 0x206   :  { %v5728_v63 = vpop.permute.xlu0 %5727  ;;  %v2882_v1 = vsel %vm2840_vm4, %v10512_v19, %v5720_v49 }
 0x207   :  { %v5730_v10 = vunpack.i.h.bf16 %v5728_v63  ;;  %v5729_v31 = vunpack.i.l.bf16 %v5728_v63  ;;  %v2948_v42 = vsel %vm2905_vm5, %v2883_v46, %v5734_v11  ;;  %v2949_v30 = vsel %vm2905_vm5, %v2884_v25, %v5735_v57  ;;  %v10514_v11 = vld [vmem:[#allocation53_spill] sm:$0xff]  ;;  %v10516_v46 = vld [vmem:[#allocation27_spill] sm:$0xff] }
 0x208   :  { %v5743_v52 = vpop.permute.xlu1 %5742 }
 0x209   :  { %v5745_v26 = vunpack.i.h.bf16 %v5743_v52  ;;  %v5744_v5 = vunpack.i.l.bf16 %v5743_v52  ;;  %v2946_v9 = vsel %vm2905_vm5, %v2881_v33, %v5729_v31  ;;  %v2947_v36 = vsel %vm2905_vm5, %v2882_v1, %v5730_v10 }
 0x20a   :  { %v5738_v14 = vpop.permute.xlu0 %5737 }
 0x20b   :  { %v5740_v13 = vunpack.i.h.bf16 %v5738_v14  ;;  %v5739_v23 = vunpack.i.l.bf16 %v5738_v14  ;;  %v3013_v51 = vsel %vm2970_vm6, %v2948_v42, %v5744_v5  ;;  %v3014_v12 = vsel %vm2970_vm6, %v2949_v30, %v5745_v26 }
 0x20c   :  { %v5753_v34 = vpop.permute.xlu1 %5752 }
 0x20d   :  { %v5755_v39 = vunpack.i.h.bf16 %v5753_v34  ;;  %v5754_v56 = vunpack.i.l.bf16 %v5753_v34  ;;  %v3011_v24 = vsel %vm2970_vm6, %v2946_v9, %v5739_v23  ;;  %v3012_v22 = vsel %vm2970_vm6, %v2947_v36, %v5740_v13  ;;  %v10515_v34 = vld [vmem:[#allocation26_spill] sm:$0xff] }
 0x20e   :  { %v5748_v17 = vpop.permute.xlu0 %5747 }
 0x20f   :  { %v5750_v55 = vunpack.i.h.bf16 %v5748_v17  ;;  %v5749_v2 = vunpack.i.l.bf16 %v5748_v17  ;;  %v3078_v37 = vsel %vm3035_vm7, %v3013_v51, %v5754_v56  ;;  %v3079_v18 = vsel %vm3035_vm7, %v3014_v12, %v5755_v39 }
 0x210   :  { %v5763_v58 = vpop.permute.xlu1 %5762 }
 0x211   :  { %v5765_v29 = vunpack.i.h.bf16 %v5763_v58  ;;  %v5764_v53 = vunpack.i.l.bf16 %v5763_v58  ;;  %v3076_v48 = vsel %vm3035_vm7, %v3011_v24, %v5749_v2  ;;  %v3077_v40 = vsel %vm3035_vm7, %v3012_v22, %v5750_v55 }
 0x212   :  { %v5758_v3 = vpop.permute.xlu0 %5757 }
 0x213   :  { %v5760_v28 = vunpack.i.h.bf16 %v5758_v3  ;;  %v5759_v15 = vunpack.i.l.bf16 %v5758_v3  ;;  %v3143_v59 = vsel %vm3100_vm8, %v3078_v37, %v5764_v53  ;;  %v3144_v60 = vsel %vm3100_vm8, %v3079_v18, %v5765_v29 }
 0x214   :  { %v3186_v35 = vpack.c.bf16 %v3144_v60, %v3143_v59  ;;  %v5773_v4 = vpop.permute.xlu1 %5772 }
 0x215   :  { %v3141_v50 = vsel %vm3100_vm8, %v3076_v48, %v5759_v15  ;;  %v3142_v62 = vsel %vm3100_vm8, %v3077_v40, %v5760_v28  ;;  %v5775_v44 = vunpack.i.h.bf16 %v5773_v4  ;;  %v5774_v27 = vunpack.i.l.bf16 %v5773_v4 }
 0x216   :  { %v3185_v8 = vpack.c.bf16 %v3142_v62, %v3141_v50  ;;  %v5768_v20 = vpop.permute.xlu0 %5767 }
 0x217   :  { %v5770_v7 = vunpack.i.h.bf16 %v5768_v20  ;;  %v5769_v16 = vunpack.i.l.bf16 %v5768_v20  ;;  %v2887_v57 = vsel %vm2840_vm4, %v10513_v43, %v5774_v27  ;;  %v2888_v10 = vsel %vm2840_vm4, %v10514_v11, %v5775_v44 }
 0x218   :  { %4690 = vmatprep.mubr.msk.bf16.mxu1 %vm3233_vm9, %v3185_v8  ;;  %v5783_v54 = vpop.permute.xlu1 %5782 }
 0x219   :  { %4691 = vmatmul.mubr.msk.bf16.gmra.mrb[8].mxu1 %vm3233_vm9, %v3186_v35  ;;  %v5785_v38 = vunpack.i.h.bf16 %v5783_v54  ;;  %v5784_v63 = vunpack.i.l.bf16 %v5783_v54  ;;  %v2885_v21 = vsel %vm2840_vm4, %v10515_v34, %v5769_v16  ;;  %v2886_v61 = vsel %vm2840_vm4, %v10516_v46, %v5770_v7  ;;  %v10517_v16 = vld [vmem:[#allocation20_spill] sm:$0xff] }
 0x21a   :  { %v5778_v41 = vpop.permute.xlu0 %5777 }
 0x21b   :  { %v5780_v52 = vunpack.i.h.bf16 %v5778_v41  ;;  %v5779_v47 = vunpack.i.l.bf16 %v5778_v41  ;;  %v2952_v23 = vsel %vm2905_vm5, %v2887_v57, %v5784_v63  ;;  %v2953_v17 = vsel %vm2905_vm5, %v2888_v10, %v5785_v38  ;;  %v10518_v63 = vld [vmem:[#allocation21_spill] sm:$0xff] }
 0x21c   :  { %v5793_v32 = vpop.permute.xlu1 %5792  ;;  %v10520_v57 = vld [vmem:[#allocation29_spill] sm:$0xff] }
 0x21d   :  { %v5795_v45 = vunpack.i.h.bf16 %v5793_v32  ;;  %v5794_v14 = vunpack.i.l.bf16 %v5793_v32  ;;  %v2950_v19 = vsel %vm2905_vm5, %v2885_v21, %v5779_v47  ;;  %v2951_v1 = vsel %vm2905_vm5, %v2886_v61, %v5780_v52 }
 0x21e   :  { %v5788_v6 = vpop.permute.xlu0 %5787 }
 0x21f   :  { %v5790_v31 = vunpack.i.h.bf16 %v5788_v6  ;;  %v5789_v26 = vunpack.i.l.bf16 %v5788_v6  ;;  %v3017_v39 = vsel %vm2970_vm6, %v2952_v23, %v5794_v14  ;;  %v3018_v56 = vsel %vm2970_vm6, %v2953_v17, %v5795_v45 }
 0x220   :  { %v5803_v49 = vpop.permute.xlu1 %5802 }
 0x221   :  { %v5805_v25 = vunpack.i.h.bf16 %v5803_v49  ;;  %v5804_v13 = vunpack.i.l.bf16 %v5803_v49  ;;  %v3015_v30 = vsel %vm2970_vm6, %v2950_v19, %v5789_v26  ;;  %v3016_v55 = vsel %vm2970_vm6, %v2951_v1, %v5790_v31  ;;  %v10519_v49 = vld [vmem:[#allocation28_spill] sm:$0xff] }
 0x222   :  { %v5798_v5 = vpop.permute.xlu0 %5797 }
 0x223   :  { %v5800_v0 = vunpack.i.h.bf16 %v5798_v5  ;;  %v5799_v33 = vunpack.i.l.bf16 %v5798_v5  ;;  %v3082_v51 = vsel %vm3035_vm7, %v3017_v39, %v5804_v13  ;;  %v3083_v12 = vsel %vm3035_vm7, %v3018_v56, %v5805_v25 }
 0x224   :  { %v5813_v42 = vpop.permute.xlu1 %5812 }
 0x225   :  { %v5815_v2 = vunpack.i.h.bf16 %v5813_v42  ;;  %v5814_v9 = vunpack.i.l.bf16 %v5813_v42  ;;  %v3080_v22 = vsel %vm3035_vm7, %v3015_v30, %v5799_v33  ;;  %v3081_v29 = vsel %vm3035_vm7, %v3016_v55, %v5800_v0 }
 0x226   :  { %v5808_v36 = vpop.permute.xlu0 %5807 }
 0x227   :  { %v5810_v58 = vunpack.i.h.bf16 %v5808_v36  ;;  %v5809_v24 = vunpack.i.l.bf16 %v5808_v36  ;;  %v3147_v53 = vsel %vm3100_vm8, %v3082_v51, %v5814_v9  ;;  %v3148_v3 = vsel %vm3100_vm8, %v3083_v12, %v5815_v2 }
 0x228   :  { %v3188_v37 = vpack.c.bf16 %v3148_v3, %v3147_v53  ;;  %v5823_v15 = vpop.permute.xlu1 %5822 }
 0x229   :  { %v3145_v18 = vsel %vm3100_vm8, %v3080_v22, %v5809_v24  ;;  %v3146_v28 = vsel %vm3100_vm8, %v3081_v29, %v5810_v58  ;;  %v5825_v50 = vunpack.i.h.bf16 %v5823_v15  ;;  %v5824_v62 = vunpack.i.l.bf16 %v5823_v15 }
 0x22a   :  { %v3187_v48 = vpack.c.bf16 %v3146_v28, %v3145_v18  ;;  %v5818_v40 = vpop.permute.xlu0 %5817 }
 0x22b   :  { %v5820_v8 = vunpack.i.h.bf16 %v5818_v40  ;;  %v5819_v20 = vunpack.i.l.bf16 %v5818_v40  ;;  %v2891_v38 = vsel %vm2840_vm4, %v10517_v16, %v5824_v62  ;;  %v2892_v52 = vsel %vm2840_vm4, %v10518_v63, %v5825_v50 }
 0x22c   :  { %4694 = vmatprep.mubr.msk.bf16.mxu1 %vm3233_vm9, %v3187_v48  ;;  %v5833_v59 = vpop.permute.xlu1 %5832 }
 0x22d   :  { %4695 = vmatmul.mubr.msk.bf16.gmra.mrb[12].mxu1 %vm3233_vm9, %v3188_v37  ;;  %v5835_v54 = vunpack.i.h.bf16 %v5833_v59  ;;  %v5834_v41 = vunpack.i.l.bf16 %v5833_v59  ;;  %v2889_v43 = vsel %vm2840_vm4, %v10519_v49, %v5819_v20  ;;  %v2890_v11 = vsel %vm2840_vm4, %v10520_v57, %v5820_v8  ;;  %v10524_v57 = vld [vmem:[#allocation55_spill] sm:$0xff] }
 0x22e   :  { %v5828_v60 = vpop.permute.xlu0 %5827 }
 0x22f   :  { %v5830_v32 = vunpack.i.h.bf16 %v5828_v60  ;;  %v5829_v44 = vunpack.i.l.bf16 %v5828_v60  ;;  %v2956_v26 = vsel %vm2905_vm5, %v2891_v38, %v5834_v41  ;;  %v2957_v5 = vsel %vm2905_vm5, %v2892_v52, %v5835_v54  ;;  %v10521_v38 = vld [vmem:[#allocation24_spill] sm:$0xff]  ;;  %v10522_v52 = vld [vmem:[#allocation25_spill] sm:$0xff] }
 0x230   :  { %v5843_v35 = vpop.permute.xlu1 %5842 }
 0x231   :  { %v5845_v27 = vunpack.i.h.bf16 %v5843_v35  ;;  %v5844_v6 = vunpack.i.l.bf16 %v5843_v35  ;;  %v2954_v46 = vsel %vm2905_vm5, %v2889_v43, %v5829_v44  ;;  %v2955_v61 = vsel %vm2905_vm5, %v2890_v11, %v5830_v32 }
 0x232   :  { %v5838_v4 = vpop.permute.xlu0 %5837 }
 0x233   :  { %v5840_v47 = vunpack.i.h.bf16 %v5838_v4  ;;  %v5839_v45 = vunpack.i.l.bf16 %v5838_v4  ;;  %v3021_v25 = vsel %vm2970_vm6, %v2956_v26, %v5844_v6  ;;  %v3022_v13 = vsel %vm2970_vm6, %v2957_v5, %v5845_v27 }
 0x234   :  { %v5853_v7 = vpop.permute.xlu1 %5852 }
 0x235   :  { %v5855_v10 = vunpack.i.h.bf16 %v5853_v7  ;;  %v5854_v31 = vunpack.i.l.bf16 %v5853_v7  ;;  %v3019_v17 = vsel %vm2970_vm6, %v2954_v46, %v5839_v45  ;;  %v3020_v0 = vsel %vm2970_vm6, %v2955_v61, %v5840_v47  ;;  %v10523_v45 = vld [vmem:[#allocation54_spill] sm:$0xff] }
 0x236   :  { %v5848_v14 = vpop.permute.xlu0 %5847 }
 0x237   :  { %v5850_v34 = vunpack.i.h.bf16 %v5848_v14  ;;  %v5849_v21 = vunpack.i.l.bf16 %v5848_v14  ;;  %v3086_v39 = vsel %vm3035_vm7, %v3021_v25, %v5854_v31  ;;  %v3087_v56 = vsel %vm3035_vm7, %v3022_v13, %v5855_v10 }
 0x238   :  { %v5863_v23 = vpop.permute.xlu1 %5862 }
 0x239   :  { %v5865_v33 = vunpack.i.h.bf16 %v5863_v23  ;;  %v5864_v19 = vunpack.i.l.bf16 %v5863_v23  ;;  %v3084_v55 = vsel %vm3035_vm7, %v3019_v17, %v5849_v21  ;;  %v3085_v2 = vsel %vm3035_vm7, %v3020_v0, %v5850_v34 }
 0x23a   :  { %v5858_v1 = vpop.permute.xlu0 %5857 }
 0x23b   :  { %v5860_v42 = vunpack.i.h.bf16 %v5858_v1  ;;  %v5859_v30 = vunpack.i.l.bf16 %v5858_v1  ;;  %v3151_v9 = vsel %vm3100_vm8, %v3086_v39, %v5864_v19  ;;  %v3152_v36 = vsel %vm3100_vm8, %v3087_v56, %v5865_v33  ;;  %v8874_v51 = vpop.f32.mrb[0].mxu0 }
 0x23c   :  { %v3190_v12 = vpack.c.bf16 %v3152_v36, %v3151_v9  ;;  %v8878_v22 = vpop.f32.mrb[1].mxu0  ;;  %v5873_v29 = vpop.permute.xlu1 %5872 }
 0x23d   :  { %v3149_v58 = vsel %vm3100_vm8, %v3084_v55, %v5859_v30  ;;  %v3150_v24 = vsel %vm3100_vm8, %v3085_v2, %v5860_v42  ;;  %v8880_v37 = vpop.f32.mrb[2].mxu0  ;;  %v5875_v35 = vunpack.i.h.bf16 %v5873_v29  ;;  %v5874_v50 = vunpack.i.l.bf16 %v5873_v29 }
 0x23e   :  { %v3189_v53 = vpack.c.bf16 %v3150_v24, %v3149_v58  ;;  %v5868_v3 = vpop.permute.xlu0 %5867  ;;  %v8882_v18 = vpop.f32.mrb[3].mxu0 }
 0x23f   :  { %v3623_v28 = vadd.f32 %v8882_v18, %v8878_v22  ;;  %v5869_v62 = vunpack.i.l.bf16 %v5868_v3  ;;  %v5870_v8 = vunpack.i.h.bf16 %v5868_v3  ;;  %v2895_v63 = vsel %vm2840_vm4, %v10521_v38, %v5874_v50 }
 0x240   :  { %4698 = vmatprep.mubr.msk.bf16.mxu1 %vm3233_vm9, %v3189_v53  ;;  %v5883_v15 = vpop.permute.xlu1 %5882  ;;  %v2896_v47 = vsel %vm2840_vm4, %v10522_v52, %v5875_v35 }
 0x241   :  { %4699 = vmatmul.mubr.msk.bf16.gmra.mrb[16].mxu1 %vm3233_vm9, %v3190_v12  ;;  %v3624_v48 = vadd.f32 %v8874_v51, %v3623_v28  ;;  %v5884_v20 = vunpack.i.l.bf16 %v5883_v15  ;;  %v5885_v54 = vunpack.i.h.bf16 %v5883_v15  ;;  %v2893_v14 = vsel %vm2840_vm4, %v10523_v45, %v5869_v62 }
 0x242   :  { %v5878_v40 = vpop.permute.xlu0 %5877  ;;  %v2894_v11 = vsel %vm2840_vm4, %v10524_v57, %v5870_v8 }
 0x243   :  { %v3625_v59 = vadd.f32 %v8880_v37, %v3624_v48  ;;  %v5880_v41 = vunpack.i.h.bf16 %v5878_v40  ;;  %v5879_v32 = vunpack.i.l.bf16 %v5878_v40  ;;  %v2960_v10 = vsel %vm2905_vm5, %v2895_v63, %v5884_v20 }
 0x244   :  { %v5893_v60 = vpop.permute.xlu1 %5892  ;;  %v2961_v5 = vsel %vm2905_vm5, %v2896_v47, %v5885_v54 }
 0x245   :  { %v5895_v44 = vunpack.i.h.bf16 %v5893_v60  ;;  %v5894_v27 = vunpack.i.l.bf16 %v5893_v60  ;;  %v2958_v34 = vsel %vm2905_vm5, %v2893_v14, %v5879_v32  ;;  %v2959_v21 = vsel %vm2905_vm5, %v2894_v11, %v5880_v41 }
 0x246   :  { %v5888_v4 = vpop.permute.xlu0 %5887 }
 0x247   :  { %v5890_v6 = vunpack.i.h.bf16 %v5888_v4  ;;  %v5889_v7 = vunpack.i.l.bf16 %v5888_v4  ;;  %v3025_v25 = vsel %vm2970_vm6, %v2960_v10, %v5894_v27  ;;  %v3026_v13 = vsel %vm2970_vm6, %v2961_v5, %v5895_v44  ;;  %v10527_v10 = vld [vmem:[#allocation43_spill] sm:$0xff] }
 0x248   :  { %v5903_v16 = vpop.permute.xlu1 %5902 }
 0x249   :  { %v5904_v49 = vunpack.i.l.bf16 %v5903_v16  ;;  %v5905_v31 = vunpack.i.h.bf16 %v5903_v16  ;;  %v3023_v23 = vsel %vm2970_vm6, %v2958_v34, %v5889_v7  ;;  %v3024_v17 = vsel %vm2970_vm6, %v2959_v21, %v5890_v6  ;;  %v10525_v6 = vld [vmem:[#allocation5_spill] sm:$0xff]  ;;  %v10526_v16 = vld [vmem:[#allocation42_spill] sm:$0xff] }
 0x24a   :  { %v5898_v43 = vpop.permute.xlu0 %5897 }
 0x24b   :  { %v5899_v26 = vunpack.i.l.bf16 %v5898_v43  ;;  %v5900_v46 = vunpack.i.h.bf16 %v5898_v43  ;;  %v3090_v19 = vsel %vm3035_vm7, %v3025_v25, %v5904_v49  ;;  %v3091_v55 = vsel %vm3035_vm7, %v3026_v13, %v5905_v31 }
 0x24c   :  { %v8902_v61 = vpop.f32.mrb[4].mxu0  ;;  %v5913_v33 = vpop.permute.xlu1 %5912 }
 0x24d   :  { %v8908_v0 = vpop.f32.mrb[5].mxu0  ;;  %v5915_v39 = vunpack.i.h.bf16 %v5913_v33  ;;  %v5914_v56 = vunpack.i.l.bf16 %v5913_v33  ;;  %v3088_v2 = vsel %vm3035_vm7, %v3023_v23, %v5899_v26  ;;  %v3089_v58 = vsel %vm3035_vm7, %v3024_v17, %v5900_v46  ;;  %v10528_v26 = vld [vmem:[#allocation44_spill] sm:$0xff] }
 0x24e   :  { %v3626_v1 = vadd.f32 %v3625_v59, %v8908_v0  ;;  %v5908_v42 = vpop.permute.xlu0 %5907  ;;  %v8912_v30 = vpop.f32.mrb[6].mxu0 }
 0x24f   :  { %v5910_v9 = vunpack.i.h.bf16 %v5908_v42  ;;  %v5909_v36 = vunpack.i.l.bf16 %v5908_v42  ;;  %v8916_v12 = vpop.f32.mrb[7].mxu0  ;;  %v3155_v24 = vsel %vm3100_vm8, %v3090_v19, %v5914_v56  ;;  %v3156_v29 = vsel %vm3100_vm8, %v3091_v55, %v5915_v39 }
 0x250   :  { %v3627_v53 = vadd.f32 %v3626_v1, %v8916_v12  ;;  %v3192_v3 = vpack.c.bf16 %v3156_v29, %v3155_v24  ;;  %v5923_v48 = vpop.permute.xlu1 %5922 }
 0x251   :  { %v3153_v28 = vsel %vm3100_vm8, %v3088_v2, %v5909_v36  ;;  %v3154_v15 = vsel %vm3100_vm8, %v3089_v58, %v5910_v9  ;;  %v5925_v4 = vunpack.i.h.bf16 %v5923_v48  ;;  %v5924_v8 = vunpack.i.l.bf16 %v5923_v48 }
 0x252   :  { %v3191_v40 = vpack.c.bf16 %v3154_v15, %v3153_v28  ;;  %v3628_v59 = vadd.f32 %v8902_v61, %v3627_v53  ;;  %v5918_v60 = vpop.permute.xlu0 %5917 }
 0x253   :  { %v5920_v54 = vunpack.i.h.bf16 %v5918_v60  ;;  %v5919_v41 = vunpack.i.l.bf16 %v5918_v60  ;;  %v2899_v7 = vsel %vm2840_vm4, %v10525_v6, %v5924_v8  ;;  %v2900_v38 = vsel %vm2840_vm4, %v10526_v16, %v5925_v4 }
 0x254   :  { %4702 = vmatprep.mubr.msk.bf16.mxu1 %vm3233_vm9, %v3191_v40  ;;  %v3629_v35 = vadd.f32 %v8912_v30, %v3628_v59  ;;  %v5933_v50 = vpop.permute.xlu1 %5932 }
 0x255   :  { %4703 = vmatmul.mubr.msk.bf16.gmra.mrb[20].mxu1 %vm3233_vm9, %v3192_v3  ;;  %v5935_v44 = vunpack.i.h.bf16 %v5933_v50  ;;  %v5934_v27 = vunpack.i.l.bf16 %v5933_v50  ;;  %v2897_v31 = vsel %vm2840_vm4, %v10527_v10, %v5919_v41  ;;  %v2898_v5 = vsel %vm2840_vm4, %v10528_v26, %v5920_v54 }
 0x256   :  { %v5928_v62 = vpop.permute.xlu0 %5927 }
 0x257   :  { %v5930_v63 = vunpack.i.h.bf16 %v5928_v62  ;;  %v5929_v52 = vunpack.i.l.bf16 %v5928_v62  ;;  %v2964_v13 = vsel %vm2905_vm5, %v2899_v7, %v5934_v27  ;;  %v2965_v23 = vsel %vm2905_vm5, %v2900_v38, %v5935_v44 }
 0x258   :  { %v5943_v20 = vpop.permute.xlu1 %5942 }
 0x259   :  { %v5945_v45 = vunpack.i.h.bf16 %v5943_v20  ;;  %v5944_v14 = vunpack.i.l.bf16 %v5943_v20  ;;  %v2962_v1 = vsel %vm2905_vm5, %v2897_v31, %v5929_v52  ;;  %v2963_v39 = vsel %vm2905_vm5, %v2898_v5, %v5930_v63  ;;  %v10529_v31 = vld [vmem:[#allocation40_spill] sm:$0xff] }
 0x25a   :  { %v5938_v32 = vpop.permute.xlu0 %5937  ;;  %v10530_v5 = vld [vmem:[#allocation64_spill] sm:$0xff] }
 0x25b   :  { %v5940_v49 = vunpack.i.h.bf16 %v5938_v32  ;;  %v5939_v43 = vunpack.i.l.bf16 %v5938_v32  ;;  %v3029_v55 = vsel %vm2970_vm6, %v2964_v13, %v5944_v14  ;;  %v3030_v2 = vsel %vm2970_vm6, %v2965_v23, %v5945_v45 }
 0x25c   :  { %v8932_v47 = vpop.f32.mrb[8].mxu0  ;;  %v5953_v11 = vpop.permute.xlu1 %5952 }
 0x25d   :  { %v8934_v57 = vpop.f32.mrb[9].mxu0  ;;  %v5954_v21 = vunpack.i.l.bf16 %v5953_v11  ;;  %v5955_v17 = vunpack.i.h.bf16 %v5953_v11  ;;  %v3027_v9 = vsel %vm2970_vm6, %v2962_v1, %v5939_v43  ;;  %v3028_v36 = vsel %vm2970_vm6, %v2963_v39, %v5940_v49  ;;  %v10531_v39 = vld [vmem:[#allocation65_spill] sm:$0xff] }
 0x25e   :  { %v3630_v34 = vadd.f32 %v3629_v35, %v8934_v57  ;;  %v5948_v46 = vpop.permute.xlu0 %5947  ;;  %v8941_v25 = vpop.f32.mrb[10].mxu0 }
 0x25f   :  { %v5949_v33 = vunpack.i.l.bf16 %v5948_v46  ;;  %v8945_v19 = vpop.f32.mrb[11].mxu0  ;;  %v5950_v56 = vunpack.i.h.bf16 %v5948_v46  ;;  %v3094_v24 = vsel %vm3035_vm7, %v3029_v55, %v5954_v21  ;;  %v3095_v15 = vsel %vm3035_vm7, %v3030_v2, %v5955_v17 }
 0x260   :  { %v3631_v42 = vadd.f32 %v3630_v34, %v8945_v19  ;;  %v5963_v58 = vpop.permute.xlu1 %5962 }
 0x261   :  { %v5965_v53 = vunpack.i.h.bf16 %v5963_v58  ;;  %v5964_v3 = vunpack.i.l.bf16 %v5963_v58  ;;  %v3092_v48 = vsel %vm3035_vm7, %v3027_v9, %v5949_v33  ;;  %v3093_v60 = vsel %vm3035_vm7, %v3028_v36, %v5950_v56  ;;  %v10532_v36 = vld [vmem:[#allocation66_spill] sm:$0xff] }
 0x262   :  { %v3632_v29 = vadd.f32 %v8932_v47, %v3631_v42  ;;  %v5958_v28 = vpop.permute.xlu0 %5957 }
 0x263   :  { %v5960_v40 = vunpack.i.h.bf16 %v5958_v28  ;;  %v5959_v59 = vunpack.i.l.bf16 %v5958_v28  ;;  %v3159_v35 = vsel %vm3100_vm8, %v3094_v24, %v5964_v3  ;;  %v3160_v50 = vsel %vm3100_vm8, %v3095_v15, %v5965_v53 }
 0x264   :  { %v3633_v62 = vadd.f32 %v8941_v25, %v3632_v29  ;;  %v3194_v4 = vpack.c.bf16 %v3160_v50, %v3159_v35  ;;  %v5973_v54 = vpop.permute.xlu1 %5972 }
 0x265   :  { %v3157_v8 = vsel %vm3100_vm8, %v3092_v48, %v5959_v59  ;;  %v3158_v20 = vsel %vm3100_vm8, %v3093_v60, %v5960_v40  ;;  %v5975_v6 = vunpack.i.h.bf16 %v5973_v54  ;;  %v5974_v7 = vunpack.i.l.bf16 %v5973_v54 }
 0x266   :  { %v3193_v41 = vpack.c.bf16 %v3158_v20, %v3157_v8  ;;  %v5968_v32 = vpop.permute.xlu0 %5967 }
 0x267   :  { %v5969_v52 = vunpack.i.l.bf16 %v5968_v32  ;;  %v5970_v43 = vunpack.i.h.bf16 %v5968_v32  ;;  %v2903_v26 = vsel %vm2840_vm4, %v10529_v31, %v5974_v7  ;;  %v2904_v34 = vsel %vm2840_vm4, %v10530_v5, %v5975_v6 }
 0x268   :  { %4706 = vmatprep.mubr.msk.bf16.mxu1 %vm3233_vm9, %v3193_v41  ;;  %v5983_v44 = vpop.permute.xlu1 %5982 }
 0x269   :  { %4707 = vmatmul.mubr.msk.bf16.gmra.mrb[24].mxu1 %vm3233_vm9, %v3194_v4  ;;  %v5984_v11 = vunpack.i.l.bf16 %v5983_v44  ;;  %v5985_v21 = vunpack.i.h.bf16 %v5983_v44  ;;  %v2901_v56 = vsel %vm2840_vm4, %v10531_v39, %v5969_v52  ;;  %v2902_v58 = vsel %vm2840_vm4, %v10532_v36, %v5970_v43 }
 0x26a   :  { %v5978_v27 = vpop.permute.xlu0 %5977 }
 0x26b   :  { %v5980_v13 = vunpack.i.h.bf16 %v5978_v27  ;;  %v5979_v23 = vunpack.i.l.bf16 %v5978_v27  ;;  %v2968_v24 = vsel %vm2905_vm5, %v2903_v26, %v5984_v11  ;;  %v2969_v3 = vsel %vm2905_vm5, %v2904_v34, %v5985_v21 }
 0x26c   :  { %v8966_v16 = vpop.f32.mrb[12].mxu0  ;;  %v5993_v63 = vpop.permute.xlu1 %5992 }
 0x26d   :  { %v8968_v38 = vpop.f32.mrb[13].mxu0  ;;  %v5995_v17 = vunpack.i.h.bf16 %v5993_v63  ;;  %v5994_v33 = vunpack.i.l.bf16 %v5993_v63  ;;  %v2966_v40 = vsel %vm2905_vm5, %v2901_v56, %v5979_v23  ;;  %v2967_v59 = vsel %vm2905_vm5, %v2902_v58, %v5980_v13 }
 0x26e   :  { %v3634_v45 = vadd.f32 %v3633_v62, %v8968_v38  ;;  %v5988_v14 = vpop.permute.xlu0 %5987  ;;  %v8971_v49 = vpop.f32.mrb[14].mxu0 }
 0x26f   :  { %v8973_v10 = vpop.f32.mrb[15].mxu0  ;;  %v5990_v42 = vunpack.i.h.bf16 %v5988_v14  ;;  %v5989_v55 = vunpack.i.l.bf16 %v5988_v14  ;;  %v3033_v60 = vsel %vm2970_vm6, %v2968_v24, %v5994_v33  ;;  %v3034_v35 = vsel %vm2970_vm6, %v2969_v3, %v5995_v17 }
 0x270   :  { %v3635_v46 = vadd.f32 %v3634_v45, %v8973_v10  ;;  %v6003_v1 = vpop.permute.xlu1 %6002 }
 0x271   :  { %v6005_v29 = vunpack.i.h.bf16 %v6003_v1  ;;  %v6004_v53 = vunpack.i.l.bf16 %v6003_v1  ;;  %v3031_v62 = vsel %vm2970_vm6, %v2966_v40, %v5989_v55  ;;  %v3032_v4 = vsel %vm2970_vm6, %v2967_v59, %v5990_v42 }
 0x272   :  { %v3636_v2 = vadd.f32 %v8966_v16, %v3635_v46  ;;  %v5998_v9 = vpop.permute.xlu0 %5997 }
 0x273   :  { %v6000_v28 = vunpack.i.h.bf16 %v5998_v9  ;;  %v5999_v15 = vunpack.i.l.bf16 %v5998_v9  ;;  %v3098_v41 = vsel %vm3035_vm7, %v3033_v60, %v6004_v53  ;;  %v3099_v32 = vsel %vm3035_vm7, %v3034_v35, %v6005_v29 }
 0x274   :  { %v3637_v48 = vadd.f32 %v8971_v49, %v3636_v2  ;;  %v6013_v50 = vpop.permute.xlu1 %6012 }
 0x275   :  { %v6015_v8 = vunpack.i.h.bf16 %v6013_v50  ;;  %v6014_v20 = vunpack.i.l.bf16 %v6013_v50  ;;  %v3096_v6 = vsel %vm3035_vm7, %v3031_v62, %v5999_v15  ;;  %v3097_v7 = vsel %vm3035_vm7, %v3032_v4, %v6000_v28 }
 0x276   :  { %v6008_v54 = vpop.permute.xlu0 %6007 }
 0x277   :  { %v6010_v44 = vunpack.i.h.bf16 %v6008_v54  ;;  %v6009_v27 = vunpack.i.l.bf16 %v6008_v54  ;;  %v3163_v63 = vsel %vm3100_vm8, %v3098_v41, %v6014_v20  ;;  %v3164_v52 = vsel %vm3100_vm8, %v3099_v32, %v6015_v8 }
 0x278   :  { %v3196_v45 = vpack.c.bf16 %v3164_v52, %v3163_v63 }
 0x279   :  { %v3161_v14 = vsel %vm3100_vm8, %v3096_v6, %v6009_v27  ;;  %v3162_v43 = vsel %vm3100_vm8, %v3097_v7, %v6010_v44 }
 0x27a   :  { %v3195_v11 = vpack.c.bf16 %v3162_v43, %v3161_v14 }
 0x27c   :  { %v9002_v31 = vpop.f32.mrb[16].mxu0  ;;  %4710 = vmatprep.mubr.msk.bf16.mxu1 %vm3233_vm9, %v3195_v11 }
 0x27d   :  { %v9005_v26 = vpop.f32.mrb[17].mxu0  ;;  %4711 = vmatmul.mubr.msk.bf16.gmra.mrb[28].mxu1 %vm3233_vm9, %v3196_v45 }
 0x27e   :  { %v3638_v5 = vadd.f32 %v3637_v48, %v9005_v26  ;;  %v9009_v34 = vpop.f32.mrb[18].mxu0 }
 0x27f   :  { %v9011_v21 = vpop.f32.mrb[19].mxu0 }
 0x280   :  { %v3639_v46 = vadd.f32 %v3638_v5, %v9011_v21 }
 0x282   :  { %v3640_v13 = vadd.f32 %v9002_v31, %v3639_v46 }
 0x284   :  { %v3641_v23 = vadd.f32 %v9009_v34, %v3640_v13 }
 0x28c   :  { %v9016_v17 = vpop.f32.mrb[20].mxu0 }
 0x28d   :  { %v9018_v33 = vpop.f32.mrb[21].mxu0 }
 0x28e   :  { %v3642_v1 = vadd.f32 %v3641_v23, %v9018_v33  ;;  %v9021_v39 = vpop.f32.mrb[22].mxu0 }
 0x28f   :  { %v9023_v56 = vpop.f32.mrb[23].mxu0 }
 0x290   :  { %v3643_v42 = vadd.f32 %v3642_v1, %v9023_v56 }
 0x292   :  { %v3644_v55 = vadd.f32 %v9016_v17, %v3643_v42 }
 0x294   :  { %v3645_v2 = vadd.f32 %v9021_v39, %v3644_v55 }
 0x29c   :  { %v9028_v9 = vpop.f32.mrb[24].mxu0 }
 0x29d   :  { %v9030_v36 = vpop.f32.mrb[25].mxu0 }
 0x29e   :  { %v3646_v58 = vadd.f32 %v3645_v2, %v9030_v36  ;;  %v9033_v24 = vpop.f32.mrb[26].mxu0 }
 0x29f   :  { %v9035_v29 = vpop.f32.mrb[27].mxu0 }
 0x2a0   :  { %v3647_v53 = vadd.f32 %v3646_v58, %v9035_v29 }
 0x2a2   :  { %v3648_v3 = vadd.f32 %v9028_v9, %v3647_v53 }
 0x2a4   :  { %v3649_v28 = vadd.f32 %v9033_v24, %v3648_v3 }
 0x2b0   :  { %v9040_v15 = vpop.f32.mrb[28].mxu0 }
 0x2b1   :  { %v9042_v48 = vpop.f32.mrb[29].mxu0 }
 0x2b2   :  { %v3650_v40 = vadd.f32 %v3649_v28, %v9042_v48  ;;  %v9045_v59 = vpop.f32.mrb[30].mxu0 }
 0x2b3   :  { %v9047_v60 = vpop.f32.mrb[31].mxu0 }
 0x2b4   :  { %v3651_v35 = vadd.f32 %v3650_v40, %v9047_v60 }
 0x2b6   :  { %v3652_v50 = vadd.f32 %v9040_v15, %v3651_v35 }
 0x2b8   :  { %v3653_v62 = vadd.f32 %v9045_v59, %v3652_v50 }
 0x2c4   :  { %v9052_v4 = vpop.f32.mrb[0].mxu1 }
 0x2c5   :  { %v9054_v8 = vpop.f32.mrb[1].mxu1 }
 0x2c6   :  { %v3654_v20 = vadd.f32 %v3653_v62, %v9054_v8  ;;  %v9057_v54 = vpop.f32.mrb[2].mxu1 }
 0x2c7   :  { %v9059_v41 = vpop.f32.mrb[3].mxu1 }
 0x2c8   :  { %v3655_v32 = vadd.f32 %v3654_v20, %v9059_v41 }
 0x2ca   :  { %v3656_v44 = vadd.f32 %v9052_v4, %v3655_v32 }
 0x2cc   :  { %v3657_v27 = vadd.f32 %v9057_v54, %v3656_v44 }
 0x2d8   :  { %v9064_v6 = vpop.f32.mrb[4].mxu1 }
 0x2d9   :  { %v9066_v7 = vpop.f32.mrb[5].mxu1 }
 0x2da   :  { %v3658_v63 = vadd.f32 %v3657_v27, %v9066_v7  ;;  %v9069_v52 = vpop.f32.mrb[6].mxu1 }
 0x2db   :  { %v9071_v45 = vpop.f32.mrb[7].mxu1 }
 0x2dc   :  { %v3659_v14 = vadd.f32 %v3658_v63, %v9071_v45 }
 0x2de   :  { %v3660_v43 = vadd.f32 %v9064_v6, %v3659_v14 }
 0x2e0   :  { %v3661_v11 = vadd.f32 %v9069_v52, %v3660_v43 }
 0x2ec   :  { %v9076_v5 = vpop.f32.mrb[8].mxu1 }
 0x2ed   :  { %v9078_v46 = vpop.f32.mrb[9].mxu1 }
 0x2ee   :  { %v3662_v13 = vadd.f32 %v3661_v11, %v9078_v46  ;;  %v9081_v23 = vpop.f32.mrb[10].mxu1 }
 0x2ef   :  { %v9083_v1 = vpop.f32.mrb[11].mxu1 }
 0x2f0   :  { %v3663_v42 = vadd.f32 %v3662_v13, %v9083_v1 }
 0x2f2   :  { %v3664_v55 = vadd.f32 %v9076_v5, %v3663_v42 }
 0x2f4   :  { %v3665_v2 = vadd.f32 %v9081_v23, %v3664_v55 }
 0x300   :  { %v9088_v58 = vpop.f32.mrb[12].mxu1 }
 0x301   :  { %v9090_v53 = vpop.f32.mrb[13].mxu1 }
 0x302   :  { %v3666_v3 = vadd.f32 %v3665_v2, %v9090_v53  ;;  %v9093_v28 = vpop.f32.mrb[14].mxu1 }
 0x303   :  { %v9095_v40 = vpop.f32.mrb[15].mxu1 }
 0x304   :  { %v3667_v35 = vadd.f32 %v3666_v3, %v9095_v40 }
 0x306   :  { %v3668_v50 = vadd.f32 %v9088_v58, %v3667_v35 }
 0x308   :  { %v3669_v62 = vadd.f32 %v9093_v28, %v3668_v50 }
 0x314   :  { %v9100_v20 = vpop.f32.mrb[16].mxu1 }
 0x315   :  { %10533 = vst [vmem:[#allocation32_spill] sm:$0xff] %v9100_v20  ;;  %v9102_v32 = vpop.f32.mrb[17].mxu1 }
 0x316   :  { %10534 = vst [vmem:[#allocation33_spill] sm:$0xff] %v9102_v32  ;;  %v3670_v44 = vadd.f32 %v3669_v62, %v9102_v32  ;;  %v9105_v27 = vpop.f32.mrb[18].mxu1 }
 0x317   :  { %10535 = vst [vmem:[#allocation34_spill] sm:$0xff] %v9105_v27  ;;  %v9107_v63 = vpop.f32.mrb[19].mxu1 }
 0x318   :  { %10536 = vst [vmem:[#allocation35_spill] sm:$0xff] %v9107_v63  ;;  %v3671_v14 = vadd.f32 %v3670_v44, %v9107_v63 }
 0x31a   :  { %v3672_v43 = vadd.f32 %v9100_v20, %v3671_v14 }
 0x31c   :  { %v3673_v11 = vadd.f32 %v9105_v27, %v3672_v43 }
 0x328   :  { %v9112_v13 = vpop.f32.mrb[20].mxu1 }
 0x329   :  { %10537 = vst [vmem:[#allocation56_spill] sm:$0xff] %v9112_v13  ;;  %v9114_v42 = vpop.f32.mrb[21].mxu1 }
 0x32a   :  { %10538 = vst [vmem:[#allocation57_spill] sm:$0xff] %v9114_v42  ;;  %v3674_v55 = vadd.f32 %v3673_v11, %v9114_v42  ;;  %v9117_v2 = vpop.f32.mrb[22].mxu1 }
 0x32b   :  { %10539 = vst [vmem:[#allocation36_spill] sm:$0xff] %v9117_v2  ;;  %v9119_v3 = vpop.f32.mrb[23].mxu1 }
 0x32c   :  { %10540 = vst [vmem:[#allocation37_spill] sm:$0xff] %v9119_v3  ;;  %v3675_v35 = vadd.f32 %v3674_v55, %v9119_v3 }
 0x32e   :  { %v3676_v50 = vadd.f32 %v9112_v13, %v3675_v35 }
 0x330   :  { %v3677_v62 = vadd.f32 %v9117_v2, %v3676_v50 }
 0x33c   :  { %v9124_v44 = vpop.f32.mrb[24].mxu1 }
 0x33d   :  { %10541 = vst [vmem:[#allocation58_spill] sm:$0xff] %v9124_v44  ;;  %v9126_v14 = vpop.f32.mrb[25].mxu1 }
 0x33e   :  { %10542 = vst [vmem:[#allocation59_spill] sm:$0xff] %v9126_v14  ;;  %v3678_v43 = vadd.f32 %v3677_v62, %v9126_v14  ;;  %v9129_v27 = vpop.f32.mrb[26].mxu1 }
 0x33f   :  { %10543 = vst [vmem:[#allocation60_spill] sm:$0xff] %v9129_v27  ;;  %v9131_v20 = vpop.f32.mrb[27].mxu1 }
 0x340   :  { %10544 = vst [vmem:[#allocation61_spill] sm:$0xff] %v9131_v20  ;;  %v3679_v11 = vadd.f32 %v3678_v43, %v9131_v20 }
 0x342   :  { %v3680_v42 = vadd.f32 %v9124_v44, %v3679_v11 }
 0x344   :  { %v3681_v55 = vadd.f32 %v9129_v27, %v3680_v42 }
 0x350   :  { %v9136_v3 = vpop.f32.mrb[28].mxu1 }
 0x351   :  { %v9138_v35 = vpop.f32.mrb[29].mxu1 }
 0x352   :  { %10545 = vst [vmem:[#allocation45_spill] sm:$0xff] %v9138_v35  ;;  %v3682_v50 = vadd.f32 %v3681_v55, %v9138_v35  ;;  %v9141_v2 = vpop.f32.mrb[30].mxu1 }
 0x353   :  { %v9143_v13 = vpop.f32.mrb[31].mxu1 }
 0x354   :  { %v3683_v62 = vadd.f32 %v3682_v50, %v9143_v13 }
 0x356   :  { %v3684_v14 = vadd.f32 %v9136_v3, %v3683_v62  ;;  %v10559_v62 = vld [vmem:[#allocation34_spill] sm:$0xff] }
 0x358   :  { %v3685_v43 = vadd.f32 %v9141_v2, %v3684_v14  ;;  %v10557_v14 = vld [vmem:[#allocation32_spill] sm:$0xff] }
 0x35a   :  { %v3686_v20 = vrot.slane %v3685_v43, 4 }
 0x35c   :  { %v3687_v11 = vadd.f32 %v3686_v20, %v3685_v43  ;;  %v10561_v43 = vld [vmem:[#allocation57_spill] sm:$0xff] }
 0x35e   :  { %v3688_v44 = vrot.slane %v3687_v11, 2 }
 0x360   :  { %v3689_v42 = vadd.f32 %v3688_v44, %v3687_v11  ;;  %v10555_v44 = vld [vmem:[#allocation35_spill] sm:$0xff]  ;;  %v10563_v11 = vld [vmem:[#allocation37_spill] sm:$0xff] }
 0x362   :  { %v3690_v27 = vrot.slane %v3689_v42, 1 }
 0x364   :  { %v3691_v63 = vadd.f32 %v3690_v27, %v3689_v42 }
 0x366   :  { %v9148_v32 = vmul.f32 0.001953125, %v3691_v63  ;;  %v10553_v63 = vld [vmem:[#allocation33_spill] sm:$0xff] }
 0x368   :  { %v9152_v55 = vsub.f32 %v8878_v22, %v9148_v32  ;;  %v9156_v35 = vsub.f32 %v8882_v18, %v9148_v32  ;;  %v9160_v50 = vsub.f32 %v8874_v51, %v9148_v32  ;;  %v9164_v20 = vsub.f32 %v8880_v37, %v9148_v32 }
 0x369   :  { %v9168_v27 = vsub.f32 %v8908_v0, %v9148_v32  ;;  %v9172_v22 = vsub.f32 %v8916_v12, %v9148_v32  ;;  %v9176_v18 = vsub.f32 %v8902_v61, %v9148_v32  ;;  %v9180_v51 = vsub.f32 %v8912_v30, %v9148_v32 }
 0x36a   :  { %10546 = vst [vmem:[#allocation62_spill] sm:$0xff] %v9152_v55  ;;  %10547 = vst [vmem:[#allocation63_spill] sm:$0xff] %v9156_v35  ;;  %v9184_v37 = vsub.f32 %v8934_v57, %v9148_v32  ;;  %v9188_v0 = vsub.f32 %v8945_v19, %v9148_v32  ;;  %v9192_v12 = vsub.f32 %v8932_v47, %v9148_v32 }
 0x36b   :  { %10548 = vst [vmem:[#allocation38_spill] sm:$0xff] %v9160_v50  ;;  %v9196_v61 = vsub.f32 %v8941_v25, %v9148_v32  ;;  %v9200_v30 = vsub.f32 %v8968_v38, %v9148_v32  ;;  %v9204_v57 = vsub.f32 %v8973_v10, %v9148_v32  ;;  %v9208_v19 = vsub.f32 %v8966_v16, %v9148_v32 }
 0x36c   :  { %v9212_v47 = vsub.f32 %v8971_v49, %v9148_v32  ;;  %v9216_v25 = vsub.f32 %v9005_v26, %v9148_v32  ;;  %v9220_v38 = vsub.f32 %v9011_v21, %v9148_v32  ;;  %v9224_v10 = vsub.f32 %v9002_v31, %v9148_v32 }
 0x36d   :  { %v9228_v16 = vsub.f32 %v9009_v34, %v9148_v32  ;;  %v9232_v49 = vsub.f32 %v9018_v33, %v9148_v32  ;;  %v9236_v26 = vsub.f32 %v9023_v56, %v9148_v32  ;;  %v9240_v21 = vsub.f32 %v9016_v17, %v9148_v32 }
 0x36e   :  { %v9244_v31 = vsub.f32 %v9021_v39, %v9148_v32  ;;  %v9248_v34 = vsub.f32 %v9030_v36, %v9148_v32  ;;  %v9252_v33 = vsub.f32 %v9035_v29, %v9148_v32  ;;  %v9256_v56 = vsub.f32 %v9028_v9, %v9148_v32 }
 0x36f   :  { %v9260_v17 = vsub.f32 %v9033_v24, %v9148_v32  ;;  %v9264_v39 = vsub.f32 %v9042_v48, %v9148_v32  ;;  %v9268_v36 = vsub.f32 %v9047_v60, %v9148_v32  ;;  %v9272_v29 = vsub.f32 %v9040_v15, %v9148_v32 }
 0x370   :  { %v9276_v9 = vsub.f32 %v9045_v59, %v9148_v32  ;;  %v9280_v24 = vsub.f32 %v9054_v8, %v9148_v32  ;;  %v9284_v48 = vsub.f32 %v9059_v41, %v9148_v32  ;;  %v9288_v60 = vsub.f32 %v9052_v4, %v9148_v32 }
 0x371   :  { %v9292_v15 = vsub.f32 %v9057_v54, %v9148_v32  ;;  %v9296_v59 = vsub.f32 %v9066_v7, %v9148_v32  ;;  %v9300_v8 = vsub.f32 %v9071_v45, %v9148_v32  ;;  %v9304_v41 = vsub.f32 %v9064_v6, %v9148_v32 }
 0x372   :  { %v9308_v4 = vsub.f32 %v9069_v52, %v9148_v32  ;;  %v9312_v54 = vsub.f32 %v9078_v46, %v9148_v32  ;;  %v9316_v7 = vsub.f32 %v9083_v1, %v9148_v32  ;;  %v9320_v45 = vsub.f32 %v9076_v5, %v9148_v32 }
 0x373   :  { %v9324_v6 = vsub.f32 %v9081_v23, %v9148_v32  ;;  %v9328_v52 = vsub.f32 %v9090_v53, %v9148_v32  ;;  %v9332_v46 = vsub.f32 %v9095_v40, %v9148_v32  ;;  %v9336_v1 = vsub.f32 %v9088_v58, %v9148_v32 }
 0x374   :  { %v9340_v5 = vsub.f32 %v9093_v28, %v9148_v32  ;;  %v9344_v23 = vsub.f32 %v10553_v63, %v9148_v32  ;;  %v9348_v53 = vsub.f32 %v10555_v44, %v9148_v32  ;;  %v9352_v40 = vsub.f32 %v10557_v14, %v9148_v32  ;;  %v10565_v63 = vld [vmem:[#allocation56_spill] sm:$0xff] }
 0x375   :  { %10549 = vst [vmem:[#allocation10_spill] sm:$0xff] %v9328_v52  ;;  %10550 = vst [vmem:[#allocation11_spill] sm:$0xff] %v9332_v46  ;;  %v9356_v58 = vsub.f32 %v10559_v62, %v9148_v32  ;;  %v9360_v28 = vsub.f32 %v10561_v43, %v9148_v32  ;;  %v9364_v42 = vsub.f32 %v10563_v11, %v9148_v32 }
 0x376   :  { %10551 = vst [vmem:[#allocation6_spill] sm:$0xff] %v9336_v1  ;;  %10552 = vst [vmem:[#allocation7_spill] sm:$0xff] %v9340_v5  ;;  %v9368_v44 = vsub.f32 %v10565_v63, %v9148_v32 }
 0x377   :  { %10554 = vst [vmem:[#allocation30_spill] sm:$0xff] %v9344_v23  ;;  %10556 = vst [vmem:[#allocation31_spill] sm:$0xff] %v9348_v53  ;;  %v10567_v53 = vld [vmem:[#allocation36_spill] sm:$0xff] }
 0x378   :  { %10558 = vst [vmem:[#allocation14_spill] sm:$0xff] %v9352_v40  ;;  %10560 = vst [vmem:[#allocation41_spill] sm:$0xff] %v9356_v58  ;;  %v9372_v14 = vsub.f32 %v10567_v53, %v9148_v32  ;;  %v10569_v40 = vld [vmem:[#allocation59_spill] sm:$0xff]  ;;  %v10571_v58 = vld [vmem:[#allocation61_spill] sm:$0xff] }
 0x379   :  { %10562 = vst [vmem:[#allocation15_spill] sm:$0xff] %v9360_v28  ;;  %10564 = vst [vmem:[#allocation8_spill] sm:$0xff] %v9364_v42  ;;  %v9376_v62 = vsub.f32 %v10569_v40, %v9148_v32  ;;  %v9380_v43 = vsub.f32 %v10571_v58, %v9148_v32  ;;  %v10573_v28 = vld [vmem:[#allocation58_spill] sm:$0xff]  ;;  %v10575_v42 = vld [vmem:[#allocation60_spill] sm:$0xff]  ;;  %v9396_v40 = vsub.f32 %v9143_v13, %v9148_v32 }
 0x37a   :  { %10566 = vst [vmem:[#allocation39_spill] sm:$0xff] %v9368_v44  ;;  %10568 = vst [vmem:[#allocation9_spill] sm:$0xff] %v9372_v14  ;;  %v9384_v11 = vsub.f32 %v10573_v28, %v9148_v32  ;;  %v9388_v63 = vsub.f32 %v10575_v42, %v9148_v32  ;;  %v10577_v44 = vld [vmem:[#allocation45_spill] sm:$0xff]  ;;  %v9400_v58 = vsub.f32 %v9136_v3, %v9148_v32 }
 0x37b   :  { %10570 = vst [vmem:[#allocation46_spill] sm:$0xff] %v9376_v62  ;;  %10572 = vst [vmem:[#allocation47_spill] sm:$0xff] %v9380_v43  ;;  %v9392_v53 = vsub.f32 %v10577_v44, %v9148_v32  ;;  %v9404_v28 = vsub.f32 %v9141_v2, %v9148_v32  ;;  %v3758_v42 = vmul.f32 %v9152_v55, %v9152_v55 }
 0x37c   :  { %10574 = vst [vmem:[#allocation48_spill] sm:$0xff] %v9384_v11  ;;  %10576 = vst [vmem:[#allocation49_spill] sm:$0xff] %v9388_v63  ;;  %v3759_v63 = vmul.f32 %v9156_v35, %v9156_v35  ;;  %v3760_v44 = vmul.f32 %v9160_v50, %v9160_v50  ;;  %v3761_v13 = vmul.f32 %v9164_v20, %v9164_v20 }
 0x37d   :  { %10578 = vst [vmem:[#allocation18_spill] sm:$0xff] %v9392_v53  ;;  %10579 = vst [vmem:[#allocation19_spill] sm:$0xff] %v9396_v40  ;;  %v3762_v3 = vmul.f32 %v9168_v27, %v9168_v27  ;;  %v3763_v32 = vmul.f32 %v9172_v22, %v9172_v22  ;;  %v3764_v55 = vmul.f32 %v9176_v18, %v9176_v18 }
 0x37e   :  { %10580 = vst [vmem:[#allocation12_spill] sm:$0xff] %v9400_v58  ;;  %v3822_v53 = vadd.f32 %v3759_v63, %v3758_v42  ;;  %v3765_v50 = vmul.f32 %v9180_v51, %v9180_v51  ;;  %v3766_v42 = vmul.f32 %v9184_v37, %v9184_v37 }
 0x380   :  { %v3823_v40 = vadd.f32 %v3822_v53, %v3760_v44  ;;  %v3767_v44 = vmul.f32 %v9188_v0, %v9188_v0 }
 0x382   :  { %v3824_v58 = vadd.f32 %v3823_v40, %v3761_v13  ;;  %v3768_v13 = vmul.f32 %v9192_v12, %v9192_v12 }
 0x384   :  { %v3825_v2 = vadd.f32 %v3824_v58, %v3762_v3  ;;  %v3769_v3 = vmul.f32 %v9196_v61, %v9196_v61 }
 0x386   :  { %v3826_v35 = vadd.f32 %v3825_v2, %v3763_v32  ;;  %v3770_v2 = vmul.f32 %v9200_v30, %v9200_v30 }
 0x388   :  { %v3827_v63 = vadd.f32 %v3826_v35, %v3764_v55  ;;  %v3771_v55 = vmul.f32 %v9204_v57, %v9204_v57 }
 0x38a   :  { %v3828_v53 = vadd.f32 %v3827_v63, %v3765_v50  ;;  %v3772_v63 = vmul.f32 %v9208_v19, %v9208_v19 }
 0x38c   :  { %v3829_v40 = vadd.f32 %v3828_v53, %v3766_v42  ;;  %v3773_v53 = vmul.f32 %v9212_v47, %v9212_v47 }
 0x38e   :  { %v3830_v58 = vadd.f32 %v3829_v40, %v3767_v44  ;;  %v3774_v40 = vmul.f32 %v9216_v25, %v9216_v25 }
 0x390   :  { %v3831_v32 = vadd.f32 %v3830_v58, %v3768_v13  ;;  %v3775_v58 = vmul.f32 %v9220_v38, %v9220_v38 }
 0x392   :  { %v3832_v35 = vadd.f32 %v3831_v32, %v3769_v3  ;;  %v3776_v32 = vmul.f32 %v9224_v10, %v9224_v10 }
 0x394   :  { %v3833_v50 = vadd.f32 %v3832_v35, %v3770_v2  ;;  %v3777_v35 = vmul.f32 %v9228_v16, %v9228_v16 }
 0x396   :  { %v3834_v42 = vadd.f32 %v3833_v50, %v3771_v55  ;;  %v3778_v50 = vmul.f32 %v9232_v49, %v9232_v49 }
 0x398   :  { %v3835_v44 = vadd.f32 %v3834_v42, %v3772_v63  ;;  %v3779_v42 = vmul.f32 %v9236_v26, %v9236_v26 }
 0x39a   :  { %v3836_v13 = vadd.f32 %v3835_v44, %v3773_v53  ;;  %v3780_v44 = vmul.f32 %v9240_v21, %v9240_v21 }
 0x39c   :  { %v3837_v3 = vadd.f32 %v3836_v13, %v3774_v40  ;;  %v3781_v13 = vmul.f32 %v9244_v31, %v9244_v31 }
 0x39e   :  { %v3838_v2 = vadd.f32 %v3837_v3, %v3775_v58  ;;  %v3782_v3 = vmul.f32 %v9248_v34, %v9248_v34 }
 0x3a0   :  { %v3839_v55 = vadd.f32 %v3838_v2, %v3776_v32  ;;  %v3783_v2 = vmul.f32 %v9252_v33, %v9252_v33 }
 0x3a2   :  { %v3840_v63 = vadd.f32 %v3839_v55, %v3777_v35  ;;  %v3784_v55 = vmul.f32 %v9256_v56, %v9256_v56 }
 0x3a4   :  { %v3841_v53 = vadd.f32 %v3840_v63, %v3778_v50  ;;  %v3785_v63 = vmul.f32 %v9260_v17, %v9260_v17 }
 0x3a6   :  { %v3842_v40 = vadd.f32 %v3841_v53, %v3779_v42  ;;  %v3786_v53 = vmul.f32 %v9264_v39, %v9264_v39 }
 0x3a8   :  { %v3843_v58 = vadd.f32 %v3842_v40, %v3780_v44  ;;  %v3787_v40 = vmul.f32 %v9268_v36, %v9268_v36 }
 0x3aa   :  { %v3844_v32 = vadd.f32 %v3843_v58, %v3781_v13  ;;  %v3788_v58 = vmul.f32 %v9272_v29, %v9272_v29 }
 0x3ac   :  { %v3845_v35 = vadd.f32 %v3844_v32, %v3782_v3  ;;  %v3789_v32 = vmul.f32 %v9276_v9, %v9276_v9 }
 0x3ae   :  { %v3846_v50 = vadd.f32 %v3845_v35, %v3783_v2  ;;  %v3790_v35 = vmul.f32 %v9280_v24, %v9280_v24 }
 0x3b0   :  { %v3847_v42 = vadd.f32 %v3846_v50, %v3784_v55  ;;  %v3791_v50 = vmul.f32 %v9284_v48, %v9284_v48 }
 0x3b2   :  { %v3848_v44 = vadd.f32 %v3847_v42, %v3785_v63  ;;  %v3792_v42 = vmul.f32 %v9288_v60, %v9288_v60 }
 0x3b4   :  { %v3849_v13 = vadd.f32 %v3848_v44, %v3786_v53  ;;  %v3793_v44 = vmul.f32 %v9292_v15, %v9292_v15 }
 0x3b6   :  { %v3850_v3 = vadd.f32 %v3849_v13, %v3787_v40  ;;  %v3794_v13 = vmul.f32 %v9296_v59, %v9296_v59 }
 0x3b8   :  { %v3851_v2 = vadd.f32 %v3850_v3, %v3788_v58  ;;  %v3795_v3 = vmul.f32 %v9300_v8, %v9300_v8 }
 0x3ba   :  { %v3852_v55 = vadd.f32 %v3851_v2, %v3789_v32  ;;  %v3796_v2 = vmul.f32 %v9304_v41, %v9304_v41 }
 0x3bc   :  { %v3853_v63 = vadd.f32 %v3852_v55, %v3790_v35  ;;  %v3797_v55 = vmul.f32 %v9308_v4, %v9308_v4 }
 0x3be   :  { %v3854_v53 = vadd.f32 %v3853_v63, %v3791_v50  ;;  %v3798_v63 = vmul.f32 %v9312_v54, %v9312_v54 }
 0x3c0   :  { %v3855_v40 = vadd.f32 %v3854_v53, %v3792_v42  ;;  %v3799_v53 = vmul.f32 %v9316_v7, %v9316_v7 }
 0x3c2   :  { %v3856_v58 = vadd.f32 %v3855_v40, %v3793_v44  ;;  %v3800_v40 = vmul.f32 %v9320_v45, %v9320_v45 }
 0x3c4   :  { %v3857_v32 = vadd.f32 %v3856_v58, %v3794_v13  ;;  %v3801_v58 = vmul.f32 %v9324_v6, %v9324_v6 }
 0x3c6   :  { %v3858_v35 = vadd.f32 %v3857_v32, %v3795_v3  ;;  %v3802_v32 = vmul.f32 %v9328_v52, %v9328_v52 }
 0x3c8   :  { %v3859_v50 = vadd.f32 %v3858_v35, %v3796_v2  ;;  %v3803_v35 = vmul.f32 %v9332_v46, %v9332_v46 }
 0x3ca   :  { %v3860_v42 = vadd.f32 %v3859_v50, %v3797_v55  ;;  %v3804_v50 = vmul.f32 %v9336_v1, %v9336_v1 }
 0x3cc   :  { %v3861_v44 = vadd.f32 %v3860_v42, %v3798_v63  ;;  %v3805_v42 = vmul.f32 %v9340_v5, %v9340_v5 }
 0x3ce   :  { %v3862_v13 = vadd.f32 %v3861_v44, %v3799_v53  ;;  %v3806_v44 = vmul.f32 %v9344_v23, %v9344_v23 }
 0x3d0   :  { %v3863_v3 = vadd.f32 %v3862_v13, %v3800_v40  ;;  %v10581_v13 = vld [vmem:[#allocation31_spill] sm:$0xff] }
 0x3d1   :  { %v3807_v52 = vmul.f32 %v10581_v13, %v10581_v13 }
 0x3d2   :  { %v3864_v2 = vadd.f32 %v3863_v3, %v3801_v58  ;;  %v10582_v3 = vld [vmem:[#allocation14_spill] sm:$0xff] }
 0x3d3   :  { %v3808_v46 = vmul.f32 %v10582_v3, %v10582_v3 }
 0x3d4   :  { %v3865_v55 = vadd.f32 %v3864_v2, %v3802_v32  ;;  %v10583_v2 = vld [vmem:[#allocation41_spill] sm:$0xff] }
 0x3d5   :  { %v3809_v1 = vmul.f32 %v10583_v2, %v10583_v2 }
 0x3d6   :  { %v3866_v63 = vadd.f32 %v3865_v55, %v3803_v35  ;;  %v10584_v55 = vld [vmem:[#allocation15_spill] sm:$0xff] }
 0x3d7   :  { %v3810_v5 = vmul.f32 %v10584_v55, %v10584_v55 }
 0x3d8   :  { %v3867_v53 = vadd.f32 %v3866_v63, %v3804_v50  ;;  %v10585_v63 = vld [vmem:[#allocation8_spill] sm:$0xff] }
 0x3d9   :  { %v3811_v23 = vmul.f32 %v10585_v63, %v10585_v63 }
 0x3da   :  { %v3868_v40 = vadd.f32 %v3867_v53, %v3805_v42  ;;  %v10586_v53 = vld [vmem:[#allocation39_spill] sm:$0xff] }
 0x3db   :  { %v3812_v13 = vmul.f32 %v10586_v53, %v10586_v53 }
 0x3dc   :  { %v3869_v58 = vadd.f32 %v3868_v40, %v3806_v44  ;;  %v3813_v40 = vmul.f32 %v9372_v14, %v9372_v14 }
 0x3de   :  { %v3870_v32 = vadd.f32 %v3869_v58, %v3807_v52  ;;  %v3814_v58 = vmul.f32 %v9376_v62, %v9376_v62 }
 0x3e0   :  { %v3871_v35 = vadd.f32 %v3870_v32, %v3808_v46  ;;  %v3815_v32 = vmul.f32 %v9380_v43, %v9380_v43 }
 0x3e2   :  { %v3872_v50 = vadd.f32 %v3871_v35, %v3809_v1  ;;  %v3816_v35 = vmul.f32 %v9384_v11, %v9384_v11 }
 0x3e4   :  { %v3873_v42 = vadd.f32 %v3872_v50, %v3810_v5  ;;  %v10587_v50 = vld [vmem:[#allocation49_spill] sm:$0xff] }
 0x3e5   :  { %v3817_v53 = vmul.f32 %v10587_v50, %v10587_v50 }
 0x3e6   :  { %v3874_v44 = vadd.f32 %v3873_v42, %v3811_v23  ;;  %v10588_v42 = vld [vmem:[#allocation18_spill] sm:$0xff] }
 0x3e7   :  { %v3818_v14 = vmul.f32 %v10588_v42, %v10588_v42 }
 0x3e8   :  { %v3875_v52 = vadd.f32 %v3874_v44, %v3812_v13  ;;  %v10589_v44 = vld [vmem:[#allocation19_spill] sm:$0xff] }
 0x3e9   :  { %v3819_v62 = vmul.f32 %v10589_v44, %v10589_v44 }
 0x3ea   :  { %v3876_v46 = vadd.f32 %v3875_v52, %v3813_v40  ;;  %v10590_v52 = vld [vmem:[#allocation12_spill] sm:$0xff] }
 0x3eb   :  { %v3820_v43 = vmul.f32 %v10590_v52, %v10590_v52 }
 0x3ec   :  { %v3877_v1 = vadd.f32 %v3876_v46, %v3814_v58  ;;  %v3821_v46 = vmul.f32 %v9404_v28, %v9404_v28 }
 0x3ee   :  { %v3878_v5 = vadd.f32 %v3877_v1, %v3815_v32 }
 0x3f0   :  { %v3879_v23 = vadd.f32 %v3878_v5, %v3816_v35 }
 0x3f2   :  { %v3880_v13 = vadd.f32 %v3879_v23, %v3817_v53 }
 0x3f4   :  { %v3881_v40 = vadd.f32 %v3880_v13, %v3818_v14  ;;  %v9539_v14 = vld [vmem:[%s10195_s2] ss:$0 sm:$0xff]  ;;  %s6073_s2 = smov [#allocation2]  }
 0x3f6   :  { %v3882_v58 = vadd.f32 %v3881_v40, %v3819_v62  ;;  %v9558_v40 = vld [vmem:[%s10196_s3] ss:$0 sm:$0xff]  ;;  %s4169_s3 = sshll.u32 %s6073_s2, 4  ;;  %s4170_s3 = int_to_ptr.vmem [resolvable:$true] %s4169_s3 }
 0x3f7   :  { %10594 = vst [vmem:[#allocation13_spill] sm:$0xff] %v9558_v40  ;;  %s6041_s17 = scalar_lea.vmem %s4170_s3, 8192  ;;  %p6046_p1 = scmp.lt.s32.totalorder %s4170_s3, %s4170_s3 }
 0x3f8   :  { %v3883_v32 = vadd.f32 %v3882_v58, %v3820_v43  ;;  %v10591_v43 = vld [vmem:[#allocation62_spill] sm:$0xff]  ;;  %p6042_p0 = scmp.ne.s32.totalorder %s4170_s3, %s6041_s17  ;;  %p6047_p2 = scmp.lt.s32.totalorder %s6041_s17, %s6041_s17 }
 0x3fa   :  { %v3884_v1 = vadd.f32 %v3883_v32, %v3821_v46  ;;  %p6048_p3 = por %p6047_p2, %p6046_p1 }
 0x3fc   :  { %v3885_v11 = vrot.slane %v3884_v1, 4  ;;  %p6049_p4 = pnand %p6048_p3, %p6042_p0 }
 0x3fe   :  { %v3886_v50 = vadd.f32 %v3885_v11, %v3884_v1 }
 0x400   :  { %v3887_v35 = vrot.slane %v3886_v50, 2 }
 0x402   :  { %v3888_v5 = vadd.f32 %v3887_v35, %v3886_v50  ;;  %v10592_v50 = vld [vmem:[#allocation63_spill] sm:$0xff] }
 0x404   :  { %v3889_v63 = vrot.slane %v3888_v5, 1 }
 0x406   :  { %v3890_v42 = vadd.f32 %v3889_v63, %v3888_v5 }
 0x408   :  { %v3891_v53 = vmul.f32 0.001953125, %v3890_v42  ;;  %v10593_v42 = vld [vmem:[#allocation38_spill] sm:$0xff] }
 0x40a   :  { %v3892_v23 = vadd.f32 1e-05, %v3891_v53  ;;  %v10595_v53 = vld [vmem:[#allocation10_spill] sm:$0xff] }
 0x40c   :  { %6021 = vrsqrt.f32 %v3892_v23  ;;  %v10596_v23 = vld [vmem:[#allocation11_spill] sm:$0xff] }
 0x416   :  { %v9534_v55 = vpop.eup %6021 }
 0x417   :  { %v3955_v62 = vmul.f32 %v9534_v55, %v10589_v44  ;;  %v9545_v11 = vmul.f32 %v9534_v55, %v10591_v43  ;;  %v9549_v63 = vmul.f32 %v9534_v55, %v10592_v50  ;;  %v9553_v13 = vmul.f32 %v9534_v55, %v10593_v42  ;;  %v10598_v43 = vld [vmem:[#allocation7_spill] sm:$0xff]  ;;  %v10599_v50 = vld [vmem:[#allocation30_spill] sm:$0xff] }
 0x418   :  { %v9562_v44 = vmul.f32 %v9534_v55, %v9164_v20  ;;  %v9566_v58 = vmul.f32 %v9534_v55, %v9168_v27  ;;  %v9570_v46 = vmul.f32 %v9534_v55, %v9172_v22  ;;  %v9574_v32 = vmul.f32 %v9534_v55, %v9176_v18  ;;  %v10600_v42 = vld [vmem:[#allocation31_spill] sm:$0xff] }
 0x419   :  { %v4026_v1 = vmul.f32 %v9539_v14, %v3955_v62  ;;  %v9579_v35 = vmul.f32 %v9534_v55, %v9180_v51  ;;  %v9583_v20 = vmul.f32 %v9534_v55, %v9184_v37  ;;  %v9587_v27 = vmul.f32 %v9534_v55, %v9188_v0  ;;  %v10597_v62 = vld [vmem:[#allocation6_spill] sm:$0xff] }
 0x41a   :  { %v9591_v22 = vmul.f32 %v9534_v55, %v9192_v12  ;;  %v9595_v18 = vmul.f32 %v9534_v55, %v9196_v61  ;;  %v9599_v51 = vmul.f32 %v9534_v55, %v9200_v30  ;;  %v9603_v37 = vmul.f32 %v9534_v55, %v9204_v57 }
 0x41b   :  { %v4097_v5 = vadd.f32 %v9558_v40, %v4026_v1  ;;  %v9608_v0 = vmul.f32 %v9534_v55, %v9208_v19  ;;  %v9612_v12 = vmul.f32 %v9534_v55, %v9212_v47  ;;  %v9616_v61 = vmul.f32 %v9534_v55, %v9216_v25  ;;  %v10608_v40 = vld [vmem:[#allocation39_spill] sm:$0xff] }
 0x41c   :  { %v9620_v30 = vmul.f32 %v9534_v55, %v9220_v38  ;;  %v9624_v57 = vmul.f32 %v9534_v55, %v9224_v10  ;;  %v9628_v19 = vmul.f32 %v9534_v55, %v9228_v16  ;;  %v9632_v47 = vmul.f32 %v9534_v55, %v9232_v49 }
 0x41d   :  { %4161 = vst [vmem:[#allocation2 + $0x1e8] sm:$0xff] %v4097_v5  ;;  %v9636_v25 = vmul.f32 %v9534_v55, %v9236_v26  ;;  %v9640_v38 = vmul.f32 %v9534_v55, %v9240_v21  ;;  %v9644_v10 = vmul.f32 %v9534_v55, %v9244_v31  ;;  %v9648_v16 = vmul.f32 %v9534_v55, %v9248_v34 }
 0x41e   :  { %v9652_v49 = vmul.f32 %v9534_v55, %v9252_v33  ;;  %v9656_v26 = vmul.f32 %v9534_v55, %v9256_v56  ;;  %v9660_v21 = vmul.f32 %v9534_v55, %v9260_v17  ;;  %v9664_v31 = vmul.f32 %v9534_v55, %v9264_v39 }
 0x41f   :  { %v9668_v34 = vmul.f32 %v9534_v55, %v9268_v36  ;;  %v9672_v33 = vmul.f32 %v9534_v55, %v9272_v29  ;;  %v9676_v56 = vmul.f32 %v9534_v55, %v9276_v9  ;;  %v9680_v17 = vmul.f32 %v9534_v55, %v9280_v24 }
 0x420   :  { %v9684_v39 = vmul.f32 %v9534_v55, %v9284_v48  ;;  %v9688_v36 = vmul.f32 %v9534_v55, %v9288_v60  ;;  %v9692_v29 = vmul.f32 %v9534_v55, %v9292_v15  ;;  %v9696_v9 = vmul.f32 %v9534_v55, %v9296_v59 }
 0x421   :  { %v9700_v24 = vmul.f32 %v9534_v55, %v9300_v8  ;;  %v9704_v48 = vmul.f32 %v9534_v55, %v9304_v41  ;;  %v9708_v60 = vmul.f32 %v9534_v55, %v9308_v4  ;;  %v9712_v15 = vmul.f32 %v9534_v55, %v9312_v54 }
 0x422   :  { %v9716_v59 = vmul.f32 %v9534_v55, %v9316_v7  ;;  %v9720_v8 = vmul.f32 %v9534_v55, %v9320_v45  ;;  %v9724_v41 = vmul.f32 %v9534_v55, %v9324_v6  ;;  %v9728_v4 = vmul.f32 %v9534_v55, %v10595_v53 }
 0x423   :  { %v9732_v54 = vmul.f32 %v9534_v55, %v10596_v23  ;;  %v9736_v7 = vmul.f32 %v9534_v55, %v10597_v62  ;;  %v9740_v45 = vmul.f32 %v9534_v55, %v10598_v43  ;;  %v9744_v6 = vmul.f32 %v9534_v55, %v10599_v50  ;;  %v10604_v23 = vld [vmem:[#allocation15_spill] sm:$0xff]  ;;  %v10606_v43 = vld [vmem:[#allocation8_spill] sm:$0xff] }
 0x424   :  { %v9748_v1 = vmul.f32 %v9534_v55, %v10600_v42  ;;  %v9752_v5 = vmul.f32 %v9534_v55, %v10582_v3  ;;  %v9756_v53 = vmul.f32 %v9534_v55, %v10583_v2  ;;  %v9760_v62 = vmul.f32 %v9534_v55, %v10604_v23 }
 0x425   :  { %v9764_v50 = vmul.f32 %v9534_v55, %v10606_v43  ;;  %v9768_v42 = vmul.f32 %v9534_v55, %v10608_v40 }
 0x426   :  { %10601 = vst [vmem:[#allocation22_spill] sm:$0xff] %v9748_v1  ;;  %10602 = vst [vmem:[#allocation23_spill] sm:$0xff] %v9752_v5  ;;  %v10610_v1 = vld [vmem:[#allocation9_spill] sm:$0xff]  ;;  %v10611_v5 = vld [vmem:[#allocation46_spill] sm:$0xff] }
 0x427   :  { %10603 = vst [vmem:[#allocation16_spill] sm:$0xff] %v9756_v53  ;;  %10605 = vst [vmem:[#allocation17_spill] sm:$0xff] %v9760_v62  ;;  %v9772_v3 = vmul.f32 %v9534_v55, %v10610_v1  ;;  %v9776_v2 = vmul.f32 %v9534_v55, %v10611_v5  ;;  %v10612_v53 = vld [vmem:[#allocation47_spill] sm:$0xff]  ;;  %v10613_v62 = vld [vmem:[#allocation48_spill] sm:$0xff]  ;;  %v9796_v5 = vmul.f32 %v9534_v55, %v10590_v52 }
 0x428   :  { %10607 = vst [vmem:[#allocation50_spill] sm:$0xff] %v9764_v50  ;;  %10609 = vst [vmem:[#allocation51_spill] sm:$0xff] %v9768_v42  ;;  %v9780_v23 = vmul.f32 %v9534_v55, %v10612_v53  ;;  %v9784_v43 = vmul.f32 %v9534_v55, %v10613_v62  ;;  %v10614_v50 = vld [vmem:[#allocation49_spill] sm:$0xff]  ;;  %v10615_v42 = vld [vmem:[#allocation18_spill] sm:$0xff]  ;;  %v9800_v53 = vmul.f32 %v9534_v55, %v9404_v28 }
 0x429   :  { %v9788_v40 = vmul.f32 %v9534_v55, %v10614_v50  ;;  %v9792_v1 = vmul.f32 %v9534_v55, %v10615_v42  ;;  %v9804_v62 = vmul.f32 %v9539_v14, %v9545_v11  ;;  %v9808_v50 = vmul.f32 %v9539_v14, %v9549_v63 }
 0x42a   :  { %v9812_v42 = vmul.f32 %v9539_v14, %v9553_v13  ;;  %v9816_v52 = vmul.f32 %v9539_v14, %v9562_v44  ;;  %v9820_v28 = vmul.f32 %v9539_v14, %v9566_v58  ;;  %v9824_v55 = vmul.f32 %v9539_v14, %v9570_v46 }
 0x42b   :  { %v9828_v11 = vmul.f32 %v9539_v14, %v9574_v32  ;;  %v9832_v63 = vmul.f32 %v9539_v14, %v9579_v35  ;;  %v9836_v13 = vmul.f32 %v9539_v14, %v9583_v20  ;;  %v9840_v44 = vmul.f32 %v9539_v14, %v9587_v27 }
 0x42c   :  { %v9844_v58 = vmul.f32 %v9539_v14, %v9591_v22  ;;  %v9848_v46 = vmul.f32 %v9539_v14, %v9595_v18  ;;  %v9852_v32 = vmul.f32 %v9539_v14, %v9599_v51  ;;  %v9856_v35 = vmul.f32 %v9539_v14, %v9603_v37 }
 0x42d   :  { %v9860_v20 = vmul.f32 %v9539_v14, %v9608_v0  ;;  %v9864_v27 = vmul.f32 %v9539_v14, %v9612_v12  ;;  %v9868_v22 = vmul.f32 %v9539_v14, %v9616_v61  ;;  %v9872_v18 = vmul.f32 %v9539_v14, %v9620_v30 }
 0x42e   :  { %v9876_v51 = vmul.f32 %v9539_v14, %v9624_v57  ;;  %v9880_v37 = vmul.f32 %v9539_v14, %v9628_v19  ;;  %v9884_v0 = vmul.f32 %v9539_v14, %v9632_v47  ;;  %v9888_v12 = vmul.f32 %v9539_v14, %v9636_v25 }
 0x42f   :  { %v9892_v61 = vmul.f32 %v9539_v14, %v9640_v38  ;;  %v9896_v30 = vmul.f32 %v9539_v14, %v9644_v10  ;;  %v9900_v57 = vmul.f32 %v9539_v14, %v9648_v16  ;;  %v9904_v19 = vmul.f32 %v9539_v14, %v9652_v49 }
 0x430   :  { %v9908_v47 = vmul.f32 %v9539_v14, %v9656_v26  ;;  %v9912_v25 = vmul.f32 %v9539_v14, %v9660_v21  ;;  %v9916_v38 = vmul.f32 %v9539_v14, %v9664_v31  ;;  %v9920_v10 = vmul.f32 %v9539_v14, %v9668_v34 }
 0x431   :  { %v9924_v16 = vmul.f32 %v9539_v14, %v9672_v33  ;;  %v9928_v49 = vmul.f32 %v9539_v14, %v9676_v56  ;;  %v9932_v26 = vmul.f32 %v9539_v14, %v9680_v17  ;;  %v9936_v21 = vmul.f32 %v9539_v14, %v9684_v39 }
 0x432   :  { %v9940_v31 = vmul.f32 %v9539_v14, %v9688_v36  ;;  %v9944_v34 = vmul.f32 %v9539_v14, %v9692_v29  ;;  %v9948_v33 = vmul.f32 %v9539_v14, %v9696_v9  ;;  %v9952_v56 = vmul.f32 %v9539_v14, %v9700_v24 }
 0x433   :  { %v9956_v17 = vmul.f32 %v9539_v14, %v9704_v48  ;;  %v9960_v39 = vmul.f32 %v9539_v14, %v9708_v60  ;;  %v9964_v36 = vmul.f32 %v9539_v14, %v9712_v15  ;;  %v9968_v29 = vmul.f32 %v9539_v14, %v9716_v59 }
 0x434   :  { %v9972_v9 = vmul.f32 %v9539_v14, %v9720_v8  ;;  %v9976_v24 = vmul.f32 %v9539_v14, %v9724_v41  ;;  %v9980_v48 = vmul.f32 %v9539_v14, %v9728_v4  ;;  %v9984_v60 = vmul.f32 %v9539_v14, %v9732_v54  ;;  %v10621_v41 = vld [vmem:[#allocation22_spill] sm:$0xff] }
 0x435   :  { %v9988_v15 = vmul.f32 %v9539_v14, %v9736_v7  ;;  %v9992_v59 = vmul.f32 %v9539_v14, %v9740_v45  ;;  %v9996_v8 = vmul.f32 %v9539_v14, %v9744_v6  ;;  %v10000_v4 = vmul.f32 %v9539_v14, %v10621_v41 }
 0x436   :  { %10616 = vst [vmem:[#allocation52_spill] sm:$0xff] %v9980_v48  ;;  %10617 = vst [vmem:[#allocation53_spill] sm:$0xff] %v9984_v60  ;;  %v10622_v48 = vld [vmem:[#allocation23_spill] sm:$0xff]  ;;  %v10623_v60 = vld [vmem:[#allocation16_spill] sm:$0xff] }
 0x437   :  { %10618 = vst [vmem:[#allocation26_spill] sm:$0xff] %v9988_v15  ;;  %10619 = vst [vmem:[#allocation27_spill] sm:$0xff] %v9992_v59  ;;  %v10004_v54 = vmul.f32 %v9539_v14, %v10622_v48  ;;  %v10008_v7 = vmul.f32 %v9539_v14, %v10623_v60  ;;  %v10624_v15 = vld [vmem:[#allocation17_spill] sm:$0xff]  ;;  %v10625_v59 = vld [vmem:[#allocation50_spill] sm:$0xff]  ;;  %v10024_v48 = vmul.f32 %v9539_v14, %v9772_v3 }
 0x438   :  { %10620 = vst [vmem:[#allocation20_spill] sm:$0xff] %v9996_v8  ;;  %v10012_v45 = vmul.f32 %v9539_v14, %v10624_v15  ;;  %v10016_v6 = vmul.f32 %v9539_v14, %v10625_v59  ;;  %v10626_v8 = vld [vmem:[#allocation51_spill] sm:$0xff]  ;;  %v10028_v60 = vmul.f32 %v9539_v14, %v9776_v2  ;;  %v10032_v15 = vmul.f32 %v9539_v14, %v9780_v23 }
 0x439   :  { %v10020_v41 = vmul.f32 %v9539_v14, %v10626_v8  ;;  %v10036_v59 = vmul.f32 %v9539_v14, %v9784_v43  ;;  %v10040_v8 = vmul.f32 %v9539_v14, %v9788_v40  ;;  %v10044_v3 = vmul.f32 %v9539_v14, %v9792_v1 }
 0x43a   :  { %10627 = vst [vmem:[#allocation21_spill] sm:$0xff] %v10032_v15  ;;  %v10048_v2 = vmul.f32 %v9539_v14, %v9796_v5  ;;  %v10052_v23 = vmul.f32 %v9539_v14, %v9800_v53  ;;  %v10630_v15 = vld [vmem:[#allocation13_spill] sm:$0xff] }
 0x43b   :  { %10628 = vst [vmem:[#allocation28_spill] sm:$0xff] %v10036_v59  ;;  %v4036_v43 = vadd.f32 %v10630_v15, %v9804_v62  ;;  %v4037_v59 = vadd.f32 %v10630_v15, %v9808_v50  ;;  %v4038_v40 = vadd.f32 %v10630_v15, %v9812_v42  ;;  %v4039_v1 = vadd.f32 %v10630_v15, %v9816_v52 }
 0x43c   :  { %10629 = vst [vmem:[#allocation29_spill] sm:$0xff] %v10048_v2  ;;  %v4040_v5 = vadd.f32 %v10630_v15, %v9820_v28  ;;  %v4041_v2 = vadd.f32 %v10630_v15, %v9824_v55  ;;  %v4042_v14 = vadd.f32 %v10630_v15, %v9828_v11  ;;  %v4043_v53 = vadd.f32 %v10630_v15, %v9832_v63 }
 0x43d   :  { %v4044_v62 = vadd.f32 %v10630_v15, %v9836_v13  ;;  %v4045_v50 = vadd.f32 %v10630_v15, %v9840_v44  ;;  %v4046_v42 = vadd.f32 %v10630_v15, %v9844_v58  ;;  %4100 = vst [vmem:[#allocation2] sm:$0xff] %v4036_v43  ;;  %4101 = vst [vmem:[#allocation2 + $0x8] sm:$0xff] %v4037_v59 }
 0x43e   :  { %4102 = vst [vmem:[#allocation2 + $0x10] sm:$0xff] %v4038_v40  ;;  %v4047_v52 = vadd.f32 %v10630_v15, %v9848_v46  ;;  %v4048_v28 = vadd.f32 %v10630_v15, %v9852_v32  ;;  %v4049_v55 = vadd.f32 %v10630_v15, %v9856_v35  ;;  %v4050_v11 = vadd.f32 %v10630_v15, %v9860_v20 }
 0x43f   :  { %4103 = vst [vmem:[#allocation2 + $0x18] sm:$0xff] %v4039_v1  ;;  %4104 = vst [vmem:[#allocation2 + $0x20] sm:$0xff] %v4040_v5  ;;  %v4051_v63 = vadd.f32 %v10630_v15, %v9864_v27  ;;  %v4052_v13 = vadd.f32 %v10630_v15, %v9868_v22  ;;  %v4053_v44 = vadd.f32 %v10630_v15, %v9872_v18 }
 0x440   :  { %4105 = vst [vmem:[#allocation2 + $0x28] sm:$0xff] %v4041_v2  ;;  %4106 = vst [vmem:[#allocation2 + $0x30] sm:$0xff] %v4042_v14  ;;  %v4054_v58 = vadd.f32 %v10630_v15, %v9876_v51  ;;  %v4055_v46 = vadd.f32 %v10630_v15, %v9880_v37  ;;  %v4056_v32 = vadd.f32 %v10630_v15, %v9884_v0  ;;  %v10635_v2 = vld [vmem:[#allocation20_spill] sm:$0xff] }
 0x441   :  { %4107 = vst [vmem:[#allocation2 + $0x38] sm:$0xff] %v4043_v53  ;;  %4108 = vst [vmem:[#allocation2 + $0x40] sm:$0xff] %v4044_v62  ;;  %v4057_v35 = vadd.f32 %v10630_v15, %v9888_v12  ;;  %v4058_v20 = vadd.f32 %v10630_v15, %v9892_v61  ;;  %v4059_v27 = vadd.f32 %v10630_v15, %v9896_v30 }
 0x442   :  { %4109 = vst [vmem:[#allocation2 + $0x48] sm:$0xff] %v4045_v50  ;;  %4110 = vst [vmem:[#allocation2 + $0x50] sm:$0xff] %v4046_v42  ;;  %v4060_v22 = vadd.f32 %v10630_v15, %v9900_v57  ;;  %v4061_v18 = vadd.f32 %v10630_v15, %v9904_v19  ;;  %v4062_v51 = vadd.f32 %v10630_v15, %v9908_v47 }
 0x443   :  { %4111 = vst [vmem:[#allocation2 + $0x58] sm:$0xff] %v4047_v52  ;;  %4112 = vst [vmem:[#allocation2 + $0x60] sm:$0xff] %v4048_v28  ;;  %v4063_v37 = vadd.f32 %v10630_v15, %v9912_v25  ;;  %v4064_v0 = vadd.f32 %v10630_v15, %v9916_v38  ;;  %v4065_v12 = vadd.f32 %v10630_v15, %v9920_v10 }
 0x444   :  { %4113 = vst [vmem:[#allocation2 + $0x68] sm:$0xff] %v4049_v55  ;;  %4114 = vst [vmem:[#allocation2 + $0x70] sm:$0xff] %v4050_v11  ;;  %v4066_v61 = vadd.f32 %v10630_v15, %v9924_v16  ;;  %v4067_v30 = vadd.f32 %v10630_v15, %v9928_v49  ;;  %v4068_v57 = vadd.f32 %v10630_v15, %v9932_v26 }
 0x445   :  { %4115 = vst [vmem:[#allocation2 + $0x78] sm:$0xff] %v4051_v63  ;;  %4116 = vst [vmem:[#allocation2 + $0x80] sm:$0xff] %v4052_v13  ;;  %v4069_v19 = vadd.f32 %v10630_v15, %v9936_v21  ;;  %v4070_v47 = vadd.f32 %v10630_v15, %v9940_v31  ;;  %v4071_v25 = vadd.f32 %v10630_v15, %v9944_v34 }
 0x446   :  { %4117 = vst [vmem:[#allocation2 + $0x88] sm:$0xff] %v4053_v44  ;;  %4118 = vst [vmem:[#allocation2 + $0x90] sm:$0xff] %v4054_v58  ;;  %v4072_v38 = vadd.f32 %v10630_v15, %v9948_v33  ;;  %v4073_v10 = vadd.f32 %v10630_v15, %v9952_v56  ;;  %v4074_v16 = vadd.f32 %v10630_v15, %v9956_v17  ;;  %v10631_v33 = vld [vmem:[#allocation52_spill] sm:$0xff]  ;;  %v10632_v17 = vld [vmem:[#allocation53_spill] sm:$0xff] }
 0x447   :  { %4119 = vst [vmem:[#allocation2 + $0x98] sm:$0xff] %v4055_v46  ;;  %4120 = vst [vmem:[#allocation2 + $0xa0] sm:$0xff] %v4056_v32  ;;  %v4075_v49 = vadd.f32 %v10630_v15, %v9960_v39  ;;  %v4076_v26 = vadd.f32 %v10630_v15, %v9964_v36  ;;  %v4077_v21 = vadd.f32 %v10630_v15, %v9968_v29  ;;  %v10633_v36 = vld [vmem:[#allocation26_spill] sm:$0xff]  ;;  %v10634_v29 = vld [vmem:[#allocation27_spill] sm:$0xff] }
 0x448   :  { %4121 = vst [vmem:[#allocation2 + $0xa8] sm:$0xff] %v4057_v35  ;;  %4122 = vst [vmem:[#allocation2 + $0xb0] sm:$0xff] %v4058_v20  ;;  %v4078_v31 = vadd.f32 %v10630_v15, %v9972_v9  ;;  %v4079_v34 = vadd.f32 %v10630_v15, %v9976_v24  ;;  %v4080_v56 = vadd.f32 %v10630_v15, %v10631_v33 }
 0x449   :  { %4123 = vst [vmem:[#allocation2 + $0xb8] sm:$0xff] %v4059_v27  ;;  %4124 = vst [vmem:[#allocation2 + $0xc0] sm:$0xff] %v4060_v22  ;;  %v4081_v39 = vadd.f32 %v10630_v15, %v10632_v17  ;;  %v4082_v59 = vadd.f32 %v10630_v15, %v10633_v36  ;;  %v4083_v9 = vadd.f32 %v10630_v15, %v10634_v29 }
 0x44a   :  { %4125 = vst [vmem:[#allocation2 + $0xc8] sm:$0xff] %v4061_v18  ;;  %4126 = vst [vmem:[#allocation2 + $0xd0] sm:$0xff] %v4062_v51  ;;  %v4084_v43 = vadd.f32 %v10630_v15, %v10635_v2  ;;  %v4085_v24 = vadd.f32 %v10630_v15, %v10000_v4  ;;  %v4086_v40 = vadd.f32 %v10630_v15, %v10004_v54 }
 0x44b   :  { %4127 = vst [vmem:[#allocation2 + $0xd8] sm:$0xff] %v4063_v37  ;;  %4128 = vst [vmem:[#allocation2 + $0xe0] sm:$0xff] %v4064_v0  ;;  %v4087_v1 = vadd.f32 %v10630_v15, %v10008_v7  ;;  %v4088_v5 = vadd.f32 %v10630_v15, %v10012_v45  ;;  %v4089_v14 = vadd.f32 %v10630_v15, %v10016_v6  ;;  %v10636_v7 = vld [vmem:[#allocation21_spill] sm:$0xff]  ;;  %v10637_v45 = vld [vmem:[#allocation28_spill] sm:$0xff] }
 0x44c   :  { %4129 = vst [vmem:[#allocation2 + $0xe8] sm:$0xff] %v4065_v12  ;;  %4130 = vst [vmem:[#allocation2 + $0xf0] sm:$0xff] %v4066_v61  ;;  %v4090_v4 = vadd.f32 %v10630_v15, %v10020_v41  ;;  %v4091_v54 = vadd.f32 %v10630_v15, %v10024_v48  ;;  %v4092_v53 = vadd.f32 %v10630_v15, %v10028_v60  ;;  %v10638_v48 = vld [vmem:[#allocation29_spill] sm:$0xff] }
 0x44d   :  { %4131 = vst [vmem:[#allocation2 + $0xf8] sm:$0xff] %v4067_v30  ;;  %4132 = vst [vmem:[#allocation2 + $0x100] sm:$0xff] %v4068_v57  ;;  %v4093_v62 = vadd.f32 %v10630_v15, %v10636_v7  ;;  %v4094_v50 = vadd.f32 %v10630_v15, %v10637_v45  ;;  %v4095_v6 = vadd.f32 %v10630_v15, %v10040_v8 }
 0x44e   :  { %4133 = vst [vmem:[#allocation2 + $0x108] sm:$0xff] %v4069_v19  ;;  %4134 = vst [vmem:[#allocation2 + $0x110] sm:$0xff] %v4070_v47  ;;  %v4096_v41 = vadd.f32 %v10630_v15, %v10044_v3  ;;  %v4098_v42 = vadd.f32 %v10630_v15, %v10638_v48  ;;  %v4099_v60 = vadd.f32 %v10630_v15, %v10052_v23 }
 0x44f   :  { %4135 = vst [vmem:[#allocation2 + $0x118] sm:$0xff] %v4071_v25  ;;  %4136 = vst [vmem:[#allocation2 + $0x120] sm:$0xff] %v4072_v38 }
 0x450   :  { %4137 = vst [vmem:[#allocation2 + $0x128] sm:$0xff] %v4073_v10  ;;  %4138 = vst [vmem:[#allocation2 + $0x130] sm:$0xff] %v4074_v16 }
 0x451   :  { %4139 = vst [vmem:[#allocation2 + $0x138] sm:$0xff] %v4075_v49  ;;  %4140 = vst [vmem:[#allocation2 + $0x140] sm:$0xff] %v4076_v26 }
 0x452   :  { %4141 = vst [vmem:[#allocation2 + $0x148] sm:$0xff] %v4077_v21  ;;  %4142 = vst [vmem:[#allocation2 + $0x150] sm:$0xff] %v4078_v31 }
 0x453   :  { %4143 = vst [vmem:[#allocation2 + $0x158] sm:$0xff] %v4079_v34  ;;  %4144 = vst [vmem:[#allocation2 + $0x160] sm:$0xff] %v4080_v56 }
 0x454   :  { %4145 = vst [vmem:[#allocation2 + $0x168] sm:$0xff] %v4081_v39  ;;  %4146 = vst [vmem:[#allocation2 + $0x170] sm:$0xff] %v4082_v59 }
 0x455   :  { %4147 = vst [vmem:[#allocation2 + $0x178] sm:$0xff] %v4083_v9  ;;  %4148 = vst [vmem:[#allocation2 + $0x180] sm:$0xff] %v4084_v43 }
 0x456   :  { %4149 = vst [vmem:[#allocation2 + $0x188] sm:$0xff] %v4085_v24  ;;  %4150 = vst [vmem:[#allocation2 + $0x190] sm:$0xff] %v4086_v40 }
 0x457   :  { %4151 = vst [vmem:[#allocation2 + $0x198] sm:$0xff] %v4087_v1  ;;  %4152 = vst [vmem:[#allocation2 + $0x1a0] sm:$0xff] %v4088_v5 }
 0x458   :  { %4153 = vst [vmem:[#allocation2 + $0x1a8] sm:$0xff] %v4089_v14  ;;  %4154 = vst [vmem:[#allocation2 + $0x1b0] sm:$0xff] %v4090_v4 }
 0x459   :  { %4155 = vst [vmem:[#allocation2 + $0x1b8] sm:$0xff] %v4091_v54  ;;  %4156 = vst [vmem:[#allocation2 + $0x1c0] sm:$0xff] %v4092_v53 }
 0x45a   :  { %4157 = vst [vmem:[#allocation2 + $0x1c8] sm:$0xff] %v4093_v62  ;;  %4158 = vst [vmem:[#allocation2 + $0x1d0] sm:$0xff] %v4094_v50 }
 0x45b   :  { %4159 = vst [vmem:[#allocation2 + $0x1d8] sm:$0xff] %v4095_v6  ;;  %4160 = vst [vmem:[#allocation2 + $0x1e0] sm:$0xff] %v4096_v41 }
 0x45c   :  { %4162 = vst [vmem:[#allocation2 + $0x1f0] sm:$0xff] %v4098_v42  ;;  %4163 = vst [vmem:[#allocation2 + $0x1f8] sm:$0xff] %v4099_v60 }
 0x45d   :  { %6052 = shalt.err (!%p6049_p4)
}
 0x45e   :  { %s6053_s28 = scalar_lea.hbm %s10197_s4, 8192 }
 0x45f   :  { %p6054_p5 = scmp.ne.s32.totalorder %s10197_s4, %s6053_s28  ;;  %p6057_p6 = scmp.lt.u32.totalorder %s6053_s28, %s10197_s4 }
 0x461   :  { %p6059_p7 = pnand %p6057_p6, %p6054_p5 }
 0x463   :  { %6062 = shalt.err (!%p6059_p7)
}
 0x464   :  { %s6074_s8 = smov 128  }
 0x465   :  { %4175 = dma.vmem_to_hbm [thread:$0]  %s4170_s3, 8192, %s10197_s4, [#allocation3], %s6074_s8, %s6074_s8, %s6065_s5  }
 0x466   :  { %6063 = dma.done.wait [#allocation3], 8192  }
 0x467   :  { %6064 = vsyncadd [#allocation3], 4294959104 }
 0x468   :  { %4179 = vsyncpa [#allocation3], 1 }

</bundles_post_ra>
